<compile_context>
chip_gen: v7x
topology: tpu7x:2x2x1
jax: 0.10.0
libtpu: 0.0.40
codegen_flags: <defaults>
</compile_context>

<pallas_src>
import functools
import math

import jax
import jax.numpy as jnp
from jax.experimental import pallas as pl
from jax.experimental.pallas import tpu as pltpu  # noqa: F401  (TPU backend)


def _round_up(x, m):
    return (x + m - 1) // m * m


def _full_spec(shape):
    nd = len(shape)
    return pl.BlockSpec(shape, lambda *args, _nd=nd: (0,) * _nd)


# ---------------------------------------------------------------------------
# Fused Pallas kernel: whole sequence, all GRU layers + output Linear.
# ---------------------------------------------------------------------------
def _decoder_gru_kernel(x_ref, h0_ref, wih_ref, whh_ref, bih_ref, bhh_ref,
                        ow_ref, ob_ref, out_ref, hN_ref):
    T = x_ref.shape[0]
    L = h0_ref.shape[0]
    P = h0_ref.shape[2]          # padded hidden/feature width (multiple of 128)

    # Load parameters once; they stay VMEM-resident across the whole sequence.
    wih = [wih_ref[l] for l in range(L)]    # each [P, 3P], gate columns [r | z | n]
    whh = [whh_ref[l] for l in range(L)]    # each [P, 3P]
    bih = [bih_ref[l] for l in range(L)]    # each [1, 3P]
    bhh = [bhh_ref[l] for l in range(L)]    # each [1, 3P]
    ow = ow_ref[...]                        # [P, O_pad]
    ob = ob_ref[...]                        # [1, O_pad]

    h = [h0_ref[l] for l in range(L)]       # each [B_pad, P]

    for t in range(T):                      # statically unrolled time loop (T is small)
        inp = x_ref[t]                      # [B_pad, P]
        for l in range(L):
            # Fused-gate matmuls: 2 MXU contractions per cell instead of 6.
            gi = jnp.dot(inp, wih[l], preferred_element_type=jnp.float32) + bih[l]
            gh = jnp.dot(h[l], whh[l], preferred_element_type=jnp.float32) + bhh[l]
            r = jax.nn.sigmoid(gi[:, 0:P] + gh[:, 0:P])
            z = jax.nn.sigmoid(gi[:, P:2 * P] + gh[:, P:2 * P])
            n = jnp.tanh(gi[:, 2 * P:3 * P] + r * gh[:, 2 * P:3 * P])
            h[l] = (1.0 - z) * n + z * h[l]
            inp = h[l]
            # TODO(synk): inter-layer GRU dropout is identity (eval mode).
        # nn.Dropout -> identity (eval); fused output Linear, lane-dense store.
        out_ref[t] = jnp.dot(inp, ow, preferred_element_type=jnp.float32) + ob

    for l in range(L):
        hN_ref[l] = h[l]


# ---------------------------------------------------------------------------
# Parameters (nn.GRU / nn.Linear layouts), pre-padded / fused for the kernel.
# ---------------------------------------------------------------------------
def init_decoder_params(key, input_size, hidden_size, output_size, num_layers):
    """Raw params matching nn.GRU / nn.Linear shapes (gate order r, z, n)."""
    bound = 1.0 / math.sqrt(hidden_size)
    gru_raw = []
    for layer in range(num_layers):
        in_dim = input_size if layer == 0 else hidden_size
        key, k1, k2, k3, k4 = jax.random.split(key, 5)
        w_ih = jax.random.uniform(k1, (3 * hidden_size, in_dim),
                                  minval=-bound, maxval=bound, dtype=jnp.float32)
        w_hh = jax.random.uniform(k2, (3 * hidden_size, hidden_size),
                                  minval=-bound, maxval=bound, dtype=jnp.float32)
        b_ih = jax.random.uniform(k3, (3 * hidden_size,),
                                  minval=-bound, maxval=bound, dtype=jnp.float32)
        b_hh = jax.random.uniform(k4, (3 * hidden_size,),
                                  minval=-bound, maxval=bound, dtype=jnp.float32)
        gru_raw.append((w_ih, w_hh, b_ih, b_hh))
    key, k1, k2 = jax.random.split(key, 3)
    out_w = jax.random.uniform(k1, (output_size, hidden_size),
                               minval=-bound, maxval=bound, dtype=jnp.float32)
    out_b = jax.random.uniform(k2, (output_size,),
                               minval=-bound, maxval=bound, dtype=jnp.float32)
    return key, gru_raw, (out_w, out_b)


def pack_params(gru_raw, lin_raw, input_size, hidden_size, output_size):
    """Pre-pad and fuse parameters into kernel layout (done once, outside the kernel)."""
    H = hidden_size
    P = _round_up(max(input_size, hidden_size), 128)   # shared padded feature width
    Op = _round_up(output_size, 128)

    def pad_w(w):  # [3H, in_dim] (PyTorch) -> [P, 3P], gate columns [r | z | n]
        cols = []
        for g in range(3):
            wg = w[g * H:(g + 1) * H, :].T                    # [in_dim, H]
            wg = jnp.pad(wg, ((0, P - wg.shape[0]), (0, P - H)))
            cols.append(wg)
        return jnp.concatenate(cols, axis=1)

    def pad_b(b):  # [3H] -> [1, 3P]
        cols = [jnp.pad(b[g * H:(g + 1) * H], (0, P - H)) for g in range(3)]
        return jnp.concatenate(cols).reshape(1, 3 * P)

    wih = jnp.stack([pad_w(w_ih) for (w_ih, _, _, _) in gru_raw])
    whh = jnp.stack([pad_w(w_hh) for (_, w_hh, _, _) in gru_raw])
    bih = jnp.stack([pad_b(b_ih) for (_, _, b_ih, _) in gru_raw])
    bhh = jnp.stack([pad_b(b_hh) for (_, _, _, b_hh) in gru_raw])

    out_w, out_b = lin_raw
    ow = jnp.pad(out_w.T, ((0, P - H), (0, Op - output_size)))
    ob = jnp.pad(out_b, (0, Op - output_size)).reshape(1, Op)
    return dict(wih=wih, whh=whh, bih=bih, bhh=bhh, ow=ow, ob=ob)


# ---------------------------------------------------------------------------
# Jitted forward: pad -> single pallas_call -> slice.
# ---------------------------------------------------------------------------
@functools.partial(jax.jit, static_argnames=("output_size",))
def decoder_gru_forward(x, h0, kparams, *, output_size):
    """x: [T, B, input_size], h0: [L, B, H] -> (output [T, B, output_size], hidden [L, B, H])."""
    T, B, F = x.shape
    L, _, H = h0.shape
    P = kparams["wih"].shape[1]          # padded feature width
    Op = kparams["ow"].shape[1]          # padded output width
    Bp = _round_up(B, 8)

    x_p = jnp.pad(x, ((0, 0), (0, Bp - B), (0, P - F)))
    h0_p = jnp.pad(h0, ((0, 0), (0, Bp - B), (0, P - H)))

    args = (x_p, h0_p, kparams["wih"], kparams["whh"],
            kparams["bih"], kparams["bhh"], kparams["ow"], kparams["ob"])

    out_p, hN_p = pl.pallas_call(
        _decoder_gru_kernel,
        out_shape=(jax.ShapeDtypeStruct((T, Bp, Op), jnp.float32),
                   jax.ShapeDtypeStruct((L, Bp, P), jnp.float32)),
        in_specs=[_full_spec(a.shape) for a in args],
        out_specs=(_full_spec((T, Bp, Op)), _full_spec((L, Bp, P))),
    )(*args)

    return out_p[:, :B, :output_size], hN_p[:, :B, :H]


# ---------------------------------------------------------------------------
# Pure-JAX reference (same math as nn.GRU + nn.Linear, eval mode).
# ---------------------------------------------------------------------------
def reference_forward(x, h0, gru_raw, lin_raw):
    T = x.shape[0]
    L = h0.shape[0]
    H = h0.shape[2]
    out_w, out_b = lin_raw
    h = [h0[l] for l in range(L)]
    outs = []
    for t in range(T):
        inp = x[t]
        for l, (w_ih, w_hh, b_ih, b_hh) in enumerate(gru_raw):
            gi = inp @ w_ih.T + b_ih
            gh = h[l] @ w_hh.T + b_hh
            r = jax.nn.sigmoid(gi[:, :H] + gh[:, :H])
            z = jax.nn.sigmoid(gi[:, H:2 * H] + gh[:, H:2 * H])
            n = jnp.tanh(gi[:, 2 * H:] + r * gh[:, 2 * H:])
            h[l] = (1.0 - z) * n + z * h[l]
            inp = h[l]
        outs.append(inp @ out_w.T + out_b)
    return jnp.stack(outs, axis=0), jnp.stack(h, axis=0)


# ---------------------------------------------------------------------------
if __name__ == "__main__":
    # DecoderGRU config (small, consistent with the module).
    config = dict(input_size=4, hidden_size=32, output_size=1,
                  num_layers=2, length=8, dropout=0.1)
    T, B = config["length"], 2

    key = jax.random.PRNGKey(0)
    key, gru_raw, lin_raw = init_decoder_params(
        key, config["input_size"], config["hidden_size"],
        config["output_size"], config["num_layers"])
    kparams = pack_params(gru_raw, lin_raw, config["input_size"],
                          config["hidden_size"], config["output_size"])

    key, kx, kh = jax.random.split(key, 3)
    x = jax.random.normal(kx, (T, B, config["input_size"]), dtype=jnp.float32)
    h0 = jax.random.normal(kh, (config["num_layers"], B, config["hidden_size"]),
                           dtype=jnp.float32)

    out, h_final = decoder_gru_forward(x, h0, kparams,
                                       output_size=config["output_size"])
    out, h_final = jax.block_until_ready((out, h_final))

    assert out.shape == (T, B, config["output_size"])
    assert h_final.shape == (config["num_layers"], B, config["hidden_size"])
    assert bool(jnp.all(jnp.isfinite(out))) and bool(jnp.all(jnp.isfinite(h_final)))

    ref_out, ref_h = reference_forward(x, h0, gru_raw, lin_raw)
    assert jnp.allclose(out, ref_out, rtol=1e-2, atol=1e-2), \
        float(jnp.max(jnp.abs(out - ref_out)))
    assert jnp.allclose(h_final, ref_h, rtol=1e-2, atol=1e-2), \
        float(jnp.max(jnp.abs(h_final - ref_h)))

    print("KERNEL_OK")
</pallas_src>

<mosaic_0001>
module attributes {stable_mosaic.version = 11 : i64} {
  func.func @_decoder_gru_kernel(%arg0: memref<8x8x128xf32, #tpu.memory_space<vmem>>, %arg1: memref<2x8x128xf32, #tpu.memory_space<vmem>>, %arg2: memref<2x128x384xf32, #tpu.memory_space<vmem>>, %arg3: memref<2x128x384xf32, #tpu.memory_space<vmem>>, %arg4: memref<2x1x384xf32, #tpu.memory_space<vmem>>, %arg5: memref<2x1x384xf32, #tpu.memory_space<vmem>>, %arg6: memref<128x128xf32, #tpu.memory_space<vmem>>, %arg7: memref<1x128xf32, #tpu.memory_space<vmem>>, %arg8: memref<8x8x128xf32, #tpu.memory_space<vmem>>, %arg9: memref<2x8x128xf32, #tpu.memory_space<vmem>>) attributes {dimension_semantics = [], scalar_prefetch = 0 : i64, scratch_operands = 0 : i64, tpu.core_type = #tpu.core_type<tc>} {
    %c0 = arith.constant 0 : index
    %c0_0 = arith.constant 0 : index
    %c0_1 = arith.constant 0 : index
    %0 = vector.load %arg2[%c0, %c0_0, %c0_1] : memref<2x128x384xf32, #tpu.memory_space<vmem>>, vector<1x128x384xf32>
    %1 = vector.shape_cast %0 : vector<1x128x384xf32> to vector<128x384xf32>
    %c1 = arith.constant 1 : index
    %c0_2 = arith.constant 0 : index
    %c0_3 = arith.constant 0 : index
    %2 = vector.load %arg2[%c1, %c0_2, %c0_3] : memref<2x128x384xf32, #tpu.memory_space<vmem>>, vector<1x128x384xf32>
    %3 = vector.shape_cast %2 : vector<1x128x384xf32> to vector<128x384xf32>
    %c0_4 = arith.constant 0 : index
    %c0_5 = arith.constant 0 : index
    %c0_6 = arith.constant 0 : index
    %4 = vector.load %arg3[%c0_4, %c0_5, %c0_6] : memref<2x128x384xf32, #tpu.memory_space<vmem>>, vector<1x128x384xf32>
    %5 = vector.shape_cast %4 : vector<1x128x384xf32> to vector<128x384xf32>
    %c1_7 = arith.constant 1 : index
    %c0_8 = arith.constant 0 : index
    %c0_9 = arith.constant 0 : index
    %6 = vector.load %arg3[%c1_7, %c0_8, %c0_9] : memref<2x128x384xf32, #tpu.memory_space<vmem>>, vector<1x128x384xf32>
    %7 = vector.shape_cast %6 : vector<1x128x384xf32> to vector<128x384xf32>
    %c0_10 = arith.constant 0 : index
    %c0_11 = arith.constant 0 : index
    %c0_12 = arith.constant 0 : index
    %8 = vector.load %arg4[%c0_10, %c0_11, %c0_12] : memref<2x1x384xf32, #tpu.memory_space<vmem>>, vector<1x1x384xf32>
    %9 = vector.shape_cast %8 : vector<1x1x384xf32> to vector<1x384xf32>
    %c1_13 = arith.constant 1 : index
    %c0_14 = arith.constant 0 : index
    %c0_15 = arith.constant 0 : index
    %10 = vector.load %arg4[%c1_13, %c0_14, %c0_15] : memref<2x1x384xf32, #tpu.memory_space<vmem>>, vector<1x1x384xf32>
    %11 = vector.shape_cast %10 : vector<1x1x384xf32> to vector<1x384xf32>
    %c0_16 = arith.constant 0 : index
    %c0_17 = arith.constant 0 : index
    %c0_18 = arith.constant 0 : index
    %12 = vector.load %arg5[%c0_16, %c0_17, %c0_18] : memref<2x1x384xf32, #tpu.memory_space<vmem>>, vector<1x1x384xf32>
    %13 = vector.shape_cast %12 : vector<1x1x384xf32> to vector<1x384xf32>
    %c1_19 = arith.constant 1 : index
    %c0_20 = arith.constant 0 : index
    %c0_21 = arith.constant 0 : index
    %14 = vector.load %arg5[%c1_19, %c0_20, %c0_21] : memref<2x1x384xf32, #tpu.memory_space<vmem>>, vector<1x1x384xf32>
    %15 = vector.shape_cast %14 : vector<1x1x384xf32> to vector<1x384xf32>
    %c0_22 = arith.constant 0 : index
    %c0_23 = arith.constant 0 : index
    %16 = vector.load %arg6[%c0_22, %c0_23] : memref<128x128xf32, #tpu.memory_space<vmem>>, vector<128x128xf32>
    %c0_24 = arith.constant 0 : index
    %c0_25 = arith.constant 0 : index
    %17 = vector.load %arg7[%c0_24, %c0_25] : memref<1x128xf32, #tpu.memory_space<vmem>>, vector<1x128xf32>
    %c0_26 = arith.constant 0 : index
    %c0_27 = arith.constant 0 : index
    %c0_28 = arith.constant 0 : index
    %18 = vector.load %arg1[%c0_26, %c0_27, %c0_28] : memref<2x8x128xf32, #tpu.memory_space<vmem>>, vector<1x8x128xf32>
    %19 = vector.shape_cast %18 : vector<1x8x128xf32> to vector<8x128xf32>
    %c1_29 = arith.constant 1 : index
    %c0_30 = arith.constant 0 : index
    %c0_31 = arith.constant 0 : index
    %20 = vector.load %arg1[%c1_29, %c0_30, %c0_31] : memref<2x8x128xf32, #tpu.memory_space<vmem>>, vector<1x8x128xf32>
    %21 = vector.shape_cast %20 : vector<1x8x128xf32> to vector<8x128xf32>
    %c0_32 = arith.constant 0 : index
    %c0_33 = arith.constant 0 : index
    %c0_34 = arith.constant 0 : index
    %22 = vector.load %arg0[%c0_32, %c0_33, %c0_34] : memref<8x8x128xf32, #tpu.memory_space<vmem>>, vector<1x8x128xf32>
    %23 = vector.shape_cast %22 : vector<1x8x128xf32> to vector<8x128xf32>
    %cst = arith.constant dense<0.000000e+00> : vector<8x384xf32>
    %24 = tpu.matmul %23, %1, %cst {dimension_numbers = #tpu.dot_dimension_numbers<[1], [0], [0], [1], [0, 0, 1, 1], [], []>} : vector<8x128xf32>, vector<128x384xf32>, vector<8x384xf32> -> vector<8x384xf32>
    %25 = vector.broadcast %9 : vector<1x384xf32> to vector<8x384xf32>
    %26 = arith.addf %24, %25 : vector<8x384xf32>
    %cst_35 = arith.constant dense<0.000000e+00> : vector<8x384xf32>
    %27 = tpu.matmul %19, %5, %cst_35 {dimension_numbers = #tpu.dot_dimension_numbers<[1], [0], [0], [1], [0, 0, 1, 1], [], []>} : vector<8x128xf32>, vector<128x384xf32>, vector<8x384xf32> -> vector<8x384xf32>
    %28 = vector.broadcast %13 : vector<1x384xf32> to vector<8x384xf32>
    %29 = arith.addf %27, %28 : vector<8x384xf32>
    %30 = vector.extract_strided_slice %26 {offsets = [0, 0], sizes = [8, 128], strides = [1, 1]} : vector<8x384xf32> to vector<8x128xf32>
    %31 = vector.extract_strided_slice %29 {offsets = [0, 0], sizes = [8, 128], strides = [1, 1]} : vector<8x384xf32> to vector<8x128xf32>
    %32 = arith.addf %30, %31 : vector<8x128xf32>
    %33 = arith.negf %32 : vector<8x128xf32>
    %34 = math.exp %33 : vector<8x128xf32>
    %cst_36 = arith.constant 1.000000e+00 : f32
    %35 = vector.broadcast %cst_36 : f32 to vector<8x128xf32>
    %36 = arith.addf %35, %34 : vector<8x128xf32>
    %37 = arith.divf %35, %36 : vector<8x128xf32>
    %38 = vector.extract_strided_slice %26 {offsets = [0, 128], sizes = [8, 128], strides = [1, 1]} : vector<8x384xf32> to vector<8x128xf32>
    %39 = vector.extract_strided_slice %29 {offsets = [0, 128], sizes = [8, 128], strides = [1, 1]} : vector<8x384xf32> to vector<8x128xf32>
    %40 = arith.addf %38, %39 : vector<8x128xf32>
    %41 = arith.negf %40 : vector<8x128xf32>
    %42 = math.exp %41 : vector<8x128xf32>
    %cst_37 = arith.constant 1.000000e+00 : f32
    %43 = vector.broadcast %cst_37 : f32 to vector<8x128xf32>
    %44 = arith.addf %43, %42 : vector<8x128xf32>
    %45 = arith.divf %43, %44 : vector<8x128xf32>
    %46 = vector.extract_strided_slice %26 {offsets = [0, 256], sizes = [8, 128], strides = [1, 1]} : vector<8x384xf32> to vector<8x128xf32>
    %47 = vector.extract_strided_slice %29 {offsets = [0, 256], sizes = [8, 128], strides = [1, 1]} : vector<8x384xf32> to vector<8x128xf32>
    %48 = arith.mulf %37, %47 : vector<8x128xf32>
    %49 = arith.addf %46, %48 : vector<8x128xf32>
    %50 = math.tanh %49 : vector<8x128xf32>
    %cst_38 = arith.constant 1.000000e+00 : f32
    %51 = vector.broadcast %cst_38 : f32 to vector<8x128xf32>
    %52 = arith.subf %51, %45 : vector<8x128xf32>
    %53 = arith.mulf %52, %50 : vector<8x128xf32>
    %54 = arith.mulf %45, %19 : vector<8x128xf32>
    %55 = arith.addf %53, %54 : vector<8x128xf32>
    %cst_39 = arith.constant dense<0.000000e+00> : vector<8x384xf32>
    %56 = tpu.matmul %55, %3, %cst_39 {dimension_numbers = #tpu.dot_dimension_numbers<[1], [0], [0], [1], [0, 0, 1, 1], [], []>} : vector<8x128xf32>, vector<128x384xf32>, vector<8x384xf32> -> vector<8x384xf32>
    %57 = vector.broadcast %11 : vector<1x384xf32> to vector<8x384xf32>
    %58 = arith.addf %56, %57 : vector<8x384xf32>
    %cst_40 = arith.constant dense<0.000000e+00> : vector<8x384xf32>
    %59 = tpu.matmul %21, %7, %cst_40 {dimension_numbers = #tpu.dot_dimension_numbers<[1], [0], [0], [1], [0, 0, 1, 1], [], []>} : vector<8x128xf32>, vector<128x384xf32>, vector<8x384xf32> -> vector<8x384xf32>
    %60 = vector.broadcast %15 : vector<1x384xf32> to vector<8x384xf32>
    %61 = arith.addf %59, %60 : vector<8x384xf32>
    %62 = vector.extract_strided_slice %58 {offsets = [0, 0], sizes = [8, 128], strides = [1, 1]} : vector<8x384xf32> to vector<8x128xf32>
    %63 = vector.extract_strided_slice %61 {offsets = [0, 0], sizes = [8, 128], strides = [1, 1]} : vector<8x384xf32> to vector<8x128xf32>
    %64 = arith.addf %62, %63 : vector<8x128xf32>
    %65 = arith.negf %64 : vector<8x128xf32>
    %66 = math.exp %65 : vector<8x128xf32>
    %cst_41 = arith.constant 1.000000e+00 : f32
    %67 = vector.broadcast %cst_41 : f32 to vector<8x128xf32>
    %68 = arith.addf %67, %66 : vector<8x128xf32>
    %69 = arith.divf %67, %68 : vector<8x128xf32>
    %70 = vector.extract_strided_slice %58 {offsets = [0, 128], sizes = [8, 128], strides = [1, 1]} : vector<8x384xf32> to vector<8x128xf32>
    %71 = vector.extract_strided_slice %61 {offsets = [0, 128], sizes = [8, 128], strides = [1, 1]} : vector<8x384xf32> to vector<8x128xf32>
    %72 = arith.addf %70, %71 : vector<8x128xf32>
    %73 = arith.negf %72 : vector<8x128xf32>
    %74 = math.exp %73 : vector<8x128xf32>
    %cst_42 = arith.constant 1.000000e+00 : f32
    %75 = vector.broadcast %cst_42 : f32 to vector<8x128xf32>
    %76 = arith.addf %75, %74 : vector<8x128xf32>
    %77 = arith.divf %75, %76 : vector<8x128xf32>
    %78 = vector.extract_strided_slice %58 {offsets = [0, 256], sizes = [8, 128], strides = [1, 1]} : vector<8x384xf32> to vector<8x128xf32>
    %79 = vector.extract_strided_slice %61 {offsets = [0, 256], sizes = [8, 128], strides = [1, 1]} : vector<8x384xf32> to vector<8x128xf32>
    %80 = arith.mulf %69, %79 : vector<8x128xf32>
    %81 = arith.addf %78, %80 : vector<8x128xf32>
    %82 = math.tanh %81 : vector<8x128xf32>
    %cst_43 = arith.constant 1.000000e+00 : f32
    %83 = vector.broadcast %cst_43 : f32 to vector<8x128xf32>
    %84 = arith.subf %83, %77 : vector<8x128xf32>
    %85 = arith.mulf %84, %82 : vector<8x128xf32>
    %86 = arith.mulf %77, %21 : vector<8x128xf32>
    %87 = arith.addf %85, %86 : vector<8x128xf32>
    %cst_44 = arith.constant dense<0.000000e+00> : vector<8x128xf32>
    %88 = tpu.matmul %87, %16, %cst_44 {dimension_numbers = #tpu.dot_dimension_numbers<[1], [0], [0], [1], [0, 0, 1, 1], [], []>} : vector<8x128xf32>, vector<128x128xf32>, vector<8x128xf32> -> vector<8x128xf32>
    %89 = vector.broadcast %17 : vector<1x128xf32> to vector<8x128xf32>
    %90 = arith.addf %88, %89 : vector<8x128xf32>
    %c0_45 = arith.constant 0 : index
    %c0_46 = arith.constant 0 : index
    %c0_47 = arith.constant 0 : index
    %91 = vector.load %arg8[%c0_45, %c0_46, %c0_47] : memref<8x8x128xf32, #tpu.memory_space<vmem>>, vector<1x8x128xf32>
    %92 = vector.shape_cast %91 : vector<1x8x128xf32> to vector<8x128xf32>
    %93 = vector.shape_cast %90 : vector<8x128xf32> to vector<1x8x128xf32>
    tpu.vector_store %arg8[%c0_45, %c0_46, %c0_47], %93 {strides = array<i32>} : memref<8x8x128xf32, #tpu.memory_space<vmem>>, vector<1x8x128xf32>,
    %c1_48 = arith.constant 1 : index
    %c0_49 = arith.constant 0 : index
    %c0_50 = arith.constant 0 : index
    %94 = vector.load %arg0[%c1_48, %c0_49, %c0_50] : memref<8x8x128xf32, #tpu.memory_space<vmem>>, vector<1x8x128xf32>
    %95 = vector.shape_cast %94 : vector<1x8x128xf32> to vector<8x128xf32>
    %cst_51 = arith.constant dense<0.000000e+00> : vector<8x384xf32>
    %96 = tpu.matmul %95, %1, %cst_51 {dimension_numbers = #tpu.dot_dimension_numbers<[1], [0], [0], [1], [0, 0, 1, 1], [], []>} : vector<8x128xf32>, vector<128x384xf32>, vector<8x384xf32> -> vector<8x384xf32>
    %97 = vector.broadcast %9 : vector<1x384xf32> to vector<8x384xf32>
    %98 = arith.addf %96, %97 : vector<8x384xf32>
    %cst_52 = arith.constant dense<0.000000e+00> : vector<8x384xf32>
    %99 = tpu.matmul %55, %5, %cst_52 {dimension_numbers = #tpu.dot_dimension_numbers<[1], [0], [0], [1], [0, 0, 1, 1], [], []>} : vector<8x128xf32>, vector<128x384xf32>, vector<8x384xf32> -> vector<8x384xf32>
    %100 = vector.broadcast %13 : vector<1x384xf32> to vector<8x384xf32>
    %101 = arith.addf %99, %100 : vector<8x384xf32>
    %102 = vector.extract_strided_slice %98 {offsets = [0, 0], sizes = [8, 128], strides = [1, 1]} : vector<8x384xf32> to vector<8x128xf32>
    %103 = vector.extract_strided_slice %101 {offsets = [0, 0], sizes = [8, 128], strides = [1, 1]} : vector<8x384xf32> to vector<8x128xf32>
    %104 = arith.addf %102, %103 : vector<8x128xf32>
    %105 = arith.negf %104 : vector<8x128xf32>
    %106 = math.exp %105 : vector<8x128xf32>
    %cst_53 = arith.constant 1.000000e+00 : f32
    %107 = vector.broadcast %cst_53 : f32 to vector<8x128xf32>
    %108 = arith.addf %107, %106 : vector<8x128xf32>
    %109 = arith.divf %107, %108 : vector<8x128xf32>
    %110 = vector.extract_strided_slice %98 {offsets = [0, 128], sizes = [8, 128], strides = [1, 1]} : vector<8x384xf32> to vector<8x128xf32>
    %111 = vector.extract_strided_slice %101 {offsets = [0, 128], sizes = [8, 128], strides = [1, 1]} : vector<8x384xf32> to vector<8x128xf32>
    %112 = arith.addf %110, %111 : vector<8x128xf32>
    %113 = arith.negf %112 : vector<8x128xf32>
    %114 = math.exp %113 : vector<8x128xf32>
    %cst_54 = arith.constant 1.000000e+00 : f32
    %115 = vector.broadcast %cst_54 : f32 to vector<8x128xf32>
    %116 = arith.addf %115, %114 : vector<8x128xf32>
    %117 = arith.divf %115, %116 : vector<8x128xf32>
    %118 = vector.extract_strided_slice %98 {offsets = [0, 256], sizes = [8, 128], strides = [1, 1]} : vector<8x384xf32> to vector<8x128xf32>
    %119 = vector.extract_strided_slice %101 {offsets = [0, 256], sizes = [8, 128], strides = [1, 1]} : vector<8x384xf32> to vector<8x128xf32>
    %120 = arith.mulf %109, %119 : vector<8x128xf32>
    %121 = arith.addf %118, %120 : vector<8x128xf32>
    %122 = math.tanh %121 : vector<8x128xf32>
    %cst_55 = arith.constant 1.000000e+00 : f32
    %123 = vector.broadcast %cst_55 : f32 to vector<8x128xf32>
    %124 = arith.subf %123, %117 : vector<8x128xf32>
    %125 = arith.mulf %124, %122 : vector<8x128xf32>
    %126 = arith.mulf %117, %55 : vector<8x128xf32>
    %127 = arith.addf %125, %126 : vector<8x128xf32>
    %cst_56 = arith.constant dense<0.000000e+00> : vector<8x384xf32>
    %128 = tpu.matmul %127, %3, %cst_56 {dimension_numbers = #tpu.dot_dimension_numbers<[1], [0], [0], [1], [0, 0, 1, 1], [], []>} : vector<8x128xf32>, vector<128x384xf32>, vector<8x384xf32> -> vector<8x384xf32>
    %129 = vector.broadcast %11 : vector<1x384xf32> to vector<8x384xf32>
    %130 = arith.addf %128, %129 : vector<8x384xf32>
    %cst_57 = arith.constant dense<0.000000e+00> : vector<8x384xf32>
    %131 = tpu.matmul %87, %7, %cst_57 {dimension_numbers = #tpu.dot_dimension_numbers<[1], [0], [0], [1], [0, 0, 1, 1], [], []>} : vector<8x128xf32>, vector<128x384xf32>, vector<8x384xf32> -> vector<8x384xf32>
    %132 = vector.broadcast %15 : vector<1x384xf32> to vector<8x384xf32>
    %133 = arith.addf %131, %132 : vector<8x384xf32>
    %134 = vector.extract_strided_slice %130 {offsets = [0, 0], sizes = [8, 128], strides = [1, 1]} : vector<8x384xf32> to vector<8x128xf32>
    %135 = vector.extract_strided_slice %133 {offsets = [0, 0], sizes = [8, 128], strides = [1, 1]} : vector<8x384xf32> to vector<8x128xf32>
    %136 = arith.addf %134, %135 : vector<8x128xf32>
    %137 = arith.negf %136 : vector<8x128xf32>
    %138 = math.exp %137 : vector<8x128xf32>
    %cst_58 = arith.constant 1.000000e+00 : f32
    %139 = vector.broadcast %cst_58 : f32 to vector<8x128xf32>
    %140 = arith.addf %139, %138 : vector<8x128xf32>
    %141 = arith.divf %139, %140 : vector<8x128xf32>
    %142 = vector.extract_strided_slice %130 {offsets = [0, 128], sizes = [8, 128], strides = [1, 1]} : vector<8x384xf32> to vector<8x128xf32>
    %143 = vector.extract_strided_slice %133 {offsets = [0, 128], sizes = [8, 128], strides = [1, 1]} : vector<8x384xf32> to vector<8x128xf32>
    %144 = arith.addf %142, %143 : vector<8x128xf32>
    %145 = arith.negf %144 : vector<8x128xf32>
    %146 = math.exp %145 : vector<8x128xf32>
    %cst_59 = arith.constant 1.000000e+00 : f32
    %147 = vector.broadcast %cst_59 : f32 to vector<8x128xf32>
    %148 = arith.addf %147, %146 : vector<8x128xf32>
    %149 = arith.divf %147, %148 : vector<8x128xf32>
    %150 = vector.extract_strided_slice %130 {offsets = [0, 256], sizes = [8, 128], strides = [1, 1]} : vector<8x384xf32> to vector<8x128xf32>
    %151 = vector.extract_strided_slice %133 {offsets = [0, 256], sizes = [8, 128], strides = [1, 1]} : vector<8x384xf32> to vector<8x128xf32>
    %152 = arith.mulf %141, %151 : vector<8x128xf32>
    %153 = arith.addf %150, %152 : vector<8x128xf32>
    %154 = math.tanh %153 : vector<8x128xf32>
    %cst_60 = arith.constant 1.000000e+00 : f32
    %155 = vector.broadcast %cst_60 : f32 to vector<8x128xf32>
    %156 = arith.subf %155, %149 : vector<8x128xf32>
    %157 = arith.mulf %156, %154 : vector<8x128xf32>
    %158 = arith.mulf %149, %87 : vector<8x128xf32>
    %159 = arith.addf %157, %158 : vector<8x128xf32>
    %cst_61 = arith.constant dense<0.000000e+00> : vector<8x128xf32>
    %160 = tpu.matmul %159, %16, %cst_61 {dimension_numbers = #tpu.dot_dimension_numbers<[1], [0], [0], [1], [0, 0, 1, 1], [], []>} : vector<8x128xf32>, vector<128x128xf32>, vector<8x128xf32> -> vector<8x128xf32>
    %161 = vector.broadcast %17 : vector<1x128xf32> to vector<8x128xf32>
    %162 = arith.addf %160, %161 : vector<8x128xf32>
    %c1_62 = arith.constant 1 : index
    %c0_63 = arith.constant 0 : index
    %c0_64 = arith.constant 0 : index
    %163 = vector.load %arg8[%c1_62, %c0_63, %c0_64] : memref<8x8x128xf32, #tpu.memory_space<vmem>>, vector<1x8x128xf32>
    %164 = vector.shape_cast %163 : vector<1x8x128xf32> to vector<8x128xf32>
    %165 = vector.shape_cast %162 : vector<8x128xf32> to vector<1x8x128xf32>
    tpu.vector_store %arg8[%c1_62, %c0_63, %c0_64], %165 {strides = array<i32>} : memref<8x8x128xf32, #tpu.memory_space<vmem>>, vector<1x8x128xf32>,
    %c2 = arith.constant 2 : index
    %c0_65 = arith.constant 0 : index
    %c0_66 = arith.constant 0 : index
    %166 = vector.load %arg0[%c2, %c0_65, %c0_66] : memref<8x8x128xf32, #tpu.memory_space<vmem>>, vector<1x8x128xf32>
    %167 = vector.shape_cast %166 : vector<1x8x128xf32> to vector<8x128xf32>
    %cst_67 = arith.constant dense<0.000000e+00> : vector<8x384xf32>
    %168 = tpu.matmul %167, %1, %cst_67 {dimension_numbers = #tpu.dot_dimension_numbers<[1], [0], [0], [1], [0, 0, 1, 1], [], []>} : vector<8x128xf32>, vector<128x384xf32>, vector<8x384xf32> -> vector<8x384xf32>
    %169 = vector.broadcast %9 : vector<1x384xf32> to vector<8x384xf32>
    %170 = arith.addf %168, %169 : vector<8x384xf32>
    %cst_68 = arith.constant dense<0.000000e+00> : vector<8x384xf32>
    %171 = tpu.matmul %127, %5, %cst_68 {dimension_numbers = #tpu.dot_dimension_numbers<[1], [0], [0], [1], [0, 0, 1, 1], [], []>} : vector<8x128xf32>, vector<128x384xf32>, vector<8x384xf32> -> vector<8x384xf32>
    %172 = vector.broadcast %13 : vector<1x384xf32> to vector<8x384xf32>
    %173 = arith.addf %171, %172 : vector<8x384xf32>
    %174 = vector.extract_strided_slice %170 {offsets = [0, 0], sizes = [8, 128], strides = [1, 1]} : vector<8x384xf32> to vector<8x128xf32>
    %175 = vector.extract_strided_slice %173 {offsets = [0, 0], sizes = [8, 128], strides = [1, 1]} : vector<8x384xf32> to vector<8x128xf32>
    %176 = arith.addf %174, %175 : vector<8x128xf32>
    %177 = arith.negf %176 : vector<8x128xf32>
    %178 = math.exp %177 : vector<8x128xf32>
    %cst_69 = arith.constant 1.000000e+00 : f32
    %179 = vector.broadcast %cst_69 : f32 to vector<8x128xf32>
    %180 = arith.addf %179, %178 : vector<8x128xf32>
    %181 = arith.divf %179, %180 : vector<8x128xf32>
    %182 = vector.extract_strided_slice %170 {offsets = [0, 128], sizes = [8, 128], strides = [1, 1]} : vector<8x384xf32> to vector<8x128xf32>
    %183 = vector.extract_strided_slice %173 {offsets = [0, 128], sizes = [8, 128], strides = [1, 1]} : vector<8x384xf32> to vector<8x128xf32>
    %184 = arith.addf %182, %183 : vector<8x128xf32>
    %185 = arith.negf %184 : vector<8x128xf32>
    %186 = math.exp %185 : vector<8x128xf32>
    %cst_70 = arith.constant 1.000000e+00 : f32
    %187 = vector.broadcast %cst_70 : f32 to vector<8x128xf32>
    %188 = arith.addf %187, %186 : vector<8x128xf32>
    %189 = arith.divf %187, %188 : vector<8x128xf32>
    %190 = vector.extract_strided_slice %170 {offsets = [0, 256], sizes = [8, 128], strides = [1, 1]} : vector<8x384xf32> to vector<8x128xf32>
    %191 = vector.extract_strided_slice %173 {offsets = [0, 256], sizes = [8, 128], strides = [1, 1]} : vector<8x384xf32> to vector<8x128xf32>
    %192 = arith.mulf %181, %191 : vector<8x128xf32>
    %193 = arith.addf %190, %192 : vector<8x128xf32>
    %194 = math.tanh %193 : vector<8x128xf32>
    %cst_71 = arith.constant 1.000000e+00 : f32
    %195 = vector.broadcast %cst_71 : f32 to vector<8x128xf32>
    %196 = arith.subf %195, %189 : vector<8x128xf32>
    %197 = arith.mulf %196, %194 : vector<8x128xf32>
    %198 = arith.mulf %189, %127 : vector<8x128xf32>
    %199 = arith.addf %197, %198 : vector<8x128xf32>
    %cst_72 = arith.constant dense<0.000000e+00> : vector<8x384xf32>
    %200 = tpu.matmul %199, %3, %cst_72 {dimension_numbers = #tpu.dot_dimension_numbers<[1], [0], [0], [1], [0, 0, 1, 1], [], []>} : vector<8x128xf32>, vector<128x384xf32>, vector<8x384xf32> -> vector<8x384xf32>
    %201 = vector.broadcast %11 : vector<1x384xf32> to vector<8x384xf32>
    %202 = arith.addf %200, %201 : vector<8x384xf32>
    %cst_73 = arith.constant dense<0.000000e+00> : vector<8x384xf32>
    %203 = tpu.matmul %159, %7, %cst_73 {dimension_numbers = #tpu.dot_dimension_numbers<[1], [0], [0], [1], [0, 0, 1, 1], [], []>} : vector<8x128xf32>, vector<128x384xf32>, vector<8x384xf32> -> vector<8x384xf32>
    %204 = vector.broadcast %15 : vector<1x384xf32> to vector<8x384xf32>
    %205 = arith.addf %203, %204 : vector<8x384xf32>
    %206 = vector.extract_strided_slice %202 {offsets = [0, 0], sizes = [8, 128], strides = [1, 1]} : vector<8x384xf32> to vector<8x128xf32>
    %207 = vector.extract_strided_slice %205 {offsets = [0, 0], sizes = [8, 128], strides = [1, 1]} : vector<8x384xf32> to vector<8x128xf32>
    %208 = arith.addf %206, %207 : vector<8x128xf32>
    %209 = arith.negf %208 : vector<8x128xf32>
    %210 = math.exp %209 : vector<8x128xf32>
    %cst_74 = arith.constant 1.000000e+00 : f32
    %211 = vector.broadcast %cst_74 : f32 to vector<8x128xf32>
    %212 = arith.addf %211, %210 : vector<8x128xf32>
    %213 = arith.divf %211, %212 : vector<8x128xf32>
    %214 = vector.extract_strided_slice %202 {offsets = [0, 128], sizes = [8, 128], strides = [1, 1]} : vector<8x384xf32> to vector<8x128xf32>
    %215 = vector.extract_strided_slice %205 {offsets = [0, 128], sizes = [8, 128], strides = [1, 1]} : vector<8x384xf32> to vector<8x128xf32>
    %216 = arith.addf %214, %215 : vector<8x128xf32>
    %217 = arith.negf %216 : vector<8x128xf32>
    %218 = math.exp %217 : vector<8x128xf32>
    %cst_75 = arith.constant 1.000000e+00 : f32
    %219 = vector.broadcast %cst_75 : f32 to vector<8x128xf32>
    %220 = arith.addf %219, %218 : vector<8x128xf32>
    %221 = arith.divf %219, %220 : vector<8x128xf32>
    %222 = vector.extract_strided_slice %202 {offsets = [0, 256], sizes = [8, 128], strides = [1, 1]} : vector<8x384xf32> to vector<8x128xf32>
    %223 = vector.extract_strided_slice %205 {offsets = [0, 256], sizes = [8, 128], strides = [1, 1]} : vector<8x384xf32> to vector<8x128xf32>
    %224 = arith.mulf %213, %223 : vector<8x128xf32>
    %225 = arith.addf %222, %224 : vector<8x128xf32>
    %226 = math.tanh %225 : vector<8x128xf32>
    %cst_76 = arith.constant 1.000000e+00 : f32
    %227 = vector.broadcast %cst_76 : f32 to vector<8x128xf32>
    %228 = arith.subf %227, %221 : vector<8x128xf32>
    %229 = arith.mulf %228, %226 : vector<8x128xf32>
    %230 = arith.mulf %221, %159 : vector<8x128xf32>
    %231 = arith.addf %229, %230 : vector<8x128xf32>
    %cst_77 = arith.constant dense<0.000000e+00> : vector<8x128xf32>
    %232 = tpu.matmul %231, %16, %cst_77 {dimension_numbers = #tpu.dot_dimension_numbers<[1], [0], [0], [1], [0, 0, 1, 1], [], []>} : vector<8x128xf32>, vector<128x128xf32>, vector<8x128xf32> -> vector<8x128xf32>
    %233 = vector.broadcast %17 : vector<1x128xf32> to vector<8x128xf32>
    %234 = arith.addf %232, %233 : vector<8x128xf32>
    %c2_78 = arith.constant 2 : index
    %c0_79 = arith.constant 0 : index
    %c0_80 = arith.constant 0 : index
    %235 = vector.load %arg8[%c2_78, %c0_79, %c0_80] : memref<8x8x128xf32, #tpu.memory_space<vmem>>, vector<1x8x128xf32>
    %236 = vector.shape_cast %235 : vector<1x8x128xf32> to vector<8x128xf32>
    %237 = vector.shape_cast %234 : vector<8x128xf32> to vector<1x8x128xf32>
    tpu.vector_store %arg8[%c2_78, %c0_79, %c0_80], %237 {strides = array<i32>} : memref<8x8x128xf32, #tpu.memory_space<vmem>>, vector<1x8x128xf32>,
    %c3 = arith.constant 3 : index
    %c0_81 = arith.constant 0 : index
    %c0_82 = arith.constant 0 : index
    %238 = vector.load %arg0[%c3, %c0_81, %c0_82] : memref<8x8x128xf32, #tpu.memory_space<vmem>>, vector<1x8x128xf32>
    %239 = vector.shape_cast %238 : vector<1x8x128xf32> to vector<8x128xf32>
    %cst_83 = arith.constant dense<0.000000e+00> : vector<8x384xf32>
    %240 = tpu.matmul %239, %1, %cst_83 {dimension_numbers = #tpu.dot_dimension_numbers<[1], [0], [0], [1], [0, 0, 1, 1], [], []>} : vector<8x128xf32>, vector<128x384xf32>, vector<8x384xf32> -> vector<8x384xf32>
    %241 = vector.broadcast %9 : vector<1x384xf32> to vector<8x384xf32>
    %242 = arith.addf %240, %241 : vector<8x384xf32>
    %cst_84 = arith.constant dense<0.000000e+00> : vector<8x384xf32>
    %243 = tpu.matmul %199, %5, %cst_84 {dimension_numbers = #tpu.dot_dimension_numbers<[1], [0], [0], [1], [0, 0, 1, 1], [], []>} : vector<8x128xf32>, vector<128x384xf32>, vector<8x384xf32> -> vector<8x384xf32>
    %244 = vector.broadcast %13 : vector<1x384xf32> to vector<8x384xf32>
    %245 = arith.addf %243, %244 : vector<8x384xf32>
    %246 = vector.extract_strided_slice %242 {offsets = [0, 0], sizes = [8, 128], strides = [1, 1]} : vector<8x384xf32> to vector<8x128xf32>
    %247 = vector.extract_strided_slice %245 {offsets = [0, 0], sizes = [8, 128], strides = [1, 1]} : vector<8x384xf32> to vector<8x128xf32>
    %248 = arith.addf %246, %247 : vector<8x128xf32>
    %249 = arith.negf %248 : vector<8x128xf32>
    %250 = math.exp %249 : vector<8x128xf32>
    %cst_85 = arith.constant 1.000000e+00 : f32
    %251 = vector.broadcast %cst_85 : f32 to vector<8x128xf32>
    %252 = arith.addf %251, %250 : vector<8x128xf32>
    %253 = arith.divf %251, %252 : vector<8x128xf32>
    %254 = vector.extract_strided_slice %242 {offsets = [0, 128], sizes = [8, 128], strides = [1, 1]} : vector<8x384xf32> to vector<8x128xf32>
    %255 = vector.extract_strided_slice %245 {offsets = [0, 128], sizes = [8, 128], strides = [1, 1]} : vector<8x384xf32> to vector<8x128xf32>
    %256 = arith.addf %254, %255 : vector<8x128xf32>
    %257 = arith.negf %256 : vector<8x128xf32>
    %258 = math.exp %257 : vector<8x128xf32>
    %cst_86 = arith.constant 1.000000e+00 : f32
    %259 = vector.broadcast %cst_86 : f32 to vector<8x128xf32>
    %260 = arith.addf %259, %258 : vector<8x128xf32>
    %261 = arith.divf %259, %260 : vector<8x128xf32>
    %262 = vector.extract_strided_slice %242 {offsets = [0, 256], sizes = [8, 128], strides = [1, 1]} : vector<8x384xf32> to vector<8x128xf32>
    %263 = vector.extract_strided_slice %245 {offsets = [0, 256], sizes = [8, 128], strides = [1, 1]} : vector<8x384xf32> to vector<8x128xf32>
    %264 = arith.mulf %253, %263 : vector<8x128xf32>
    %265 = arith.addf %262, %264 : vector<8x128xf32>
    %266 = math.tanh %265 : vector<8x128xf32>
    %cst_87 = arith.constant 1.000000e+00 : f32
    %267 = vector.broadcast %cst_87 : f32 to vector<8x128xf32>
    %268 = arith.subf %267, %261 : vector<8x128xf32>
    %269 = arith.mulf %268, %266 : vector<8x128xf32>
    %270 = arith.mulf %261, %199 : vector<8x128xf32>
    %271 = arith.addf %269, %270 : vector<8x128xf32>
    %cst_88 = arith.constant dense<0.000000e+00> : vector<8x384xf32>
    %272 = tpu.matmul %271, %3, %cst_88 {dimension_numbers = #tpu.dot_dimension_numbers<[1], [0], [0], [1], [0, 0, 1, 1], [], []>} : vector<8x128xf32>, vector<128x384xf32>, vector<8x384xf32> -> vector<8x384xf32>
    %273 = vector.broadcast %11 : vector<1x384xf32> to vector<8x384xf32>
    %274 = arith.addf %272, %273 : vector<8x384xf32>
    %cst_89 = arith.constant dense<0.000000e+00> : vector<8x384xf32>
    %275 = tpu.matmul %231, %7, %cst_89 {dimension_numbers = #tpu.dot_dimension_numbers<[1], [0], [0], [1], [0, 0, 1, 1], [], []>} : vector<8x128xf32>, vector<128x384xf32>, vector<8x384xf32> -> vector<8x384xf32>
    %276 = vector.broadcast %15 : vector<1x384xf32> to vector<8x384xf32>
    %277 = arith.addf %275, %276 : vector<8x384xf32>
    %278 = vector.extract_strided_slice %274 {offsets = [0, 0], sizes = [8, 128], strides = [1, 1]} : vector<8x384xf32> to vector<8x128xf32>
    %279 = vector.extract_strided_slice %277 {offsets = [0, 0], sizes = [8, 128], strides = [1, 1]} : vector<8x384xf32> to vector<8x128xf32>
    %280 = arith.addf %278, %279 : vector<8x128xf32>
    %281 = arith.negf %280 : vector<8x128xf32>
    %282 = math.exp %281 : vector<8x128xf32>
    %cst_90 = arith.constant 1.000000e+00 : f32
    %283 = vector.broadcast %cst_90 : f32 to vector<8x128xf32>
    %284 = arith.addf %283, %282 : vector<8x128xf32>
    %285 = arith.divf %283, %284 : vector<8x128xf32>
    %286 = vector.extract_strided_slice %274 {offsets = [0, 128], sizes = [8, 128], strides = [1, 1]} : vector<8x384xf32> to vector<8x128xf32>
    %287 = vector.extract_strided_slice %277 {offsets = [0, 128], sizes = [8, 128], strides = [1, 1]} : vector<8x384xf32> to vector<8x128xf32>
    %288 = arith.addf %286, %287 : vector<8x128xf32>
    %289 = arith.negf %288 : vector<8x128xf32>
    %290 = math.exp %289 : vector<8x128xf32>
    %cst_91 = arith.constant 1.000000e+00 : f32
    %291 = vector.broadcast %cst_91 : f32 to vector<8x128xf32>
    %292 = arith.addf %291, %290 : vector<8x128xf32>
    %293 = arith.divf %291, %292 : vector<8x128xf32>
    %294 = vector.extract_strided_slice %274 {offsets = [0, 256], sizes = [8, 128], strides = [1, 1]} : vector<8x384xf32> to vector<8x128xf32>
    %295 = vector.extract_strided_slice %277 {offsets = [0, 256], sizes = [8, 128], strides = [1, 1]} : vector<8x384xf32> to vector<8x128xf32>
    %296 = arith.mulf %285, %295 : vector<8x128xf32>
    %297 = arith.addf %294, %296 : vector<8x128xf32>
    %298 = math.tanh %297 : vector<8x128xf32>
    %cst_92 = arith.constant 1.000000e+00 : f32
    %299 = vector.broadcast %cst_92 : f32 to vector<8x128xf32>
    %300 = arith.subf %299, %293 : vector<8x128xf32>
    %301 = arith.mulf %300, %298 : vector<8x128xf32>
    %302 = arith.mulf %293, %231 : vector<8x128xf32>
    %303 = arith.addf %301, %302 : vector<8x128xf32>
    %cst_93 = arith.constant dense<0.000000e+00> : vector<8x128xf32>
    %304 = tpu.matmul %303, %16, %cst_93 {dimension_numbers = #tpu.dot_dimension_numbers<[1], [0], [0], [1], [0, 0, 1, 1], [], []>} : vector<8x128xf32>, vector<128x128xf32>, vector<8x128xf32> -> vector<8x128xf32>
    %305 = vector.broadcast %17 : vector<1x128xf32> to vector<8x128xf32>
    %306 = arith.addf %304, %305 : vector<8x128xf32>
    %c3_94 = arith.constant 3 : index
    %c0_95 = arith.constant 0 : index
    %c0_96 = arith.constant 0 : index
    %307 = vector.load %arg8[%c3_94, %c0_95, %c0_96] : memref<8x8x128xf32, #tpu.memory_space<vmem>>, vector<1x8x128xf32>
    %308 = vector.shape_cast %307 : vector<1x8x128xf32> to vector<8x128xf32>
    %309 = vector.shape_cast %306 : vector<8x128xf32> to vector<1x8x128xf32>
    tpu.vector_store %arg8[%c3_94, %c0_95, %c0_96], %309 {strides = array<i32>} : memref<8x8x128xf32, #tpu.memory_space<vmem>>, vector<1x8x128xf32>,
    %c4 = arith.constant 4 : index
    %c0_97 = arith.constant 0 : index
    %c0_98 = arith.constant 0 : index
    %310 = vector.load %arg0[%c4, %c0_97, %c0_98] : memref<8x8x128xf32, #tpu.memory_space<vmem>>, vector<1x8x128xf32>
    %311 = vector.shape_cast %310 : vector<1x8x128xf32> to vector<8x128xf32>
    %cst_99 = arith.constant dense<0.000000e+00> : vector<8x384xf32>
    %312 = tpu.matmul %311, %1, %cst_99 {dimension_numbers = #tpu.dot_dimension_numbers<[1], [0], [0], [1], [0, 0, 1, 1], [], []>} : vector<8x128xf32>, vector<128x384xf32>, vector<8x384xf32> -> vector<8x384xf32>
    %313 = vector.broadcast %9 : vector<1x384xf32> to vector<8x384xf32>
    %314 = arith.addf %312, %313 : vector<8x384xf32>
    %cst_100 = arith.constant dense<0.000000e+00> : vector<8x384xf32>
    %315 = tpu.matmul %271, %5, %cst_100 {dimension_numbers = #tpu.dot_dimension_numbers<[1], [0], [0], [1], [0, 0, 1, 1], [], []>} : vector<8x128xf32>, vector<128x384xf32>, vector<8x384xf32> -> vector<8x384xf32>
    %316 = vector.broadcast %13 : vector<1x384xf32> to vector<8x384xf32>
    %317 = arith.addf %315, %316 : vector<8x384xf32>
    %318 = vector.extract_strided_slice %314 {offsets = [0, 0], sizes = [8, 128], strides = [1, 1]} : vector<8x384xf32> to vector<8x128xf32>
    %319 = vector.extract_strided_slice %317 {offsets = [0, 0], sizes = [8, 128], strides = [1, 1]} : vector<8x384xf32> to vector<8x128xf32>
    %320 = arith.addf %318, %319 : vector<8x128xf32>
    %321 = arith.negf %320 : vector<8x128xf32>
    %322 = math.exp %321 : vector<8x128xf32>
    %cst_101 = arith.constant 1.000000e+00 : f32
    %323 = vector.broadcast %cst_101 : f32 to vector<8x128xf32>
    %324 = arith.addf %323, %322 : vector<8x128xf32>
    %325 = arith.divf %323, %324 : vector<8x128xf32>
    %326 = vector.extract_strided_slice %314 {offsets = [0, 128], sizes = [8, 128], strides = [1, 1]} : vector<8x384xf32> to vector<8x128xf32>
    %327 = vector.extract_strided_slice %317 {offsets = [0, 128], sizes = [8, 128], strides = [1, 1]} : vector<8x384xf32> to vector<8x128xf32>
    %328 = arith.addf %326, %327 : vector<8x128xf32>
    %329 = arith.negf %328 : vector<8x128xf32>
    %330 = math.exp %329 : vector<8x128xf32>
    %cst_102 = arith.constant 1.000000e+00 : f32
    %331 = vector.broadcast %cst_102 : f32 to vector<8x128xf32>
    %332 = arith.addf %331, %330 : vector<8x128xf32>
    %333 = arith.divf %331, %332 : vector<8x128xf32>
    %334 = vector.extract_strided_slice %314 {offsets = [0, 256], sizes = [8, 128], strides = [1, 1]} : vector<8x384xf32> to vector<8x128xf32>
    %335 = vector.extract_strided_slice %317 {offsets = [0, 256], sizes = [8, 128], strides = [1, 1]} : vector<8x384xf32> to vector<8x128xf32>
    %336 = arith.mulf %325, %335 : vector<8x128xf32>
    %337 = arith.addf %334, %336 : vector<8x128xf32>
    %338 = math.tanh %337 : vector<8x128xf32>
    %cst_103 = arith.constant 1.000000e+00 : f32
    %339 = vector.broadcast %cst_103 : f32 to vector<8x128xf32>
    %340 = arith.subf %339, %333 : vector<8x128xf32>
    %341 = arith.mulf %340, %338 : vector<8x128xf32>
    %342 = arith.mulf %333, %271 : vector<8x128xf32>
    %343 = arith.addf %341, %342 : vector<8x128xf32>
    %cst_104 = arith.constant dense<0.000000e+00> : vector<8x384xf32>
    %344 = tpu.matmul %343, %3, %cst_104 {dimension_numbers = #tpu.dot_dimension_numbers<[1], [0], [0], [1], [0, 0, 1, 1], [], []>} : vector<8x128xf32>, vector<128x384xf32>, vector<8x384xf32> -> vector<8x384xf32>
    %345 = vector.broadcast %11 : vector<1x384xf32> to vector<8x384xf32>
    %346 = arith.addf %344, %345 : vector<8x384xf32>
    %cst_105 = arith.constant dense<0.000000e+00> : vector<8x384xf32>
    %347 = tpu.matmul %303, %7, %cst_105 {dimension_numbers = #tpu.dot_dimension_numbers<[1], [0], [0], [1], [0, 0, 1, 1], [], []>} : vector<8x128xf32>, vector<128x384xf32>, vector<8x384xf32> -> vector<8x384xf32>
    %348 = vector.broadcast %15 : vector<1x384xf32> to vector<8x384xf32>
    %349 = arith.addf %347, %348 : vector<8x384xf32>
    %350 = vector.extract_strided_slice %346 {offsets = [0, 0], sizes = [8, 128], strides = [1, 1]} : vector<8x384xf32> to vector<8x128xf32>
    %351 = vector.extract_strided_slice %349 {offsets = [0, 0], sizes = [8, 128], strides = [1, 1]} : vector<8x384xf32> to vector<8x128xf32>
    %352 = arith.addf %350, %351 : vector<8x128xf32>
    %353 = arith.negf %352 : vector<8x128xf32>
    %354 = math.exp %353 : vector<8x128xf32>
    %cst_106 = arith.constant 1.000000e+00 : f32
    %355 = vector.broadcast %cst_106 : f32 to vector<8x128xf32>
    %356 = arith.addf %355, %354 : vector<8x128xf32>
    %357 = arith.divf %355, %356 : vector<8x128xf32>
    %358 = vector.extract_strided_slice %346 {offsets = [0, 128], sizes = [8, 128], strides = [1, 1]} : vector<8x384xf32> to vector<8x128xf32>
    %359 = vector.extract_strided_slice %349 {offsets = [0, 128], sizes = [8, 128], strides = [1, 1]} : vector<8x384xf32> to vector<8x128xf32>
    %360 = arith.addf %358, %359 : vector<8x128xf32>
    %361 = arith.negf %360 : vector<8x128xf32>
    %362 = math.exp %361 : vector<8x128xf32>
    %cst_107 = arith.constant 1.000000e+00 : f32
    %363 = vector.broadcast %cst_107 : f32 to vector<8x128xf32>
    %364 = arith.addf %363, %362 : vector<8x128xf32>
    %365 = arith.divf %363, %364 : vector<8x128xf32>
    %366 = vector.extract_strided_slice %346 {offsets = [0, 256], sizes = [8, 128], strides = [1, 1]} : vector<8x384xf32> to vector<8x128xf32>
    %367 = vector.extract_strided_slice %349 {offsets = [0, 256], sizes = [8, 128], strides = [1, 1]} : vector<8x384xf32> to vector<8x128xf32>
    %368 = arith.mulf %357, %367 : vector<8x128xf32>
    %369 = arith.addf %366, %368 : vector<8x128xf32>
    %370 = math.tanh %369 : vector<8x128xf32>
    %cst_108 = arith.constant 1.000000e+00 : f32
    %371 = vector.broadcast %cst_108 : f32 to vector<8x128xf32>
    %372 = arith.subf %371, %365 : vector<8x128xf32>
    %373 = arith.mulf %372, %370 : vector<8x128xf32>
    %374 = arith.mulf %365, %303 : vector<8x128xf32>
    %375 = arith.addf %373, %374 : vector<8x128xf32>
    %cst_109 = arith.constant dense<0.000000e+00> : vector<8x128xf32>
    %376 = tpu.matmul %375, %16, %cst_109 {dimension_numbers = #tpu.dot_dimension_numbers<[1], [0], [0], [1], [0, 0, 1, 1], [], []>} : vector<8x128xf32>, vector<128x128xf32>, vector<8x128xf32> -> vector<8x128xf32>
    %377 = vector.broadcast %17 : vector<1x128xf32> to vector<8x128xf32>
    %378 = arith.addf %376, %377 : vector<8x128xf32>
    %c4_110 = arith.constant 4 : index
    %c0_111 = arith.constant 0 : index
    %c0_112 = arith.constant 0 : index
    %379 = vector.load %arg8[%c4_110, %c0_111, %c0_112] : memref<8x8x128xf32, #tpu.memory_space<vmem>>, vector<1x8x128xf32>
    %380 = vector.shape_cast %379 : vector<1x8x128xf32> to vector<8x128xf32>
    %381 = vector.shape_cast %378 : vector<8x128xf32> to vector<1x8x128xf32>
    tpu.vector_store %arg8[%c4_110, %c0_111, %c0_112], %381 {strides = array<i32>} : memref<8x8x128xf32, #tpu.memory_space<vmem>>, vector<1x8x128xf32>,
    %c5 = arith.constant 5 : index
    %c0_113 = arith.constant 0 : index
    %c0_114 = arith.constant 0 : index
    %382 = vector.load %arg0[%c5, %c0_113, %c0_114] : memref<8x8x128xf32, #tpu.memory_space<vmem>>, vector<1x8x128xf32>
    %383 = vector.shape_cast %382 : vector<1x8x128xf32> to vector<8x128xf32>
    %cst_115 = arith.constant dense<0.000000e+00> : vector<8x384xf32>
    %384 = tpu.matmul %383, %1, %cst_115 {dimension_numbers = #tpu.dot_dimension_numbers<[1], [0], [0], [1], [0, 0, 1, 1], [], []>} : vector<8x128xf32>, vector<128x384xf32>, vector<8x384xf32> -> vector<8x384xf32>
    %385 = vector.broadcast %9 : vector<1x384xf32> to vector<8x384xf32>
    %386 = arith.addf %384, %385 : vector<8x384xf32>
    %cst_116 = arith.constant dense<0.000000e+00> : vector<8x384xf32>
    %387 = tpu.matmul %343, %5, %cst_116 {dimension_numbers = #tpu.dot_dimension_numbers<[1], [0], [0], [1], [0, 0, 1, 1], [], []>} : vector<8x128xf32>, vector<128x384xf32>, vector<8x384xf32> -> vector<8x384xf32>
    %388 = vector.broadcast %13 : vector<1x384xf32> to vector<8x384xf32>
    %389 = arith.addf %387, %388 : vector<8x384xf32>
    %390 = vector.extract_strided_slice %386 {offsets = [0, 0], sizes = [8, 128], strides = [1, 1]} : vector<8x384xf32> to vector<8x128xf32>
    %391 = vector.extract_strided_slice %389 {offsets = [0, 0], sizes = [8, 128], strides = [1, 1]} : vector<8x384xf32> to vector<8x128xf32>
    %392 = arith.addf %390, %391 : vector<8x128xf32>
    %393 = arith.negf %392 : vector<8x128xf32>
    %394 = math.exp %393 : vector<8x128xf32>
    %cst_117 = arith.constant 1.000000e+00 : f32
    %395 = vector.broadcast %cst_117 : f32 to vector<8x128xf32>
    %396 = arith.addf %395, %394 : vector<8x128xf32>
    %397 = arith.divf %395, %396 : vector<8x128xf32>
    %398 = vector.extract_strided_slice %386 {offsets = [0, 128], sizes = [8, 128], strides = [1, 1]} : vector<8x384xf32> to vector<8x128xf32>
    %399 = vector.extract_strided_slice %389 {offsets = [0, 128], sizes = [8, 128], strides = [1, 1]} : vector<8x384xf32> to vector<8x128xf32>
    %400 = arith.addf %398, %399 : vector<8x128xf32>
    %401 = arith.negf %400 : vector<8x128xf32>
    %402 = math.exp %401 : vector<8x128xf32>
    %cst_118 = arith.constant 1.000000e+00 : f32
    %403 = vector.broadcast %cst_118 : f32 to vector<8x128xf32>
    %404 = arith.addf %403, %402 : vector<8x128xf32>
    %405 = arith.divf %403, %404 : vector<8x128xf32>
    %406 = vector.extract_strided_slice %386 {offsets = [0, 256], sizes = [8, 128], strides = [1, 1]} : vector<8x384xf32> to vector<8x128xf32>
    %407 = vector.extract_strided_slice %389 {offsets = [0, 256], sizes = [8, 128], strides = [1, 1]} : vector<8x384xf32> to vector<8x128xf32>
    %408 = arith.mulf %397, %407 : vector<8x128xf32>
    %409 = arith.addf %406, %408 : vector<8x128xf32>
    %410 = math.tanh %409 : vector<8x128xf32>
    %cst_119 = arith.constant 1.000000e+00 : f32
    %411 = vector.broadcast %cst_119 : f32 to vector<8x128xf32>
    %412 = arith.subf %411, %405 : vector<8x128xf32>
    %413 = arith.mulf %412, %410 : vector<8x128xf32>
    %414 = arith.mulf %405, %343 : vector<8x128xf32>
    %415 = arith.addf %413, %414 : vector<8x128xf32>
    %cst_120 = arith.constant dense<0.000000e+00> : vector<8x384xf32>
    %416 = tpu.matmul %415, %3, %cst_120 {dimension_numbers = #tpu.dot_dimension_numbers<[1], [0], [0], [1], [0, 0, 1, 1], [], []>} : vector<8x128xf32>, vector<128x384xf32>, vector<8x384xf32> -> vector<8x384xf32>
    %417 = vector.broadcast %11 : vector<1x384xf32> to vector<8x384xf32>
    %418 = arith.addf %416, %417 : vector<8x384xf32>
    %cst_121 = arith.constant dense<0.000000e+00> : vector<8x384xf32>
    %419 = tpu.matmul %375, %7, %cst_121 {dimension_numbers = #tpu.dot_dimension_numbers<[1], [0], [0], [1], [0, 0, 1, 1], [], []>} : vector<8x128xf32>, vector<128x384xf32>, vector<8x384xf32> -> vector<8x384xf32>
    %420 = vector.broadcast %15 : vector<1x384xf32> to vector<8x384xf32>
    %421 = arith.addf %419, %420 : vector<8x384xf32>
    %422 = vector.extract_strided_slice %418 {offsets = [0, 0], sizes = [8, 128], strides = [1, 1]} : vector<8x384xf32> to vector<8x128xf32>
    %423 = vector.extract_strided_slice %421 {offsets = [0, 0], sizes = [8, 128], strides = [1, 1]} : vector<8x384xf32> to vector<8x128xf32>
    %424 = arith.addf %422, %423 : vector<8x128xf32>
    %425 = arith.negf %424 : vector<8x128xf32>
    %426 = math.exp %425 : vector<8x128xf32>
    %cst_122 = arith.constant 1.000000e+00 : f32
    %427 = vector.broadcast %cst_122 : f32 to vector<8x128xf32>
    %428 = arith.addf %427, %426 : vector<8x128xf32>
    %429 = arith.divf %427, %428 : vector<8x128xf32>
    %430 = vector.extract_strided_slice %418 {offsets = [0, 128], sizes = [8, 128], strides = [1, 1]} : vector<8x384xf32> to vector<8x128xf32>
    %431 = vector.extract_strided_slice %421 {offsets = [0, 128], sizes = [8, 128], strides = [1, 1]} : vector<8x384xf32> to vector<8x128xf32>
    %432 = arith.addf %430, %431 : vector<8x128xf32>
    %433 = arith.negf %432 : vector<8x128xf32>
    %434 = math.exp %433 : vector<8x128xf32>
    %cst_123 = arith.constant 1.000000e+00 : f32
    %435 = vector.broadcast %cst_123 : f32 to vector<8x128xf32>
    %436 = arith.addf %435, %434 : vector<8x128xf32>
    %437 = arith.divf %435, %436 : vector<8x128xf32>
    %438 = vector.extract_strided_slice %418 {offsets = [0, 256], sizes = [8, 128], strides = [1, 1]} : vector<8x384xf32> to vector<8x128xf32>
    %439 = vector.extract_strided_slice %421 {offsets = [0, 256], sizes = [8, 128], strides = [1, 1]} : vector<8x384xf32> to vector<8x128xf32>
    %440 = arith.mulf %429, %439 : vector<8x128xf32>
    %441 = arith.addf %438, %440 : vector<8x128xf32>
    %442 = math.tanh %441 : vector<8x128xf32>
    %cst_124 = arith.constant 1.000000e+00 : f32
    %443 = vector.broadcast %cst_124 : f32 to vector<8x128xf32>
    %444 = arith.subf %443, %437 : vector<8x128xf32>
    %445 = arith.mulf %444, %442 : vector<8x128xf32>
    %446 = arith.mulf %437, %375 : vector<8x128xf32>
    %447 = arith.addf %445, %446 : vector<8x128xf32>
    %cst_125 = arith.constant dense<0.000000e+00> : vector<8x128xf32>
    %448 = tpu.matmul %447, %16, %cst_125 {dimension_numbers = #tpu.dot_dimension_numbers<[1], [0], [0], [1], [0, 0, 1, 1], [], []>} : vector<8x128xf32>, vector<128x128xf32>, vector<8x128xf32> -> vector<8x128xf32>
    %449 = vector.broadcast %17 : vector<1x128xf32> to vector<8x128xf32>
    %450 = arith.addf %448, %449 : vector<8x128xf32>
    %c5_126 = arith.constant 5 : index
    %c0_127 = arith.constant 0 : index
    %c0_128 = arith.constant 0 : index
    %451 = vector.load %arg8[%c5_126, %c0_127, %c0_128] : memref<8x8x128xf32, #tpu.memory_space<vmem>>, vector<1x8x128xf32>
    %452 = vector.shape_cast %451 : vector<1x8x128xf32> to vector<8x128xf32>
    %453 = vector.shape_cast %450 : vector<8x128xf32> to vector<1x8x128xf32>
    tpu.vector_store %arg8[%c5_126, %c0_127, %c0_128], %453 {strides = array<i32>} : memref<8x8x128xf32, #tpu.memory_space<vmem>>, vector<1x8x128xf32>,
    %c6 = arith.constant 6 : index
    %c0_129 = arith.constant 0 : index
    %c0_130 = arith.constant 0 : index
    %454 = vector.load %arg0[%c6, %c0_129, %c0_130] : memref<8x8x128xf32, #tpu.memory_space<vmem>>, vector<1x8x128xf32>
    %455 = vector.shape_cast %454 : vector<1x8x128xf32> to vector<8x128xf32>
    %cst_131 = arith.constant dense<0.000000e+00> : vector<8x384xf32>
    %456 = tpu.matmul %455, %1, %cst_131 {dimension_numbers = #tpu.dot_dimension_numbers<[1], [0], [0], [1], [0, 0, 1, 1], [], []>} : vector<8x128xf32>, vector<128x384xf32>, vector<8x384xf32> -> vector<8x384xf32>
    %457 = vector.broadcast %9 : vector<1x384xf32> to vector<8x384xf32>
    %458 = arith.addf %456, %457 : vector<8x384xf32>
    %cst_132 = arith.constant dense<0.000000e+00> : vector<8x384xf32>
    %459 = tpu.matmul %415, %5, %cst_132 {dimension_numbers = #tpu.dot_dimension_numbers<[1], [0], [0], [1], [0, 0, 1, 1], [], []>} : vector<8x128xf32>, vector<128x384xf32>, vector<8x384xf32> -> vector<8x384xf32>
    %460 = vector.broadcast %13 : vector<1x384xf32> to vector<8x384xf32>
    %461 = arith.addf %459, %460 : vector<8x384xf32>
    %462 = vector.extract_strided_slice %458 {offsets = [0, 0], sizes = [8, 128], strides = [1, 1]} : vector<8x384xf32> to vector<8x128xf32>
    %463 = vector.extract_strided_slice %461 {offsets = [0, 0], sizes = [8, 128], strides = [1, 1]} : vector<8x384xf32> to vector<8x128xf32>
    %464 = arith.addf %462, %463 : vector<8x128xf32>
    %465 = arith.negf %464 : vector<8x128xf32>
    %466 = math.exp %465 : vector<8x128xf32>
    %cst_133 = arith.constant 1.000000e+00 : f32
    %467 = vector.broadcast %cst_133 : f32 to vector<8x128xf32>
    %468 = arith.addf %467, %466 : vector<8x128xf32>
    %469 = arith.divf %467, %468 : vector<8x128xf32>
    %470 = vector.extract_strided_slice %458 {offsets = [0, 128], sizes = [8, 128], strides = [1, 1]} : vector<8x384xf32> to vector<8x128xf32>
    %471 = vector.extract_strided_slice %461 {offsets = [0, 128], sizes = [8, 128], strides = [1, 1]} : vector<8x384xf32> to vector<8x128xf32>
    %472 = arith.addf %470, %471 : vector<8x128xf32>
    %473 = arith.negf %472 : vector<8x128xf32>
    %474 = math.exp %473 : vector<8x128xf32>
    %cst_134 = arith.constant 1.000000e+00 : f32
    %475 = vector.broadcast %cst_134 : f32 to vector<8x128xf32>
    %476 = arith.addf %475, %474 : vector<8x128xf32>
    %477 = arith.divf %475, %476 : vector<8x128xf32>
    %478 = vector.extract_strided_slice %458 {offsets = [0, 256], sizes = [8, 128], strides = [1, 1]} : vector<8x384xf32> to vector<8x128xf32>
    %479 = vector.extract_strided_slice %461 {offsets = [0, 256], sizes = [8, 128], strides = [1, 1]} : vector<8x384xf32> to vector<8x128xf32>
    %480 = arith.mulf %469, %479 : vector<8x128xf32>
    %481 = arith.addf %478, %480 : vector<8x128xf32>
    %482 = math.tanh %481 : vector<8x128xf32>
    %cst_135 = arith.constant 1.000000e+00 : f32
    %483 = vector.broadcast %cst_135 : f32 to vector<8x128xf32>
    %484 = arith.subf %483, %477 : vector<8x128xf32>
    %485 = arith.mulf %484, %482 : vector<8x128xf32>
    %486 = arith.mulf %477, %415 : vector<8x128xf32>
    %487 = arith.addf %485, %486 : vector<8x128xf32>
    %cst_136 = arith.constant dense<0.000000e+00> : vector<8x384xf32>
    %488 = tpu.matmul %487, %3, %cst_136 {dimension_numbers = #tpu.dot_dimension_numbers<[1], [0], [0], [1], [0, 0, 1, 1], [], []>} : vector<8x128xf32>, vector<128x384xf32>, vector<8x384xf32> -> vector<8x384xf32>
    %489 = vector.broadcast %11 : vector<1x384xf32> to vector<8x384xf32>
    %490 = arith.addf %488, %489 : vector<8x384xf32>
    %cst_137 = arith.constant dense<0.000000e+00> : vector<8x384xf32>
    %491 = tpu.matmul %447, %7, %cst_137 {dimension_numbers = #tpu.dot_dimension_numbers<[1], [0], [0], [1], [0, 0, 1, 1], [], []>} : vector<8x128xf32>, vector<128x384xf32>, vector<8x384xf32> -> vector<8x384xf32>
    %492 = vector.broadcast %15 : vector<1x384xf32> to vector<8x384xf32>
    %493 = arith.addf %491, %492 : vector<8x384xf32>
    %494 = vector.extract_strided_slice %490 {offsets = [0, 0], sizes = [8, 128], strides = [1, 1]} : vector<8x384xf32> to vector<8x128xf32>
    %495 = vector.extract_strided_slice %493 {offsets = [0, 0], sizes = [8, 128], strides = [1, 1]} : vector<8x384xf32> to vector<8x128xf32>
    %496 = arith.addf %494, %495 : vector<8x128xf32>
    %497 = arith.negf %496 : vector<8x128xf32>
    %498 = math.exp %497 : vector<8x128xf32>
    %cst_138 = arith.constant 1.000000e+00 : f32
    %499 = vector.broadcast %cst_138 : f32 to vector<8x128xf32>
    %500 = arith.addf %499, %498 : vector<8x128xf32>
    %501 = arith.divf %499, %500 : vector<8x128xf32>
    %502 = vector.extract_strided_slice %490 {offsets = [0, 128], sizes = [8, 128], strides = [1, 1]} : vector<8x384xf32> to vector<8x128xf32>
    %503 = vector.extract_strided_slice %493 {offsets = [0, 128], sizes = [8, 128], strides = [1, 1]} : vector<8x384xf32> to vector<8x128xf32>
    %504 = arith.addf %502, %503 : vector<8x128xf32>
    %505 = arith.negf %504 : vector<8x128xf32>
    %506 = math.exp %505 : vector<8x128xf32>
    %cst_139 = arith.constant 1.000000e+00 : f32
    %507 = vector.broadcast %cst_139 : f32 to vector<8x128xf32>
    %508 = arith.addf %507, %506 : vector<8x128xf32>
    %509 = arith.divf %507, %508 : vector<8x128xf32>
    %510 = vector.extract_strided_slice %490 {offsets = [0, 256], sizes = [8, 128], strides = [1, 1]} : vector<8x384xf32> to vector<8x128xf32>
    %511 = vector.extract_strided_slice %493 {offsets = [0, 256], sizes = [8, 128], strides = [1, 1]} : vector<8x384xf32> to vector<8x128xf32>
    %512 = arith.mulf %501, %511 : vector<8x128xf32>
    %513 = arith.addf %510, %512 : vector<8x128xf32>
    %514 = math.tanh %513 : vector<8x128xf32>
    %cst_140 = arith.constant 1.000000e+00 : f32
    %515 = vector.broadcast %cst_140 : f32 to vector<8x128xf32>
    %516 = arith.subf %515, %509 : vector<8x128xf32>
    %517 = arith.mulf %516, %514 : vector<8x128xf32>
    %518 = arith.mulf %509, %447 : vector<8x128xf32>
    %519 = arith.addf %517, %518 : vector<8x128xf32>
    %cst_141 = arith.constant dense<0.000000e+00> : vector<8x128xf32>
    %520 = tpu.matmul %519, %16, %cst_141 {dimension_numbers = #tpu.dot_dimension_numbers<[1], [0], [0], [1], [0, 0, 1, 1], [], []>} : vector<8x128xf32>, vector<128x128xf32>, vector<8x128xf32> -> vector<8x128xf32>
    %521 = vector.broadcast %17 : vector<1x128xf32> to vector<8x128xf32>
    %522 = arith.addf %520, %521 : vector<8x128xf32>
    %c6_142 = arith.constant 6 : index
    %c0_143 = arith.constant 0 : index
    %c0_144 = arith.constant 0 : index
    %523 = vector.load %arg8[%c6_142, %c0_143, %c0_144] : memref<8x8x128xf32, #tpu.memory_space<vmem>>, vector<1x8x128xf32>
    %524 = vector.shape_cast %523 : vector<1x8x128xf32> to vector<8x128xf32>
    %525 = vector.shape_cast %522 : vector<8x128xf32> to vector<1x8x128xf32>
    tpu.vector_store %arg8[%c6_142, %c0_143, %c0_144], %525 {strides = array<i32>} : memref<8x8x128xf32, #tpu.memory_space<vmem>>, vector<1x8x128xf32>,
    %c7 = arith.constant 7 : index
    %c0_145 = arith.constant 0 : index
    %c0_146 = arith.constant 0 : index
    %526 = vector.load %arg0[%c7, %c0_145, %c0_146] : memref<8x8x128xf32, #tpu.memory_space<vmem>>, vector<1x8x128xf32>
    %527 = vector.shape_cast %526 : vector<1x8x128xf32> to vector<8x128xf32>
    %cst_147 = arith.constant dense<0.000000e+00> : vector<8x384xf32>
    %528 = tpu.matmul %527, %1, %cst_147 {dimension_numbers = #tpu.dot_dimension_numbers<[1], [0], [0], [1], [0, 0, 1, 1], [], []>} : vector<8x128xf32>, vector<128x384xf32>, vector<8x384xf32> -> vector<8x384xf32>
    %529 = vector.broadcast %9 : vector<1x384xf32> to vector<8x384xf32>
    %530 = arith.addf %528, %529 : vector<8x384xf32>
    %cst_148 = arith.constant dense<0.000000e+00> : vector<8x384xf32>
    %531 = tpu.matmul %487, %5, %cst_148 {dimension_numbers = #tpu.dot_dimension_numbers<[1], [0], [0], [1], [0, 0, 1, 1], [], []>} : vector<8x128xf32>, vector<128x384xf32>, vector<8x384xf32> -> vector<8x384xf32>
    %532 = vector.broadcast %13 : vector<1x384xf32> to vector<8x384xf32>
    %533 = arith.addf %531, %532 : vector<8x384xf32>
    %534 = vector.extract_strided_slice %530 {offsets = [0, 0], sizes = [8, 128], strides = [1, 1]} : vector<8x384xf32> to vector<8x128xf32>
    %535 = vector.extract_strided_slice %533 {offsets = [0, 0], sizes = [8, 128], strides = [1, 1]} : vector<8x384xf32> to vector<8x128xf32>
    %536 = arith.addf %534, %535 : vector<8x128xf32>
    %537 = arith.negf %536 : vector<8x128xf32>
    %538 = math.exp %537 : vector<8x128xf32>
    %cst_149 = arith.constant 1.000000e+00 : f32
    %539 = vector.broadcast %cst_149 : f32 to vector<8x128xf32>
    %540 = arith.addf %539, %538 : vector<8x128xf32>
    %541 = arith.divf %539, %540 : vector<8x128xf32>
    %542 = vector.extract_strided_slice %530 {offsets = [0, 128], sizes = [8, 128], strides = [1, 1]} : vector<8x384xf32> to vector<8x128xf32>
    %543 = vector.extract_strided_slice %533 {offsets = [0, 128], sizes = [8, 128], strides = [1, 1]} : vector<8x384xf32> to vector<8x128xf32>
    %544 = arith.addf %542, %543 : vector<8x128xf32>
    %545 = arith.negf %544 : vector<8x128xf32>
    %546 = math.exp %545 : vector<8x128xf32>
    %cst_150 = arith.constant 1.000000e+00 : f32
    %547 = vector.broadcast %cst_150 : f32 to vector<8x128xf32>
    %548 = arith.addf %547, %546 : vector<8x128xf32>
    %549 = arith.divf %547, %548 : vector<8x128xf32>
    %550 = vector.extract_strided_slice %530 {offsets = [0, 256], sizes = [8, 128], strides = [1, 1]} : vector<8x384xf32> to vector<8x128xf32>
    %551 = vector.extract_strided_slice %533 {offsets = [0, 256], sizes = [8, 128], strides = [1, 1]} : vector<8x384xf32> to vector<8x128xf32>
    %552 = arith.mulf %541, %551 : vector<8x128xf32>
    %553 = arith.addf %550, %552 : vector<8x128xf32>
    %554 = math.tanh %553 : vector<8x128xf32>
    %cst_151 = arith.constant 1.000000e+00 : f32
    %555 = vector.broadcast %cst_151 : f32 to vector<8x128xf32>
    %556 = arith.subf %555, %549 : vector<8x128xf32>
    %557 = arith.mulf %556, %554 : vector<8x128xf32>
    %558 = arith.mulf %549, %487 : vector<8x128xf32>
    %559 = arith.addf %557, %558 : vector<8x128xf32>
    %cst_152 = arith.constant dense<0.000000e+00> : vector<8x384xf32>
    %560 = tpu.matmul %559, %3, %cst_152 {dimension_numbers = #tpu.dot_dimension_numbers<[1], [0], [0], [1], [0, 0, 1, 1], [], []>} : vector<8x128xf32>, vector<128x384xf32>, vector<8x384xf32> -> vector<8x384xf32>
    %561 = vector.broadcast %11 : vector<1x384xf32> to vector<8x384xf32>
    %562 = arith.addf %560, %561 : vector<8x384xf32>
    %cst_153 = arith.constant dense<0.000000e+00> : vector<8x384xf32>
    %563 = tpu.matmul %519, %7, %cst_153 {dimension_numbers = #tpu.dot_dimension_numbers<[1], [0], [0], [1], [0, 0, 1, 1], [], []>} : vector<8x128xf32>, vector<128x384xf32>, vector<8x384xf32> -> vector<8x384xf32>
    %564 = vector.broadcast %15 : vector<1x384xf32> to vector<8x384xf32>
    %565 = arith.addf %563, %564 : vector<8x384xf32>
    %566 = vector.extract_strided_slice %562 {offsets = [0, 0], sizes = [8, 128], strides = [1, 1]} : vector<8x384xf32> to vector<8x128xf32>
    %567 = vector.extract_strided_slice %565 {offsets = [0, 0], sizes = [8, 128], strides = [1, 1]} : vector<8x384xf32> to vector<8x128xf32>
    %568 = arith.addf %566, %567 : vector<8x128xf32>
    %569 = arith.negf %568 : vector<8x128xf32>
    %570 = math.exp %569 : vector<8x128xf32>
    %cst_154 = arith.constant 1.000000e+00 : f32
    %571 = vector.broadcast %cst_154 : f32 to vector<8x128xf32>
    %572 = arith.addf %571, %570 : vector<8x128xf32>
    %573 = arith.divf %571, %572 : vector<8x128xf32>
    %574 = vector.extract_strided_slice %562 {offsets = [0, 128], sizes = [8, 128], strides = [1, 1]} : vector<8x384xf32> to vector<8x128xf32>
    %575 = vector.extract_strided_slice %565 {offsets = [0, 128], sizes = [8, 128], strides = [1, 1]} : vector<8x384xf32> to vector<8x128xf32>
    %576 = arith.addf %574, %575 : vector<8x128xf32>
    %577 = arith.negf %576 : vector<8x128xf32>
    %578 = math.exp %577 : vector<8x128xf32>
    %cst_155 = arith.constant 1.000000e+00 : f32
    %579 = vector.broadcast %cst_155 : f32 to vector<8x128xf32>
    %580 = arith.addf %579, %578 : vector<8x128xf32>
    %581 = arith.divf %579, %580 : vector<8x128xf32>
    %582 = vector.extract_strided_slice %562 {offsets = [0, 256], sizes = [8, 128], strides = [1, 1]} : vector<8x384xf32> to vector<8x128xf32>
    %583 = vector.extract_strided_slice %565 {offsets = [0, 256], sizes = [8, 128], strides = [1, 1]} : vector<8x384xf32> to vector<8x128xf32>
    %584 = arith.mulf %573, %583 : vector<8x128xf32>
    %585 = arith.addf %582, %584 : vector<8x128xf32>
    %586 = math.tanh %585 : vector<8x128xf32>
    %cst_156 = arith.constant 1.000000e+00 : f32
    %587 = vector.broadcast %cst_156 : f32 to vector<8x128xf32>
    %588 = arith.subf %587, %581 : vector<8x128xf32>
    %589 = arith.mulf %588, %586 : vector<8x128xf32>
    %590 = arith.mulf %581, %519 : vector<8x128xf32>
    %591 = arith.addf %589, %590 : vector<8x128xf32>
    %cst_157 = arith.constant dense<0.000000e+00> : vector<8x128xf32>
    %592 = tpu.matmul %591, %16, %cst_157 {dimension_numbers = #tpu.dot_dimension_numbers<[1], [0], [0], [1], [0, 0, 1, 1], [], []>} : vector<8x128xf32>, vector<128x128xf32>, vector<8x128xf32> -> vector<8x128xf32>
    %593 = vector.broadcast %17 : vector<1x128xf32> to vector<8x128xf32>
    %594 = arith.addf %592, %593 : vector<8x128xf32>
    %c7_158 = arith.constant 7 : index
    %c0_159 = arith.constant 0 : index
    %c0_160 = arith.constant 0 : index
    %595 = vector.load %arg8[%c7_158, %c0_159, %c0_160] : memref<8x8x128xf32, #tpu.memory_space<vmem>>, vector<1x8x128xf32>
    %596 = vector.shape_cast %595 : vector<1x8x128xf32> to vector<8x128xf32>
    %597 = vector.shape_cast %594 : vector<8x128xf32> to vector<1x8x128xf32>
    tpu.vector_store %arg8[%c7_158, %c0_159, %c0_160], %597 {strides = array<i32>} : memref<8x8x128xf32, #tpu.memory_space<vmem>>, vector<1x8x128xf32>,
    %c0_161 = arith.constant 0 : index
    %c0_162 = arith.constant 0 : index
    %c0_163 = arith.constant 0 : index
    %598 = vector.load %arg9[%c0_161, %c0_162, %c0_163] : memref<2x8x128xf32, #tpu.memory_space<vmem>>, vector<1x8x128xf32>
    %599 = vector.shape_cast %598 : vector<1x8x128xf32> to vector<8x128xf32>
    %600 = vector.shape_cast %559 : vector<8x128xf32> to vector<1x8x128xf32>
    tpu.vector_store %arg9[%c0_161, %c0_162, %c0_163], %600 {strides = array<i32>} : memref<2x8x128xf32, #tpu.memory_space<vmem>>, vector<1x8x128xf32>,
    %c1_164 = arith.constant 1 : index
    %c0_165 = arith.constant 0 : index
    %c0_166 = arith.constant 0 : index
    %601 = vector.load %arg9[%c1_164, %c0_165, %c0_166] : memref<2x8x128xf32, #tpu.memory_space<vmem>>, vector<1x8x128xf32>
    %602 = vector.shape_cast %601 : vector<1x8x128xf32> to vector<8x128xf32>
    %603 = vector.shape_cast %591 : vector<8x128xf32> to vector<1x8x128xf32>
    tpu.vector_store %arg9[%c1_164, %c0_165, %c0_166], %603 {strides = array<i32>} : memref<2x8x128xf32, #tpu.memory_space<vmem>>, vector<1x8x128xf32>,
    return
  }
}

</mosaic_0001>

<bundles_post_ra>
// kernel: decoder_gru_forward.1
= control target key start
LH: loop header
LB: loop body
LE: loop exit
PB: predicated region body
PF: predicated region fallthrough
CT: control target
= control target key end

     0   :  { %15 = vsyncpa [#allocation3], 0  ;;  %s12151_s0 = inlined_call_operand.vmem [shape: f32[8,8,128], index: 0, kind: input, shape index: {}]   ;;  %s12152_s1 = inlined_call_operand.vmem [shape: f32[2,8,128], index: 1, kind: input, shape index: {}]   ;;  %s12153_s2 = inlined_call_operand.hbm [shape: f32[2,128,384], index: 2, kind: input, shape index: {}]   ;;  %s12154_s3 = inlined_call_operand.hbm [shape: f32[2,128,384], index: 3, kind: input, shape index: {}]   ;;  %s12155_s4 = inlined_call_operand.vmem [shape: f32[2,1,384], index: 4, kind: input, shape index: {}]   ;;  %s12156_s5 = inlined_call_operand.vmem [shape: f32[2,1,384], index: 5, kind: input, shape index: {}]   ;;  %s12157_s6 = inlined_call_operand.vmem [shape: f32[128,128], index: 6, kind: input, shape index: {}]   ;;  %s12158_s7 = inlined_call_operand.vmem [shape: f32[1,128], index: 7, kind: input, shape index: {}]   ;;  %s12159_s8 = inlined_call_operand.vmem [shape: f32[8,8,128], index: 8, kind: output, shape index: {0}]   ;;  %s12160_s9 = inlined_call_operand.vmem [shape: f32[2,8,128], index: 9, kind: output, shape index: {1}]  }
   0x1   :  { %16 = vsyncpa [#allocation5], 0  ;;  %s10228_s30 = smov [#allocation2]   ;;  %s10180_s13 = scalar_lea.hbm %s12153_s2, 12288 }
   0x2   :  { %s26_s10 = sshll.u32 %s10228_s30, 4  ;;  %p10181_p0 = scmp.ne.s32.totalorder %s12153_s2, %s10180_s13  ;;  %s27_s10 = int_to_ptr.vmem [resolvable:$true] %s26_s10 }
   0x3   :  { %p10184_p1 = scmp.lt.u32.totalorder %s10180_s13, %s12153_s2 }
   0x5   :  { %p10186_p2 = pnand %p10184_p1, %p10181_p0 }
   0x7   :  { %10189 = shalt.err (!%p10186_p2)
}
   0x8   :  { %s10190_s18 = scalar_lea.vmem %s27_s10, 12288  ;;  %p10195_p4 = scmp.lt.s32.totalorder %s27_s10, %s27_s10 }
   0x9   :  { %p10191_p3 = scmp.ne.s32.totalorder %s27_s10, %s10190_s18  ;;  %p10196_p5 = scmp.lt.s32.totalorder %s10190_s18, %s10190_s18 }
   0xb   :  { %p10197_p6 = por %p10196_p5, %p10195_p4 }
   0xd   :  { %p10198_p7 = pnand %p10197_p6, %p10191_p3 }
   0xf   :  { %10201 = shalt.err (!%p10198_p7)
}
  0x10   :  { %s10229_s19 = smov 384   ;;  %s10230_s20 = smov 24  }
  0x11   :  { %32 = dma.hbm_to_vmem [thread:$0]  %s12153_s2, 12288, %s27_s10, [#allocation3], %s10229_s19, %s10229_s19, %s10230_s20  }
  0x12   :  { %s10231_s23 = smov [#allocation4]   ;;  %s10202_s27 = scalar_lea.hbm %s12154_s3, 12288 }
  0x13   :  { %s38_s24 = sshll.u32 %s10231_s23, 4  ;;  %p10203_p8 = scmp.ne.s32.totalorder %s12154_s3, %s10202_s27  ;;  %s39_s24 = int_to_ptr.vmem [resolvable:$true] %s38_s24 }
  0x14   :  { %p10206_p9 = scmp.lt.u32.totalorder %s10202_s27, %s12154_s3 }
  0x16   :  { %p10208_p10 = pnand %p10206_p9, %p10203_p8 }
  0x18   :  { %10211 = shalt.err (!%p10208_p10)
}
  0x19   :  { %s10212_s12 = scalar_lea.vmem %s39_s24, 12288  ;;  %p10217_p12 = scmp.lt.s32.totalorder %s39_s24, %s39_s24 }
  0x1a   :  { %p10213_p11 = scmp.ne.s32.totalorder %s39_s24, %s10212_s12  ;;  %p10218_p13 = scmp.lt.s32.totalorder %s10212_s12, %s10212_s12 }
  0x1c   :  { %p10219_p0 = por %p10218_p13, %p10217_p12 }
  0x1e   :  { %p10220_p1 = pnand %p10219_p0, %p10213_p11 }
  0x20   :  { %10223 = shalt.err (!%p10220_p1)
}
  0x21   :  { %44 = dma.hbm_to_vmem [thread:$0]  %s12154_s3, 12288, %s39_s24, [#allocation5], %s10229_s19, %s10229_s19, %s10230_s20  }
  0x22   :  { %10224 = dma.done.wait [#allocation3], 12288  }
  0x23   :  { %10225 = vsyncadd [#allocation3], 4294955008 }
  0x24   :  { %10226 = dma.done.wait [#allocation5], 12288  }
  0x25   :  { %10227 = vsyncadd [#allocation5], 4294955008  ;;  %v12195_v0 = vmov 0.0|0.0   ;;  %v12161_v1 = vmov 0.0   ;;  %vm10234_vm0 = vmmov 0   ;;  %v60_v2 = vld [vmem:[#allocation2 + $0x8] sm:$0xff] }
  0x26   :  { %7963 = vmatprep.subr.bf16.mxu1 %v12195_v0  ;;  %360 = vmatprep.mubr.f32.mxu0 %v12161_v1  ;;  %v63_v3 = vld [vmem:[#allocation2 + $0x20] sm:$0xff]  ;;  %v62_v6 = vld [vmem:[#allocation2 + $0x18] sm:$0xff]  ;;  %v69_v8 = vld [vmem:[#allocation2 + $0x50] sm:$0xff] }
  0x27   :  { %6563 = vmatprep.mubr.msk.f32.mxu1 %vm10234_vm0, %v12161_v1  ;;  %v59_v4 = vld [vmem:[#allocation2] sm:$0xff]  ;;  %v10313_v5 = vpack.c.bf16 %v63_v3, %v60_v2  ;;  %v66_v7 = vld [vmem:[#allocation2 + $0x38] sm:$0xff]  ;;  %v65_v11 = vld [vmem:[#allocation2 + $0x30] sm:$0xff] }
  0x28   :  { %v10315_v9 = vpack.c.bf16 %v62_v6, %v59_v4  ;;  %v10317_v10 = vpack.c.bf16 %v69_v8, %v66_v7  ;;  %v68_v12 = vld [vmem:[#allocation2 + $0x48] sm:$0xff]  ;;  %v75_v14 = vld [vmem:[#allocation2 + $0x80] sm:$0xff]  ;;  %v74_v18 = vld [vmem:[#allocation2 + $0x78] sm:$0xff] }
  0x29   :  { %v72_v13 = vld [vmem:[#allocation2 + $0x68] sm:$0xff]  ;;  %7932 = vmatprep.subr.bf16.mxu0 %v10313_v5  ;;  %v10321_v15 = vpack.c.bf16 %v68_v12, %v65_v11  ;;  %v71_v17 = vld [vmem:[#allocation2 + $0x60] sm:$0xff]  ;;  %v78_v19 = vld [vmem:[#allocation2 + $0x98] sm:$0xff] }
  0x2a   :  { %7934 = vmatpush1.bf16.msra.mxu0 %v10315_v9  ;;  %v10324_v16 = vpack.c.bf16 %v75_v14, %v72_v13  ;;  %v81_v20 = vld [vmem:[#allocation2 + $0xb0] sm:$0xff]  ;;  %v10327_v21 = vpack.c.bf16 %v74_v18, %v71_v17  ;;  %v80_v24 = vld [vmem:[#allocation2 + $0xa8] sm:$0xff]  ;;  %v87_v28 = vld [vmem:[#allocation2 + $0xe0] sm:$0xff] }
  0x2b   :  { %7936 = vmatprep.subr.bf16.mxu0 %v10317_v10  ;;  %v77_v22 = vld [vmem:[#allocation2 + $0x90] sm:$0xff]  ;;  %v10330_v23 = vpack.c.bf16 %v81_v20, %v78_v19  ;;  %v64_v26 = vld [vmem:[#allocation2 + $0x28] sm:$0xff]  ;;  %v67_v30 = vld [vmem:[#allocation2 + $0x40] sm:$0xff] }
  0x2c   :  { %v61_v25 = vld [vmem:[#allocation2 + $0x10] sm:$0xff]  ;;  %v84_v27 = vld [vmem:[#allocation2 + $0xc8] sm:$0xff]  ;;  %v70_v31 = vld [vmem:[#allocation2 + $0x58] sm:$0xff]  ;;  %v10335_v32 = vpack.c.bf16 %v80_v24, %v77_v22 }
  0x2d   :  { %v10332_v29 = vpack.c.bf16 %v64_v26, %v61_v25  ;;  %v10338_v33 = vpack.c.bf16 %v70_v31, %v67_v30  ;;  %v10341_v34 = vpack.c.bf16 %v87_v28, %v84_v27  ;;  %v83_v35 = vld [vmem:[#allocation2 + $0xc0] sm:$0xff]  ;;  %v86_v36 = vld [vmem:[#allocation2 + $0xd8] sm:$0xff]  ;;  %v73_v37 = vld [vmem:[#allocation2 + $0x70] sm:$0xff] }
  0x2e   :  { %7938 = vmatpush1.bf16.msra.mxu0 %v10321_v15  ;;  %12356 = vst [vmem:[#allocation9_spill] sm:$0xff] %v10335_v32  ;;  %v90_v38 = vld [vmem:[#allocation2 + $0xf8] sm:$0xff]  ;;  %v93_v39 = vld [vmem:[#allocation2 + $0x110] sm:$0xff]  ;;  %v76_v40 = vld [vmem:[#allocation2 + $0x88] sm:$0xff]  ;;  %v10345_v41 = vpack.c.bf16 %v86_v36, %v83_v35 }
  0x2f   :  { %7940 = vmatprep.subr.bf16.mxu0 %v10324_v16  ;;  %12355 = vst [vmem:[#allocation8_spill] sm:$0xff] %v10332_v29  ;;  %7965 = vmatpush3.bf16.msra.mxu1 %v10332_v29  ;;  %12357 = vst [vmem:[#allocation10_spill] sm:$0xff] %v10338_v33  ;;  %v89_v42 = vld [vmem:[#allocation2 + $0xf0] sm:$0xff]  ;;  %v10348_v43 = vpack.c.bf16 %v76_v40, %v73_v37  ;;  %v10351_v44 = vpack.c.bf16 %v93_v39, %v90_v38  ;;  %v92_v45 = vld [vmem:[#allocation2 + $0x108] sm:$0xff] }
  0x30   :  { %12358 = vst [vmem:[#allocation11_spill] sm:$0xff] %v10341_v34  ;;  %7966 = vmatprep.subr.bf16.mxu1 %v12195_v0  ;;  %12359 = vst [vmem:[#allocation12_spill] sm:$0xff] %v10345_v41  ;;  %v79_v46 = vld [vmem:[#allocation2 + $0xa0] sm:$0xff]  ;;  %v82_v47 = vld [vmem:[#allocation2 + $0xb8] sm:$0xff]  ;;  %v10355_v50 = vpack.c.bf16 %v92_v45, %v89_v42 }
  0x31   :  { %12360 = vst [vmem:[#allocation13_spill] sm:$0xff] %v10348_v43  ;;  %12361 = vst [vmem:[#allocation14_spill] sm:$0xff] %v10351_v44  ;;  %v96_v48 = vld [vmem:[#allocation2 + $0x128] sm:$0xff]  ;;  %v99_v49 = vld [vmem:[#allocation2 + $0x140] sm:$0xff]  ;;  %v10358_v52 = vpack.c.bf16 %v82_v47, %v79_v46 }
  0x32   :  { %7942 = vmatpush1.bf16.msra.mxu0 %v10327_v21  ;;  %12362 = vst [vmem:[#allocation15_spill] sm:$0xff] %v10355_v50  ;;  %v95_v51 = vld [vmem:[#allocation2 + $0x120] sm:$0xff]  ;;  %v10361_v53 = vpack.c.bf16 %v99_v49, %v96_v48  ;;  %v98_v54 = vld [vmem:[#allocation2 + $0x138] sm:$0xff]  ;;  %v85_v55 = vld [vmem:[#allocation2 + $0xd0] sm:$0xff] }
  0x33   :  { %7944 = vmatprep.subr.bf16.mxu0 %v10330_v23  ;;  %7968 = vmatpush3.bf16.msra.mxu1 %v10338_v33  ;;  %12363 = vst [vmem:[#allocation16_spill] sm:$0xff] %v10358_v52  ;;  %v88_v56 = vld [vmem:[#allocation2 + $0xe8] sm:$0xff]  ;;  %v102_v57 = vld [vmem:[#allocation2 + $0x158] sm:$0xff]  ;;  %v105_v58 = vld [vmem:[#allocation2 + $0x170] sm:$0xff]  ;;  %v10365_v59 = vpack.c.bf16 %v98_v54, %v95_v51 }
  0x34   :  { %7969 = vmatprep.subr.bf16.mxu1 %v12195_v0  ;;  %12364 = vst [vmem:[#allocation17_spill] sm:$0xff] %v10361_v53  ;;  %v101_v60 = vld [vmem:[#allocation2 + $0x150] sm:$0xff]  ;;  %v10368_v61 = vpack.c.bf16 %v88_v56, %v85_v55  ;;  %v10371_v62 = vpack.c.bf16 %v105_v58, %v102_v57  ;;  %v104_v63 = vld [vmem:[#allocation2 + $0x168] sm:$0xff]  ;;  %v91_v2 = vld [vmem:[#allocation2 + $0x100] sm:$0xff] }
  0x35   :  { %12365 = vst [vmem:[#allocation18_spill] sm:$0xff] %v10365_v59  ;;  %v94_v3 = vld [vmem:[#allocation2 + $0x118] sm:$0xff]  ;;  %v157_v4 = vld [vmem:[#allocation4 + $0x8] sm:$0xff]  ;;  %v160_v6 = vld [vmem:[#allocation4 + $0x20] sm:$0xff]  ;;  %v10375_v7 = vpack.c.bf16 %v104_v63, %v101_v60 }
  0x36   :  { %7946 = vmatpush1.bf16.msra.mxu0 %v10335_v32  ;;  %12366 = vst [vmem:[#allocation19_spill] sm:$0xff] %v10368_v61  ;;  %12367 = vst [vmem:[#allocation20_spill] sm:$0xff] %v10371_v62  ;;  %v156_v8 = vld [vmem:[#allocation4] sm:$0xff]  ;;  %v10378_v11 = vpack.c.bf16 %v94_v3, %v91_v2  ;;  %v10381_v12 = vpack.c.bf16 %v160_v6, %v157_v4  ;;  %v159_v13 = vld [vmem:[#allocation4 + $0x18] sm:$0xff] }
  0x37   :  { %7948 = vmatprep.subr.bf16.mxu0 %v10341_v34  ;;  %7971 = vmatpush3.bf16.msra.mxu1 %v10348_v43  ;;  %12368 = vst [vmem:[#allocation21_spill] sm:$0xff] %v10375_v7  ;;  %v97_v14 = vld [vmem:[#allocation2 + $0x130] sm:$0xff]  ;;  %v100_v17 = vld [vmem:[#allocation2 + $0x148] sm:$0xff]  ;;  %v163_v18 = vld [vmem:[#allocation4 + $0x38] sm:$0xff]  ;;  %v10388_v22 = vpack.c.bf16 %v159_v13, %v156_v8 }
  0x38   :  { %7972 = vmatprep.subr.bf16.mxu1 %v12195_v0  ;;  %12369 = vst [vmem:[#allocation22_spill] sm:$0xff] %v10378_v11  ;;  %12370 = vst [vmem:[#allocation23_spill] sm:$0xff] %v10381_v12  ;;  %v166_v19 = vld [vmem:[#allocation4 + $0x50] sm:$0xff]  ;;  %v279_v20 = vld [vmem:[%s12151_s0] sm:$0xff]  ;;  %v10391_v25 = vpack.c.bf16 %v100_v17, %v97_v14 }
  0x39   :  { %12371 = vst [vmem:[#allocation24_spill] sm:$0xff] %v10388_v22  ;;  %v162_v24 = vld [vmem:[#allocation4 + $0x30] sm:$0xff]  ;;  %v10394_v26 = vpack.c.bf16 %v166_v19, %v163_v18  ;;  %v165_v27 = vld [vmem:[#allocation4 + $0x48] sm:$0xff]  ;;  %v103_v28 = vld [vmem:[#allocation2 + $0x160] sm:$0xff] }
  0x3a   :  { %7950 = vmatpush1.bf16.msra.mxu0 %v10345_v41  ;;  %12372 = vst [vmem:[#allocation25_spill] sm:$0xff] %v10391_v25  ;;  %v106_v30 = vld [vmem:[#allocation2 + $0x178] sm:$0xff]  ;;  %v169_v31 = vld [vmem:[#allocation4 + $0x68] sm:$0xff]  ;;  %v172_v35 = vld [vmem:[#allocation4 + $0x80] sm:$0xff]  ;;  %v10398_v36 = vpack.c.bf16 %v165_v27, %v162_v24 }
  0x3b   :  { %7952 = vmatprep.subr.bf16.mxu0 %v10351_v44  ;;  %7974 = vmatpush3.bf16.msra.mxu1 %v10358_v52  ;;  %12373 = vst [vmem:[#allocation26_spill] sm:$0xff] %v10394_v26  ;;  %v168_v37 = vld [vmem:[#allocation4 + $0x60] sm:$0xff]  ;;  %v10401_v38 = vpack.c.bf16 %v106_v30, %v103_v28  ;;  %v10404_v39 = vpack.c.bf16 %v172_v35, %v169_v31  ;;  %v171_v40 = vld [vmem:[#allocation4 + $0x78] sm:$0xff]  ;;  %v158_v42 = vld [vmem:[#allocation4 + $0x10] sm:$0xff] }
  0x3c   :  { %7975 = vmatprep.subr.bf16.mxu1 %v12195_v0  ;;  %12374 = vst [vmem:[#allocation27_spill] sm:$0xff] %v10398_v36  ;;  %v161_v45 = vld [vmem:[#allocation4 + $0x28] sm:$0xff]  ;;  %v175_v46 = vld [vmem:[#allocation4 + $0x98] sm:$0xff]  ;;  %v178_v47 = vld [vmem:[#allocation4 + $0xb0] sm:$0xff]  ;;  %v10409_v48 = vpack.c.bf16 %v171_v40, %v168_v37 }
  0x3d   :  { %12375 = vst [vmem:[#allocation28_spill] sm:$0xff] %v10401_v38  ;;  %12376 = vst [vmem:[#allocation29_spill] sm:$0xff] %v10404_v39  ;;  %v174_v49 = vld [vmem:[#allocation4 + $0x90] sm:$0xff]  ;;  %v10412_v51 = vpack.c.bf16 %v161_v45, %v158_v42  ;;  %v10415_v54 = vpack.c.bf16 %v178_v47, %v175_v46  ;;  %v177_v55 = vld [vmem:[#allocation4 + $0xa8] sm:$0xff] }
  0x3e   :  { %7954 = vmatpush1.bf16.msra.mxu0 %v10355_v50  ;;  %12377 = vst [vmem:[#allocation30_spill] sm:$0xff] %v10409_v48  ;;  %v164_v56 = vld [vmem:[#allocation4 + $0x40] sm:$0xff]  ;;  %v167_v57 = vld [vmem:[#allocation4 + $0x58] sm:$0xff]  ;;  %v181_v58 = vld [vmem:[#allocation4 + $0xc8] sm:$0xff]  ;;  %v10419_v63 = vpack.c.bf16 %v177_v55, %v174_v49 }
  0x3f   :  { %7956 = vmatprep.subr.bf16.mxu0 %v10361_v53  ;;  %7977 = vmatpush3.bf16.msra.mxu1 %v10368_v61  ;;  %12378 = vst [vmem:[#allocation31_spill] sm:$0xff] %v10412_v51  ;;  %12379 = vst [vmem:[#allocation32_spill] sm:$0xff] %v10415_v54  ;;  %v184_v60 = vld [vmem:[#allocation4 + $0xe0] sm:$0xff]  ;;  %v10422_v3 = vpack.c.bf16 %v167_v57, %v164_v56  ;;  %v183_v6 = vld [vmem:[#allocation4 + $0xd8] sm:$0xff]  ;;  %v12418_v61 = vmov 0.0|0.0  }
  0x40   :  { %7978 = vmatprep.subr.bf16.mxu1 %v12195_v0  ;;  %12380 = vst [vmem:[#allocation33_spill] sm:$0xff] %v10419_v63  ;;  %v180_v2 = vld [vmem:[#allocation4 + $0xc0] sm:$0xff]  ;;  %v10425_v4 = vpack.c.bf16 %v184_v60, %v181_v58  ;;  %v170_v8 = vld [vmem:[#allocation4 + $0x70] sm:$0xff]  ;;  %v173_v13 = vld [vmem:[#allocation4 + $0x88] sm:$0xff] }
  0x41   :  { %12381 = vst [vmem:[#allocation34_spill] sm:$0xff] %v10422_v3  ;;  %v187_v14 = vld [vmem:[#allocation4 + $0xf8] sm:$0xff]  ;;  %v190_v17 = vld [vmem:[#allocation4 + $0x110] sm:$0xff]  ;;  %v10431_v18 = vpack.c.bf16 %v183_v6, %v180_v2  ;;  %v189_v27 = vld [vmem:[#allocation4 + $0x108] sm:$0xff] }
  0x42   :  { %7958 = vmatpush1.bf16.msra.mxu0 %v10365_v59  ;;  %12382 = vst [vmem:[#allocation35_spill] sm:$0xff] %v10425_v4  ;;  %v186_v19 = vld [vmem:[#allocation4 + $0xf0] sm:$0xff]  ;;  %v10437_v24 = vpack.c.bf16 %v190_v17, %v187_v14  ;;  %v176_v28 = vld [vmem:[#allocation4 + $0xa0] sm:$0xff]  ;;  %v179_v30 = vld [vmem:[#allocation4 + $0xb8] sm:$0xff] }
  0x43   :  { %7960 = vmatprep.subr.bf16.mxu0 %v10371_v62  ;;  %7980 = vmatpush3.bf16.msra.mxu1 %v10378_v11  ;;  %12383 = vst [vmem:[#allocation36_spill] sm:$0xff] %v10431_v18  ;;  %v193_v31 = vld [vmem:[#allocation4 + $0x128] sm:$0xff]  ;;  %v196_v35 = vld [vmem:[#allocation4 + $0x140] sm:$0xff]  ;;  %v10441_v37 = vpack.c.bf16 %v189_v27, %v186_v19  ;;  %v10444_v42 = vpack.c.bf16 %v179_v30, %v176_v28  ;;  %v195_v46 = vld [vmem:[#allocation4 + $0x138] sm:$0xff] }
  0x44   :  { %7981 = vmatprep.subr.bf16.mxu1 %v12195_v0  ;;  %12385 = vst [vmem:[#allocation38_spill] sm:$0xff] %v10437_v24  ;;  %v192_v40 = vld [vmem:[#allocation4 + $0x120] sm:$0xff]  ;;  %v10447_v45 = vpack.c.bf16 %v196_v35, %v193_v31  ;;  %v182_v47 = vld [vmem:[#allocation4 + $0xd0] sm:$0xff]  ;;  %v185_v49 = vld [vmem:[#allocation4 + $0xe8] sm:$0xff] }
  0x45   :  { %12386 = vst [vmem:[#allocation39_spill] sm:$0xff] %v10441_v37  ;;  %12387 = vst [vmem:[#allocation40_spill] sm:$0xff] %v10444_v42  ;;  %v199_v55 = vld [vmem:[#allocation4 + $0x158] sm:$0xff]  ;;  %v202_v56 = vld [vmem:[#allocation4 + $0x170] sm:$0xff]  ;;  %v10451_v57 = vpack.c.bf16 %v195_v46, %v192_v40  ;;  %v10454_v60 = vpack.c.bf16 %v185_v49, %v182_v47 }
  0x46   :  { %7962 = vmatpush1.bf16.msra.mxu0 %v10375_v7  ;;  %12388 = vst [vmem:[#allocation41_spill] sm:$0xff] %v10447_v45  ;;  %v198_v58 = vld [vmem:[#allocation4 + $0x150] sm:$0xff]  ;;  %v10457_v2 = vpack.c.bf16 %v202_v56, %v199_v55  ;;  %v201_v6 = vld [vmem:[#allocation4 + $0x168] sm:$0xff]  ;;  %v10472_v28 = vld [vmem:[%s12152_s1] sm:$0xff] }
  0x47   :  { %7988 = vmatprep.subr.bf16.mxu0 %v10381_v12  ;;  %7983 = vmatpush3.bf16.msra.mxu1 %v10391_v25  ;;  %12389 = vst [vmem:[#allocation42_spill] sm:$0xff] %v10451_v57  ;;  %12390 = vst [vmem:[#allocation43_spill] sm:$0xff] %v10454_v60  ;;  %v10461_v14 = vpack.c.bf16 %v201_v6, %v198_v58  ;;  %v194_v19 = vld [vmem:[#allocation4 + $0x130] sm:$0xff]  ;;  %v197_v27 = vld [vmem:[#allocation4 + $0x148] sm:$0xff] }
  0x48   :  { %7984 = vmatprep.subr.bf16.mxu1 %v12195_v0  ;;  %12391 = vst [vmem:[#allocation44_spill] sm:$0xff] %v10457_v2  ;;  %v10475_v30 = vpack.c.bf16 %v197_v27, %v194_v19  ;;  %v200_v31 = vld [vmem:[#allocation4 + $0x160] sm:$0xff]  ;;  %v203_v35 = vld [vmem:[#allocation4 + $0x178] sm:$0xff]  ;;  %v109_v46 = vld [vmem:[#allocation2 + $0x188] sm:$0xff] }
  0x49   :  { %361 = vmatmul.mubr.f32.vlgmr.msra.gmra.mrb[0].mxu0 %v279_v20  ;;  %12392 = vst [vmem:[#allocation45_spill] sm:$0xff] %v10461_v14  ;;  %v10480_v40 = vpack.c.bf16 %v203_v35, %v200_v31  ;;  %v112_v47 = vld [vmem:[#allocation2 + $0x1a0] sm:$0xff]  ;;  %v111_v56 = vld [vmem:[#allocation2 + $0x198] sm:$0xff]  ;;  %v110_v58 = vld [vmem:[#allocation2 + $0x190] sm:$0xff] }
  0x4a   :  { %7990 = vmatpush1.bf16.msra.mxu0 %v10388_v22  ;;  %517 = vmatprep.mubr.f32.mxu0 %v12161_v1  ;;  %12394 = vst [vmem:[#allocation47_spill] sm:$0xff] %v10475_v30  ;;  %v10489_v49 = vpack.c.bf16 %v112_v47, %v109_v46  ;;  %v108_v55 = vld [vmem:[#allocation2 + $0x180] sm:$0xff]  ;;  %v115_v19 = vld [vmem:[#allocation2 + $0x1b8] sm:$0xff]  ;;  %v118_v27 = vld [vmem:[#allocation2 + $0x1d0] sm:$0xff] }
  0x4b   :  { %7992 = vmatprep.subr.bf16.mxu0 %v10394_v26  ;;  %7986 = vmatpush3.bf16.msra.mxu1 %v10401_v38  ;;  %12395 = vst [vmem:[#allocation48_spill] sm:$0xff] %v10480_v40  ;;  %v10491_v6 = vpack.c.bf16 %v111_v56, %v108_v55  ;;  %v10498_v31 = vpack.c.bf16 %v118_v27, %v115_v19  ;;  %v114_v35 = vld [vmem:[#allocation2 + $0x1b0] sm:$0xff]  ;;  %v117_v46 = vld [vmem:[#allocation2 + $0x1c8] sm:$0xff]  ;;  %v116_v47 = vld [vmem:[#allocation2 + $0x1c0] sm:$0xff] }
  0x4c   :  { %8019 = vmatprep.subr.bf16.mxu1 %v12195_v0  ;;  %12396 = vst [vmem:[#allocation49_spill] sm:$0xff] %v10489_v49  ;;  %v10501_v55 = vpack.c.bf16 %v117_v46, %v114_v35  ;;  %v119_v56 = vld [vmem:[#allocation2 + $0x1d8] sm:$0xff]  ;;  %v120_v27 = vld [vmem:[#allocation2 + $0x1e0] sm:$0xff]  ;;  %v125_v46 = vld [vmem:[#allocation2 + $0x208] sm:$0xff] }
  0x4d   :  { %12397 = vst [vmem:[#allocation50_spill] sm:$0xff] %v10491_v6  ;;  %12399 = vst [vmem:[#allocation52_spill] sm:$0xff] %v10498_v31  ;;  %v148_v38 = vld [vmem:[#allocation2 + $0x2c0] sm:$0xff]  ;;  %v149_v11 = vld [vmem:[#allocation2 + $0x2c8] sm:$0xff] }
  0x4e   :  { %7994 = vmatpush1.bf16.msra.mxu0 %v10398_v36  ;;  %6564 = vmatmul.mubr.f32.vlgmr.msra.gmra.mrb[0].mxu1 %v279_v20  ;;  %v10434_v20 = vpack.c.bf16 %v173_v13, %v170_v8  ;;  %v188_v8 = vld [vmem:[#allocation4 + $0x100] sm:$0xff]  ;;  %v191_v13 = vld [vmem:[#allocation4 + $0x118] sm:$0xff]  ;;  %12400 = vst [vmem:[#allocation53_spill] sm:$0xff] %v10501_v55  ;;  %v206_v43 = vld [vmem:[#allocation4 + $0x188] sm:$0xff] }
  0x4f   :  { %7996 = vmatprep.subr.bf16.mxu0 %v10404_v39  ;;  %8021 = vmatpush3.bf16.msra.mxu1 %v10412_v51  ;;  %v10464_v17 = vpack.c.bf16 %v191_v13, %v188_v8  ;;  %v113_v8 = vld [vmem:[#allocation2 + $0x1a8] sm:$0xff]  ;;  %v144_v25 = vld [vmem:[#allocation2 + $0x2a0] sm:$0xff]  ;;  %v155_v52 = vld [vmem:[#allocation2 + $0x2f8] sm:$0xff] }
  0x50   :  { %8022 = vmatprep.subr.bf16.mxu1 %v12195_v0  ;;  %6598 = vmatprep.mubr.msk.f32.mxu1 %vm10234_vm0, %v12161_v1  ;;  %12384 = vst [vmem:[#allocation37_spill] sm:$0xff] %v10434_v20  ;;  %v10494_v13 = vpack.c.bf16 %v113_v8, %v110_v58  ;;  %v10504_v58 = vpack.c.bf16 %v119_v56, %v116_v47  ;;  %v121_v8 = vld [vmem:[#allocation2 + $0x1e8] sm:$0xff]  ;;  %v127_v56 = vld [vmem:[#allocation2 + $0x218] sm:$0xff] }
  0x51   :  { %12393 = vst [vmem:[#allocation46_spill] sm:$0xff] %v10464_v17  ;;  %v145_v51 = vld [vmem:[#allocation2 + $0x2a8] sm:$0xff] }
  0x52   :  { %7998 = vmatpush1.bf16.msra.mxu0 %v10409_v48  ;;  %12398 = vst [vmem:[#allocation51_spill] sm:$0xff] %v10494_v13  ;;  %12401 = vst [vmem:[#allocation54_spill] sm:$0xff] %v10504_v58 }
  0x53   :  { %8000 = vmatprep.subr.bf16.mxu0 %v10415_v54  ;;  %8024 = vmatpush3.bf16.msra.mxu1 %v10422_v3  ;;  %v140_v3 = vld [vmem:[#allocation2 + $0x280] sm:$0xff] }
  0x54   :  { %8025 = vmatprep.subr.bf16.mxu1 %v12195_v0 }
  0x56   :  { %8002 = vmatpush1.bf16.msra.mxu0 %v10419_v63 }
  0x57   :  { %8004 = vmatprep.subr.bf16.mxu0 %v10425_v4  ;;  %8027 = vmatpush3.bf16.msra.mxu1 %v10434_v20  ;;  %v142_v20 = vld [vmem:[#allocation2 + $0x290] sm:$0xff] }
  0x58   :  { %8028 = vmatprep.subr.bf16.mxu1 %v12195_v0 }
  0x5a   :  { %8006 = vmatpush1.bf16.msra.mxu0 %v10431_v18 }
  0x5b   :  { %8008 = vmatprep.subr.bf16.mxu0 %v10437_v24  ;;  %8030 = vmatpush3.bf16.msra.mxu1 %v10444_v42  ;;  %v134_v42 = vld [vmem:[#allocation2 + $0x250] sm:$0xff] }
  0x5c   :  { %8031 = vmatprep.subr.bf16.mxu1 %v12195_v0 }
  0x5e   :  { %8010 = vmatpush1.bf16.msra.mxu0 %v10441_v37 }
  0x5f   :  { %8012 = vmatprep.subr.bf16.mxu0 %v10447_v45  ;;  %8033 = vmatpush3.bf16.msra.mxu1 %v10454_v60  ;;  %v136_v60 = vld [vmem:[#allocation2 + $0x260] sm:$0xff] }
  0x60   :  { %8034 = vmatprep.subr.bf16.mxu1 %v12195_v0 }
  0x62   :  { %8014 = vmatpush1.bf16.msra.mxu0 %v10451_v57 }
  0x63   :  { %8016 = vmatprep.subr.bf16.mxu0 %v10457_v2  ;;  %8036 = vmatpush3.bf16.msra.mxu1 %v10464_v17  ;;  %v128_v17 = vld [vmem:[#allocation2 + $0x220] sm:$0xff] }
  0x64   :  { %8037 = vmatprep.subr.bf16.mxu1 %v12195_v0 }
  0x66   :  { %8018 = vmatpush1.bf16.msra.mxu0 %v10461_v14 }
  0x67   :  { %8039 = vmatpush3.bf16.msra.mxu1 %v10475_v30  ;;  %8044 = vmatprep.subr.bf16.mxu0 %v10489_v49  ;;  %v130_v30 = vld [vmem:[#allocation2 + $0x230] sm:$0xff] }
  0x68   :  { %8040 = vmatprep.subr.bf16.mxu1 %v12195_v0 }
  0x69   :  { %518 = vmatmul.mubr.f32.vlgmr.msra.gmra.mrb[0].mxu0 %v10472_v28 }
  0x6a   :  { %695 = vmatprep.mubr.f32.mxu0 %v12161_v1  ;;  %8046 = vmatpush1.bf16.msra.mxu0 %v10491_v6 }
  0x6b   :  { %8042 = vmatpush3.bf16.msra.mxu1 %v10480_v40  ;;  %8048 = vmatprep.subr.bf16.mxu0 %v10498_v31  ;;  %v122_v40 = vld [vmem:[#allocation2 + $0x1f0] sm:$0xff] }
  0x6c   :  { %8075 = vmatprep.subr.bf16.mxu1 %v12195_v0  ;;  %v10514_v47 = vpack.c.bf16 %v125_v46, %v122_v40  ;;  %v133_v46 = vld [vmem:[#allocation2 + $0x248] sm:$0xff] }
  0x6e   :  { %6599 = vmatmul.mubr.f32.vlgmr.msra.gmra.mrb[2].mxu1 %v10472_v28  ;;  %8050 = vmatpush1.bf16.msra.mxu0 %v10501_v55  ;;  %12404 = vst [vmem:[#allocation57_spill] sm:$0xff] %v10514_v47 }
  0x6f   :  { %6633 = vmatprep.mubr.msk.f32.mxu1 %vm10234_vm0, %v12161_v1  ;;  %8077 = vmatpush3.bf16.msra.mxu1 %v10494_v13  ;;  %v124_v1 = vld [vmem:[#allocation2 + $0x200] sm:$0xff]  ;;  %v123_v13 = vld [vmem:[#allocation2 + $0x1f8] sm:$0xff] }
  0x70   :  { %8078 = vmatprep.subr.bf16.mxu1 %v12195_v0  ;;  %v10508_v19 = vpack.c.bf16 %v124_v1, %v121_v8  ;;  %v10511_v35 = vpack.c.bf16 %v123_v13, %v120_v27  ;;  %v10518_v1 = vpack.c.bf16 %v130_v30, %v127_v56  ;;  %v126_v8 = vld [vmem:[#allocation2 + $0x210] sm:$0xff]  ;;  %v131_v27 = vld [vmem:[#allocation2 + $0x238] sm:$0xff]  ;;  %v10528_v30 = vpack.c.bf16 %v136_v60, %v133_v46  ;;  %v132_v56 = vld [vmem:[#allocation2 + $0x240] sm:$0xff] }
  0x71   :  { %v10524_v40 = vpack.c.bf16 %v131_v27, %v128_v17  ;;  %v139_v27 = vld [vmem:[#allocation2 + $0x278] sm:$0xff]  ;;  %v138_v46 = vld [vmem:[#allocation2 + $0x270] sm:$0xff] }
  0x72   :  { %12402 = vst [vmem:[#allocation55_spill] sm:$0xff] %v10508_v19  ;;  %12403 = vst [vmem:[#allocation56_spill] sm:$0xff] %v10511_v35  ;;  %8052 = vmatprep.subr.bf16.mxu0 %v10508_v19  ;;  %v10538_v60 = vpack.c.bf16 %v142_v20, %v139_v27  ;;  %v146_v20 = vld [vmem:[#allocation2 + $0x2b0] sm:$0xff] }
  0x73   :  { %8080 = vmatpush3.bf16.msra.mxu1 %v10504_v58  ;;  %8054 = vmatpush1.bf16.msra.mxu0 %v10511_v35  ;;  %12405 = vst [vmem:[#allocation58_spill] sm:$0xff] %v10518_v1  ;;  %v129_v58 = vld [vmem:[#allocation2 + $0x228] sm:$0xff]  ;;  %12407 = vst [vmem:[#allocation60_spill] sm:$0xff] %v10524_v40 }
  0x74   :  { %8081 = vmatprep.subr.bf16.mxu1 %v12195_v0  ;;  %v10521_v13 = vpack.c.bf16 %v129_v58, %v126_v8  ;;  %8056 = vmatprep.subr.bf16.mxu0 %v10518_v1  ;;  %12408 = vst [vmem:[#allocation61_spill] sm:$0xff] %v10528_v30  ;;  %v137_v8 = vld [vmem:[#allocation2 + $0x268] sm:$0xff]  ;;  %12411 = vst [vmem:[#allocation64_spill] sm:$0xff] %v10538_v60 }
  0x75   :  { %v10534_v17 = vpack.c.bf16 %v137_v8, %v134_v42  ;;  %v10546_v8 = vpack.c.bf16 %v148_v38, %v145_v51  ;;  %v150_v38 = vld [vmem:[#allocation2 + $0x2d0] sm:$0xff]  ;;  %v153_v51 = vld [vmem:[#allocation2 + $0x2e8] sm:$0xff] }
  0x76   :  { %12406 = vst [vmem:[#allocation59_spill] sm:$0xff] %v10521_v13 }
  0x77   :  { %8083 = vmatpush3.bf16.msra.mxu1 %v10514_v47  ;;  %8058 = vmatpush1.bf16.msra.mxu0 %v10521_v13  ;;  %v135_v47 = vld [vmem:[#allocation2 + $0x258] sm:$0xff]  ;;  %12410 = vst [vmem:[#allocation63_spill] sm:$0xff] %v10534_v17  ;;  %12414 = vst [vmem:[#allocation67_spill] sm:$0xff] %v10546_v8 }
  0x78   :  { %8084 = vmatprep.subr.bf16.mxu1 %v12195_v0  ;;  %v10531_v58 = vpack.c.bf16 %v135_v47, %v132_v56  ;;  %8060 = vmatprep.subr.bf16.mxu0 %v10528_v30  ;;  %v143_v56 = vld [vmem:[#allocation2 + $0x298] sm:$0xff] }
  0x79   :  { %v10544_v42 = vpack.c.bf16 %v143_v56, %v140_v3  ;;  %v152_v56 = vld [vmem:[#allocation2 + $0x2e0] sm:$0xff] }
  0x7a   :  { %12409 = vst [vmem:[#allocation62_spill] sm:$0xff] %v10531_v58 }
  0x7b   :  { %8086 = vmatpush3.bf16.msra.mxu1 %v10524_v40  ;;  %8062 = vmatpush1.bf16.msra.mxu0 %v10531_v58  ;;  %v141_v40 = vld [vmem:[#allocation2 + $0x288] sm:$0xff]  ;;  %12413 = vst [vmem:[#allocation66_spill] sm:$0xff] %v10544_v42 }
  0x7c   :  { %8087 = vmatprep.subr.bf16.mxu1 %v12195_v0  ;;  %v10541_v47 = vpack.c.bf16 %v141_v40, %v138_v46  ;;  %8064 = vmatprep.subr.bf16.mxu0 %v10538_v60  ;;  %v154_v40 = vld [vmem:[#allocation2 + $0x2f0] sm:$0xff]  ;;  %v10553_v46 = vpack.c.bf16 %v149_v11, %v146_v20  ;;  %v10563_v11 = vpack.c.bf16 %v155_v52, %v152_v56  ;;  %v253_v52 = vld [vmem:[%s12155_s4] sm:$0x7] }
  0x7e   :  { %12412 = vst [vmem:[#allocation65_spill] sm:$0xff] %v10541_v47  ;;  %12416 = vst [vmem:[#allocation69_spill] sm:$0xff] %v10553_v46 }
  0x7f   :  { %8089 = vmatpush3.bf16.msra.mxu1 %v10534_v17  ;;  %v147_v17 = vld [vmem:[#allocation2 + $0x2b8] sm:$0xff]  ;;  %8066 = vmatpush1.bf16.msra.mxu0 %v10541_v47  ;;  %12420 = vst [vmem:[#allocation72_spill] sm:$0xff] %v10563_v11 }
  0x80   :  { %8090 = vmatprep.subr.bf16.mxu1 %v12195_v0  ;;  %v10549_v27 = vpack.c.bf16 %v147_v17, %v144_v25  ;;  %v151_v0 = vld [vmem:[#allocation2 + $0x2d8] sm:$0xff]  ;;  %8068 = vmatprep.subr.bf16.mxu0 %v10546_v8  ;;  %v209_v25 = vld [vmem:[#allocation4 + $0x1a0] sm:$0xff]  ;;  %v10559_v17 = vpack.c.bf16 %v153_v51, %v150_v38  ;;  %v281_v38 = vlaneseq }
  0x81   :  { %v10555_v3 = vpack.c.bf16 %v154_v40, %v151_v0  ;;  %v10565_v0 = vpack.c.bf16 %v209_v25, %v206_v43  ;;  %v256_v43 = vld [vmem:[%s12156_s5] sm:$0x7] }
  0x82   :  { %12415 = vst [vmem:[#allocation68_spill] sm:$0xff] %v10549_v27  ;;  %12419 = vst [vmem:[#allocation71_spill] sm:$0xff] %v10559_v17  ;;  %v282_v51 = vshrl.u32 %v281_v38, 7 }
  0x83   :  { %8092 = vmatpush3.bf16.msra.mxu1 %v10544_v42  ;;  %12417 = vst [vmem:[#allocation70_spill] sm:$0xff] %v10555_v3  ;;  %8070 = vmatpush1.bf16.msra.mxu0 %v10549_v27  ;;  %12421 = vst [vmem:[#allocation73_spill] sm:$0xff] %v10565_v0 }
  0x84   :  { %8093 = vmatprep.subr.bf16.mxu1 %v12418_v61  ;;  %8072 = vmatprep.subr.bf16.mxu0 %v10555_v3  ;;  %v10580_v56 = vsub.s32 1, %v282_v51 }
  0x86   :  { %12423 = vst [vmem:[#allocation75_spill] sm:$0xff] %v10580_v56  ;;  %v445_v38 = vrot.slane %v256_v43, %v10580_v56 }
  0x87   :  { %8095 = vmatpush3.bf16.msra.mxu1 %v10553_v46  ;;  %8074 = vmatpush1.bf16.msra.mxu0 %v10559_v17  ;;  %v10572_v46 = vsub.s32 0, %v282_v51 }
  0x88   :  { %8096 = vmatprep.subr.bf16.mxu1 %v12418_v61  ;;  %8100 = vmatprep.subr.bf16.mxu0 %v10565_v0 }
  0x89   :  { %12422 = vst [vmem:[#allocation74_spill] sm:$0xff] %v10572_v46  ;;  %v284_v25 = vrot.slane %v253_v52, %v10572_v46 }
  0x8b   :  { %8098 = vmatpush3.bf16.msra.mxu1 %v10563_v11  ;;  %v441_v11 = vrot.slane %v256_v43, %v10572_v46 }
  0x8c   :  { %8131 = vmatprep.subr.bf16.mxu1 %v12418_v61 }
  0x8d   :  { %v10586_v42 = vadd.f32 %v441_v11, %v284_v25 }
  0x8f   :  { %12424 = vst [vmem:[#allocation76_spill] sm:$0xff] %v10586_v42 }
 0x121   :  { %v433_v20 = vpop.f32.mrb[0].mxu1 }
 0x122   :  { %v6565_v40 = vpop.f32.mrb[1].mxu1 }
 0x123   :  { %v288_v40 = vrot.slane %v253_v52, %v10580_v56  ;;  %v10592_v56 = vsub.s32 2, %v282_v51 }
 0x125   :  { %v10588_v29 = vadd.f32 %v445_v38, %v288_v40  ;;  %12426 = vst [vmem:[#allocation78_spill] sm:$0xff] %v10592_v56  ;;  %v10595_v11 = vrot.slane %v256_v43, %v10592_v56  ;;  %v208_v40 = vld [vmem:[#allocation4 + $0x198] sm:$0xff]  ;;  %v207_v43 = vld [vmem:[#allocation4 + $0x190] sm:$0xff]  ;;  %v210_v38 = vld [vmem:[#allocation4 + $0x1a8] sm:$0xff] }
 0x127   :  { %12425 = vst [vmem:[#allocation77_spill] sm:$0xff] %v10588_v29  ;;  %12427 = vst [vmem:[#allocation79_spill] sm:$0xff] %v10595_v11 }
 0x13c   :  { %v519_v33 = vpop.f32.mrb[0].mxu0 }
 0x13d   :  { %v9916_v0 = vadd.f32 %v10586_v42, %v519_v33  ;;  %v521_v17 = vpop.f32.mrb[1].mxu0  ;;  %v10598_v33 = vrot.slane %v253_v52, %v10592_v56  ;;  %v212_v42 = vld [vmem:[#allocation4 + $0x1b8] sm:$0xff]  ;;  %v215_v52 = vld [vmem:[#allocation4 + $0x1d0] sm:$0xff] }
 0x13e   :  { %v9918_v27 = vadd.f32 %v10588_v29, %v521_v17 }
 0x13f   :  { %v5803_v3 = vmul.f32 -1.442695, %v9916_v0  ;;  %12428 = vst [vmem:[#allocation80_spill] sm:$0xff] %v10598_v33 }
 0x140   :  { %v5804_v8 = vmul.f32 -1.442695, %v9918_v27  ;;  %v434_v27 = vadd.f32 %v433_v20, %v10598_v33  ;;  %v211_v20 = vld [vmem:[#allocation4 + $0x1b0] sm:$0xff]  ;;  %v221_v33 = vld [vmem:[#allocation4 + $0x200] sm:$0xff] }
 0x141   :  { %10018 = vpow2.f32 %v5803_v3  ;;  %v590_v47 = vpop.f32.mrb[2].mxu1 }
 0x142   :  { %v6600_v60 = vpop.f32.mrb[3].mxu1  ;;  %10020 = vpow2.f32 %v5804_v8  ;;  %v591_v17 = vadd.f32 %v590_v47, %v10595_v11  ;;  %v10605_v11 = vpack.c.bf16 %v210_v38, %v207_v43  ;;  %v227_v43 = vld [vmem:[#allocation4 + $0x230] sm:$0xff]  ;;  %v12433_v38 = vmov 0.0  }
 0x14b   :  { %v10019_v46 = vpop.eup %10018 }
 0x14c   :  { %v598_v58 = vadd.f32 1.0, %v10019_v46  ;;  %v10021_v25 = vpop.eup %10020  ;;  %v205_v46 = vld [vmem:[#allocation4 + $0x180] sm:$0xff] }
 0x14d   :  { %v605_v0 = vadd.f32 1.0, %v10021_v25  ;;  %v10603_v47 = vpack.c.bf16 %v208_v40, %v205_v46  ;;  %v219_v46 = vld [vmem:[#allocation4 + $0x1f0] sm:$0xff]  ;;  %v224_v40 = vld [vmem:[#allocation4 + $0x218] sm:$0xff] }
 0x14e   :  { %10022 = vrcp.f32 %v598_v58 }
 0x14f   :  { %10024 = vrcp.f32 %v605_v0 }
 0x158   :  { %v10023_v3 = vpop.eup %10022 }
 0x159   :  { %v608_v60 = vmul.f32 %v10023_v3, %v591_v17  ;;  %v10025_v58 = vpop.eup %10024  ;;  %v10609_v17 = vpack.c.bf16 %v215_v52, %v212_v42  ;;  %v214_v3 = vld [vmem:[#allocation4 + $0x1c8] sm:$0xff] }
 0x15a   :  { %v611_v51 = vsub.f32 1.0, %v10025_v58  ;;  %v613_v25 = vmul.f32 %v10025_v58, %v10472_v28  ;;  %v220_v58 = vld [vmem:[#allocation4 + $0x1f8] sm:$0xff] }
 0x15b   :  { %v609_v8 = vadd.f32 %v608_v60, %v434_v27  ;;  %12429 = vst [vmem:[#allocation81_spill] sm:$0xff] %v10609_v17  ;;  %v213_v27 = vld [vmem:[#allocation4 + $0x1c0] sm:$0xff]  ;;  %v216_v60 = vld [vmem:[#allocation4 + $0x1d8] sm:$0xff] }
 0x15c   :  { %v10617_v28 = vpack.c.bf16 %v216_v60, %v213_v27  ;;  %v225_v27 = vld [vmem:[#allocation4 + $0x220] sm:$0xff]  ;;  %v228_v60 = vld [vmem:[#allocation4 + $0x238] sm:$0xff] }
 0x15d   :  { %10026 = vtanh.f32 %v609_v8  ;;  %v218_v8 = vld [vmem:[#allocation4 + $0x1e8] sm:$0xff] }
 0x15e   :  { %12431 = vst [vmem:[#allocation83_spill] sm:$0xff] %v10617_v28  ;;  %v10621_v42 = vpack.c.bf16 %v221_v33, %v218_v8  ;;  %v223_v33 = vld [vmem:[#allocation4 + $0x210] sm:$0xff]  ;;  %v230_v8 = vld [vmem:[#allocation4 + $0x248] sm:$0xff] }
 0x160   :  { %12432 = vst [vmem:[#allocation84_spill] sm:$0xff] %v10621_v42 }
 0x167   :  { %v10027_v29 = vpop.eup %10026 }
 0x168   :  { %v612_v56 = vmul.f32 %v10027_v29, %v611_v51  ;;  %v10615_v29 = vpack.c.bf16 %v214_v3, %v211_v20  ;;  %v222_v51 = vld [vmem:[#allocation4 + $0x208] sm:$0xff]  ;;  %v10634_v20 = vpack.c.bf16 %v227_v43, %v224_v40  ;;  %v232_v40 = vld [vmem:[#allocation4 + $0x258] sm:$0xff]  ;;  %v231_v43 = vld [vmem:[#allocation4 + $0x250] sm:$0xff] }
 0x169   :  { %v226_v3 = vld [vmem:[#allocation4 + $0x228] sm:$0xff] }
 0x16a   :  { %v10607_v0 = vadd.f32 %v613_v25, %v612_v56  ;;  %12430 = vst [vmem:[#allocation82_spill] sm:$0xff] %v10615_v29  ;;  %v217_v56 = vld [vmem:[#allocation4 + $0x1e0] sm:$0xff]  ;;  %v10630_v25 = vpack.c.bf16 %v222_v51, %v219_v46  ;;  %12436 = vst [vmem:[#allocation87_spill] sm:$0xff] %v10634_v20 }
 0x16b   :  { %v10628_v52 = vpack.c.bf16 %v220_v58, %v217_v56  ;;  %v10638_v56 = vpack.c.bf16 %v226_v3, %v223_v33  ;;  %v10640_v58 = vpack.c.bf16 %v228_v60, %v225_v27  ;;  %v229_v46 = vld [vmem:[#allocation4 + $0x240] sm:$0xff]  ;;  %v235_v27 = vld [vmem:[#allocation4 + $0x270] sm:$0xff]  ;;  %v238_v60 = vld [vmem:[#allocation4 + $0x288] sm:$0xff] }
 0x16c   :  { %696 = vmatmul.mubr.f32.vlgmr.msra.gmra.mrb[2].mxu0 %v10607_v0  ;;  %6634 = vmatmul.mubr.f32.vlgmr.msra.gmra.mrb[4].mxu1 %v10607_v0  ;;  %12435 = vst [vmem:[#allocation86_spill] sm:$0xff] %v10630_v25  ;;  %v10648_v33 = vpack.c.bf16 %v232_v40, %v229_v46  ;;  %v10658_v46 = vpack.c.bf16 %v238_v60, %v235_v27  ;;  %v241_v40 = vld [vmem:[#allocation4 + $0x2a0] sm:$0xff]  ;;  %v247_v60 = vld [vmem:[#allocation4 + $0x2d0] sm:$0xff] }
 0x16d   :  { %8102 = vmatpush1.bf16.msra.mxu0 %v10603_v47  ;;  %8133 = vmatpush3.bf16.msra.mxu1 %v10605_v11  ;;  %12434 = vst [vmem:[#allocation85_spill] sm:$0xff] %v10628_v52  ;;  %12437 = vst [vmem:[#allocation88_spill] sm:$0xff] %v10638_v56 }
 0x16e   :  { %8104 = vmatprep.subr.bf16.mxu0 %v10609_v17  ;;  %8134 = vmatprep.subr.bf16.mxu1 %v12418_v61  ;;  %v233_v17 = vld [vmem:[#allocation4 + $0x260] sm:$0xff]  ;;  %12438 = vst [vmem:[#allocation89_spill] sm:$0xff] %v10640_v58  ;;  %12441 = vst [vmem:[#allocation92_spill] sm:$0xff] %v10658_v46 }
 0x16f   :  { %852 = vmatprep.mubr.f32.mxu0 %v12433_v38  ;;  %6668 = vmatprep.mubr.msk.f32.mxu1 %vm10234_vm0, %v12433_v38  ;;  %v10644_v51 = vpack.c.bf16 %v233_v17, %v230_v8  ;;  %v237_v8 = vld [vmem:[#allocation4 + $0x280] sm:$0xff] }
 0x171   :  { %8106 = vmatpush1.bf16.msra.mxu0 %v10615_v29  ;;  %8136 = vmatpush3.bf16.msra.mxu1 %v10617_v28  ;;  %12439 = vst [vmem:[#allocation90_spill] sm:$0xff] %v10644_v51  ;;  %v236_v28 = vld [vmem:[#allocation4 + $0x278] sm:$0xff]  ;;  %v239_v29 = vld [vmem:[#allocation4 + $0x290] sm:$0xff] }
 0x172   :  { %8108 = vmatprep.subr.bf16.mxu0 %v10621_v42  ;;  %8137 = vmatprep.subr.bf16.mxu1 %v12418_v61  ;;  %v234_v42 = vld [vmem:[#allocation4 + $0x268] sm:$0xff]  ;;  %v10654_v17 = vpack.c.bf16 %v239_v29, %v236_v28  ;;  %v244_v28 = vld [vmem:[#allocation4 + $0x2b8] sm:$0xff] }
 0x173   :  { %v10650_v3 = vpack.c.bf16 %v234_v42, %v231_v43  ;;  %v243_v43 = vld [vmem:[#allocation4 + $0x2b0] sm:$0xff]  ;;  %v10668_v27 = vpack.c.bf16 %v244_v28, %v241_v40  ;;  %v12444_v28 = vld [vmem:[#allocation65_spill] sm:$0xff] }
 0x174   :  { %12440 = vst [vmem:[#allocation91_spill] sm:$0xff] %v10654_v17 }
 0x175   :  { %8110 = vmatpush1.bf16.msra.mxu0 %v10628_v52  ;;  %8139 = vmatpush3.bf16.msra.mxu1 %v10630_v25  ;;  %v242_v25 = vld [vmem:[#allocation4 + $0x2a8] sm:$0xff]  ;;  %v245_v52 = vld [vmem:[#allocation4 + $0x2c0] sm:$0xff] }
 0x176   :  { %8112 = vmatprep.subr.bf16.mxu0 %v10634_v20  ;;  %8140 = vmatprep.subr.bf16.mxu1 %v12418_v61  ;;  %v240_v20 = vld [vmem:[#allocation4 + $0x298] sm:$0xff]  ;;  %v10664_v29 = vpack.c.bf16 %v245_v52, %v242_v25  ;;  %v250_v25 = vld [vmem:[#allocation4 + $0x2e8] sm:$0xff] }
 0x177   :  { %v10660_v42 = vpack.c.bf16 %v240_v20, %v237_v8  ;;  %v249_v8 = vld [vmem:[#allocation4 + $0x2e0] sm:$0xff] }
 0x179   :  { %8114 = vmatpush1.bf16.msra.mxu0 %v10638_v56  ;;  %8142 = vmatpush3.bf16.msra.mxu1 %v10640_v58  ;;  %v248_v58 = vld [vmem:[#allocation4 + $0x2d8] sm:$0xff]  ;;  %v251_v56 = vld [vmem:[#allocation4 + $0x2f0] sm:$0xff] }
 0x17a   :  { %8116 = vmatprep.subr.bf16.mxu0 %v10644_v51  ;;  %8143 = vmatprep.subr.bf16.mxu1 %v12418_v61  ;;  %v246_v51 = vld [vmem:[#allocation4 + $0x2c8] sm:$0xff]  ;;  %v10674_v52 = vpack.c.bf16 %v251_v56, %v248_v58 }
 0x17b   :  { %v10670_v20 = vpack.c.bf16 %v246_v51, %v243_v43  ;;  %v10689_v56 = vld [vmem:[%s12152_s1 + $0x8] sm:$0xff]  ;;  %v12442_v51 = vld [vmem:[#allocation62_spill] sm:$0xff]  ;;  %v12445_v43 = vld [vmem:[#allocation67_spill] sm:$0xff] }
 0x17c   :  { %v10716_v58 = vld [vmem:[%s12151_s0 + $0x8] sm:$0xff] }
 0x17d   :  { %8118 = vmatpush1.bf16.msra.mxu0 %v10648_v33  ;;  %8145 = vmatpush3.bf16.msra.mxu1 %v10650_v3 }
 0x17e   :  { %8120 = vmatprep.subr.bf16.mxu0 %v10654_v17  ;;  %8146 = vmatprep.subr.bf16.mxu1 %v12418_v61  ;;  %v252_v17 = vld [vmem:[#allocation4 + $0x2f8] sm:$0xff] }
 0x17f   :  { %v10680_v40 = vpack.c.bf16 %v252_v17, %v249_v8  ;;  %v12443_v17 = vld [vmem:[#allocation64_spill] sm:$0xff]  ;;  %v12448_v8 = vld [vmem:[#allocation71_spill] sm:$0xff] }
 0x181   :  { %8122 = vmatpush1.bf16.msra.mxu0 %v10658_v46  ;;  %8148 = vmatpush3.bf16.msra.mxu1 %v10660_v42  ;;  %v10678_v46 = vpack.c.bf16 %v250_v25, %v247_v60  ;;  %v12446_v60 = vld [vmem:[#allocation68_spill] sm:$0xff]  ;;  %v12447_v25 = vld [vmem:[#allocation70_spill] sm:$0xff] }
 0x182   :  { %8124 = vmatprep.subr.bf16.mxu0 %v10664_v29  ;;  %8149 = vmatprep.subr.bf16.mxu1 %v12418_v61 }
 0x185   :  { %8126 = vmatpush1.bf16.msra.mxu0 %v10668_v27  ;;  %8151 = vmatpush3.bf16.msra.mxu1 %v10670_v20 }
 0x186   :  { %8128 = vmatprep.subr.bf16.mxu0 %v10674_v52  ;;  %8152 = vmatprep.subr.bf16.mxu1 %v12418_v61 }
 0x189   :  { %8130 = vmatpush1.bf16.msra.mxu0 %v10678_v46  ;;  %8154 = vmatpush3.bf16.msra.mxu1 %v10680_v40 }
 0x18a   :  { %8180 = vmatprep.subr.bf16.mxu1 %v10313_v5  ;;  %8155 = vmatprep.subr.bf16.mxu0 %v12418_v61 }
 0x18c   :  { %853 = vmatmul.mubr.f32.vlgmr.msra.gmra.mrb[2].mxu0 %v10689_v56  ;;  %6669 = vmatmul.mubr.f32.vlgmr.msra.gmra.mrb[6].mxu1 %v10689_v56 }
 0x18d   :  { %8182 = vmatpush1.bf16.msra.mxu1 %v10315_v9  ;;  %1093 = vmatprep.mubr.f32.mxu1 %v12433_v38 }
 0x18e   :  { %8184 = vmatprep.subr.bf16.mxu1 %v10317_v10  ;;  %6703 = vmatprep.mubr.msk.f32.mxu0 %vm10234_vm0, %v12433_v38 }
 0x191   :  { %8186 = vmatpush1.bf16.msra.mxu1 %v10321_v15 }
 0x192   :  { %8188 = vmatprep.subr.bf16.mxu1 %v10324_v16 }
 0x195   :  { %8190 = vmatpush1.bf16.msra.mxu1 %v10327_v21 }
 0x196   :  { %8192 = vmatprep.subr.bf16.mxu1 %v10330_v23 }
 0x199   :  { %8194 = vmatpush1.bf16.msra.mxu1 %v10335_v32 }
 0x19a   :  { %8196 = vmatprep.subr.bf16.mxu1 %v10341_v34 }
 0x19d   :  { %8198 = vmatpush1.bf16.msra.mxu1 %v10345_v41 }
 0x19e   :  { %8200 = vmatprep.subr.bf16.mxu1 %v10351_v44 }
 0x1a1   :  { %8202 = vmatpush1.bf16.msra.mxu1 %v10355_v50 }
 0x1a2   :  { %8204 = vmatprep.subr.bf16.mxu1 %v10361_v53 }
 0x1a5   :  { %8206 = vmatpush1.bf16.msra.mxu1 %v10365_v59 }
 0x1a6   :  { %8208 = vmatprep.subr.bf16.mxu1 %v10371_v62 }
 0x1a9   :  { %8210 = vmatpush1.bf16.msra.mxu1 %v10375_v7 }
 0x1aa   :  { %8236 = vmatprep.subr.bf16.mxu1 %v10381_v12 }
 0x1ac   :  { %1094 = vmatmul.mubr.f32.vlgmr.msra.gmra.mrb[8].mxu1 %v10716_v58 }
 0x1ad   :  { %8238 = vmatpush1.bf16.msra.mxu1 %v10388_v22  ;;  %1234 = vmatprep.mubr.f32.mxu1 %v12433_v38 }
 0x1ae   :  { %8240 = vmatprep.subr.bf16.mxu1 %v10394_v26 }
 0x1b1   :  { %8242 = vmatpush1.bf16.msra.mxu1 %v10398_v36 }
 0x1b2   :  { %8244 = vmatprep.subr.bf16.mxu1 %v10404_v39 }
 0x1b5   :  { %8246 = vmatpush1.bf16.msra.mxu1 %v10409_v48 }
 0x1b6   :  { %8248 = vmatprep.subr.bf16.mxu1 %v10415_v54 }
 0x1b9   :  { %8250 = vmatpush1.bf16.msra.mxu1 %v10419_v63 }
 0x1ba   :  { %8252 = vmatprep.subr.bf16.mxu1 %v10425_v4 }
 0x1bd   :  { %8254 = vmatpush1.bf16.msra.mxu1 %v10431_v18 }
 0x1be   :  { %8256 = vmatprep.subr.bf16.mxu1 %v10437_v24 }
 0x1c1   :  { %8258 = vmatpush1.bf16.msra.mxu1 %v10441_v37 }
 0x1c2   :  { %8260 = vmatprep.subr.bf16.mxu1 %v10447_v45 }
 0x1c5   :  { %8262 = vmatpush1.bf16.msra.mxu1 %v10451_v57 }
 0x1c6   :  { %8264 = vmatprep.subr.bf16.mxu1 %v10457_v2 }
 0x1c9   :  { %8266 = vmatpush1.bf16.msra.mxu1 %v10461_v14 }
 0x1ca   :  { %8292 = vmatprep.subr.bf16.mxu1 %v10489_v49 }
 0x1cc   :  { %1235 = vmatmul.mubr.f32.vlgmr.msra.gmra.mrb[8].mxu1 %v10607_v0 }
 0x1cd   :  { %8294 = vmatpush1.bf16.msra.mxu1 %v10491_v6  ;;  %1396 = vmatprep.mubr.f32.mxu1 %v12433_v38  ;;  %v12456_v6 = vld [vmem:[#allocation74_spill] sm:$0xff] }
 0x1ce   :  { %8296 = vmatprep.subr.bf16.mxu1 %v10498_v31  ;;  %v5800_v31 = vld [vmem:[%s12155_s4 + $0x3] sm:$0x7] }
 0x1cf   :  { %v619_v49 = vrot.slane %v5800_v31, %v12456_v6 }
 0x1d1   :  { %8298 = vmatpush1.bf16.msra.mxu1 %v10501_v55  ;;  %v274_v55 = vld [vmem:[%s12157_s6 + $0x78] sm:$0xff] }
 0x1d2   :  { %8300 = vmatprep.subr.bf16.mxu1 %v10508_v19  ;;  %v273_v19 = vld [vmem:[%s12157_s6 + $0x70] sm:$0xff] }
 0x1d5   :  { %8302 = vmatpush1.bf16.msra.mxu1 %v10511_v35  ;;  %v12449_v35 = vld [vmem:[#allocation73_spill] sm:$0xff] }
 0x1d6   :  { %8304 = vmatprep.subr.bf16.mxu1 %v10518_v1 }
 0x1d9   :  { %8306 = vmatpush1.bf16.msra.mxu1 %v10521_v13  ;;  %v271_v13 = vld [vmem:[%s12157_s6 + $0x60] sm:$0xff] }
 0x1da   :  { %8308 = vmatprep.subr.bf16.mxu1 %v10528_v30  ;;  %v259_v30 = vld [vmem:[%s12157_s6] sm:$0xff] }
 0x1dd   :  { %8310 = vmatpush1.bf16.msra.mxu1 %v12442_v51 }
 0x1de   :  { %8312 = vmatprep.subr.bf16.mxu1 %v12443_v17  ;;  %v260_v17 = vld [vmem:[%s12157_s6 + $0x8] sm:$0xff] }
 0x1df   :  { %v10761_v51 = vpack.c.bf16 %v260_v17, %v259_v30  ;;  %v264_v30 = vld [vmem:[%s12157_s6 + $0x28] sm:$0xff] }
 0x1e1   :  { %8314 = vmatpush1.bf16.msra.mxu1 %v12444_v28  ;;  %8157 = vmatpush3.bf16.msra.mxu0 %v10761_v51 }
 0x1e2   :  { %8316 = vmatprep.subr.bf16.mxu1 %v12445_v43  ;;  %8158 = vmatprep.subr.bf16.mxu0 %v12418_v61 }
 0x1e5   :  { %8318 = vmatpush1.bf16.msra.mxu1 %v12446_v60  ;;  %v263_v60 = vld [vmem:[%s12157_s6 + $0x20] sm:$0xff] }
 0x1e6   :  { %8320 = vmatprep.subr.bf16.mxu1 %v12447_v25  ;;  %v10780_v17 = vpack.c.bf16 %v264_v30, %v263_v60  ;;  %v267_v60 = vld [vmem:[%s12157_s6 + $0x40] sm:$0xff]  ;;  %v268_v30 = vld [vmem:[%s12157_s6 + $0x48] sm:$0xff] }
 0x1e7   :  { %v10801_v28 = vpack.c.bf16 %v268_v30, %v267_v60  ;;  %v272_v60 = vld [vmem:[%s12157_s6 + $0x68] sm:$0xff] }
 0x1e8   :  { %12450 = vst [vmem:[#allocation93_spill] sm:$0xff] %v10780_v17  ;;  %v10820_v30 = vpack.c.bf16 %v272_v60, %v271_v13  ;;  %v5801_v60 = vld [vmem:[%s12156_s5 + $0x3] sm:$0x7] }
 0x1e9   :  { %8322 = vmatpush1.bf16.msra.mxu1 %v12448_v8  ;;  %v261_v8 = vld [vmem:[%s12157_s6 + $0x10] sm:$0xff]  ;;  %12452 = vst [vmem:[#allocation95_spill] sm:$0xff] %v10801_v28 }
 0x1ea   :  { %8348 = vmatprep.subr.bf16.mxu1 %v12449_v35  ;;  %v262_v35 = vld [vmem:[%s12157_s6 + $0x18] sm:$0xff]  ;;  %12454 = vst [vmem:[#allocation97_spill] sm:$0xff] %v10820_v30 }
 0x1eb   :  { %v10771_v25 = vpack.c.bf16 %v262_v35, %v261_v8  ;;  %v265_v35 = vld [vmem:[%s12157_s6 + $0x30] sm:$0xff]  ;;  %v266_v8 = vld [vmem:[%s12157_s6 + $0x38] sm:$0xff] }
 0x1ec   :  { %v10791_v43 = vpack.c.bf16 %v266_v8, %v265_v35  ;;  %v269_v35 = vld [vmem:[%s12157_s6 + $0x50] sm:$0xff]  ;;  %v270_v8 = vld [vmem:[%s12157_s6 + $0x58] sm:$0xff] }
 0x1ed   :  { %8160 = vmatpush3.bf16.msra.mxu0 %v10771_v25  ;;  %v10814_v1 = vpack.c.bf16 %v270_v8, %v269_v35  ;;  %v10830_v35 = vpack.c.bf16 %v274_v55, %v273_v19  ;;  %v776_v55 = vrot.slane %v5801_v60, %v12456_v6  ;;  %v12457_v19 = vld [vmem:[#allocation75_spill] sm:$0xff] }
 0x1ee   :  { %8161 = vmatprep.subr.bf16.mxu0 %v12418_v61  ;;  %12451 = vst [vmem:[#allocation94_spill] sm:$0xff] %v10791_v43  ;;  %v623_v14 = vrot.slane %v5800_v31, %v12457_v19  ;;  %v780_v2 = vrot.slane %v5801_v60, %v12457_v19  ;;  %v12459_v19 = vld [vmem:[#allocation78_spill] sm:$0xff] }
 0x1ef   :  { %12453 = vst [vmem:[#allocation96_spill] sm:$0xff] %v10814_v1  ;;  %12455 = vst [vmem:[#allocation98_spill] sm:$0xff] %v10830_v35  ;;  %v10845_v57 = vadd.f32 %v776_v55, %v619_v49  ;;  %v10852_v49 = vrot.slane %v5801_v60, %v12459_v19 }
 0x1f1   :  { %8163 = vmatpush3.bf16.msra.mxu0 %v10780_v17 }
 0x1f2   :  { %8164 = vmatprep.subr.bf16.mxu0 %v12418_v61 }
 0x1f5   :  { %8166 = vmatpush3.bf16.msra.mxu0 %v10791_v43 }
 0x1f6   :  { %8167 = vmatprep.subr.bf16.mxu0 %v12418_v61 }
 0x1f9   :  { %8169 = vmatpush3.bf16.msra.mxu0 %v10801_v28 }
 0x1fa   :  { %8170 = vmatprep.subr.bf16.mxu0 %v12418_v61 }
 0x1fd   :  { %8172 = vmatpush3.bf16.msra.mxu0 %v10814_v1 }
 0x1fe   :  { %8173 = vmatprep.subr.bf16.mxu0 %v12418_v61 }
 0x201   :  { %8175 = vmatpush3.bf16.msra.mxu0 %v10820_v30 }
 0x202   :  { %8176 = vmatprep.subr.bf16.mxu0 %v12418_v61 }
 0x205   :  { %8178 = vmatpush3.bf16.msra.mxu0 %v10830_v35 }
 0x206   :  { %8211 = vmatprep.subr.bf16.mxu0 %v12418_v61 }
 0x23f   :  { %v768_v13 = vpop.f32.mrb[4].mxu1 }
 0x240   :  { %v6635_v8 = vpop.f32.mrb[5].mxu1 }
 0x241   :  { %v10847_v8 = vadd.f32 %v780_v2, %v623_v14  ;;  %v10855_v2 = vrot.slane %v5800_v31, %v12459_v19  ;;  %v12461_v31 = vld [vmem:[#allocation8_spill] sm:$0xff] }
 0x243   :  { %12458 = vst [vmem:[#allocation74_spill] sm:$0xff] %v10847_v8  ;;  %12460 = vst [vmem:[#allocation75_spill] sm:$0xff] %v10855_v2 }
 0x25f   :  { %v854_v45 = vpop.f32.mrb[2].mxu0  ;;  %v925_v37 = vpop.f32.mrb[6].mxu1 }
 0x260   :  { %v9920_v24 = vadd.f32 %v10845_v57, %v854_v45  ;;  %v856_v18 = vpop.f32.mrb[3].mxu0  ;;  %v6670_v4 = vpop.f32.mrb[7].mxu1  ;;  %v926_v45 = vadd.f32 %v925_v37, %v10852_v49  ;;  %v12462_v37 = vld [vmem:[#allocation10_spill] sm:$0xff] }
 0x261   :  { %v9922_v54 = vadd.f32 %v10847_v8, %v856_v18 }
 0x262   :  { %v5805_v63 = vmul.f32 -1.442695, %v9920_v24  ;;  %v769_v24 = vadd.f32 %v768_v13, %v10855_v2  ;;  %v12463_v13 = vld [vmem:[#allocation13_spill] sm:$0xff] }
 0x263   :  { %v5806_v48 = vmul.f32 -1.442695, %v9922_v54 }
 0x264   :  { %10028 = vpow2.f32 %v5805_v63 }
 0x265   :  { %10030 = vpow2.f32 %v5806_v48 }
 0x26e   :  { %v10029_v6 = vpop.eup %10028 }
 0x26f   :  { %v933_v39 = vadd.f32 1.0, %v10029_v6  ;;  %v10031_v55 = vpop.eup %10030 }
 0x270   :  { %v940_v14 = vadd.f32 1.0, %v10031_v55  ;;  %v12465_v55 = vld [vmem:[#allocation19_spill] sm:$0xff] }
 0x271   :  { %10032 = vrcp.f32 %v933_v39 }
 0x272   :  { %10034 = vrcp.f32 %v940_v14 }
 0x27b   :  { %v10033_v4 = vpop.eup %10032 }
 0x27c   :  { %v943_v63 = vmul.f32 %v10033_v4, %v926_v45  ;;  %v10035_v48 = vpop.eup %10034  ;;  %v12466_v45 = vld [vmem:[#allocation22_spill] sm:$0xff]  ;;  %v12467_v4 = vld [vmem:[#allocation25_spill] sm:$0xff] }
 0x27d   :  { %v946_v18 = vsub.f32 1.0, %v10035_v48  ;;  %v948_v60 = vmul.f32 %v10035_v48, %v10689_v56  ;;  %v12464_v56 = vld [vmem:[#allocation16_spill] sm:$0xff]  ;;  %v12471_v48 = vld [vmem:[#allocation37_spill] sm:$0xff] }
 0x27e   :  { %v944_v54 = vadd.f32 %v943_v63, %v769_v24  ;;  %v12468_v24 = vld [vmem:[#allocation28_spill] sm:$0xff]  ;;  %v12469_v63 = vld [vmem:[#allocation31_spill] sm:$0xff] }
 0x280   :  { %10036 = vtanh.f32 %v944_v54  ;;  %v12470_v54 = vld [vmem:[#allocation34_spill] sm:$0xff] }
 0x28a   :  { %v10037_v39 = vpop.eup %10036 }
 0x28b   :  { %v947_v6 = vmul.f32 %v10037_v39, %v946_v18  ;;  %v12472_v18 = vld [vmem:[#allocation40_spill] sm:$0xff]  ;;  %v12474_v39 = vld [vmem:[#allocation46_spill] sm:$0xff] }
 0x28d   :  { %v10860_v8 = vadd.f32 %v948_v60, %v947_v6  ;;  %v12475_v6 = vld [vmem:[#allocation47_spill] sm:$0xff]  ;;  %v12476_v60 = vld [vmem:[#allocation48_spill] sm:$0xff] }
 0x28f   :  { %6704 = vmatmul.mubr.f32.vlgmr.msra.gmra.mrb[4].mxu0 %v10860_v8 }
 0x290   :  { %8213 = vmatpush3.bf16.msra.mxu0 %v12461_v31  ;;  %6738 = vmatprep.mubr.msk.f32.mxu0 %vm10234_vm0, %v12433_v38 }
 0x291   :  { %8214 = vmatprep.subr.bf16.mxu0 %v12418_v61 }
 0x294   :  { %8216 = vmatpush3.bf16.msra.mxu0 %v12462_v37 }
 0x295   :  { %8217 = vmatprep.subr.bf16.mxu0 %v12418_v61 }
 0x298   :  { %8219 = vmatpush3.bf16.msra.mxu0 %v12463_v13 }
 0x299   :  { %8220 = vmatprep.subr.bf16.mxu0 %v12418_v61 }
 0x29c   :  { %8222 = vmatpush3.bf16.msra.mxu0 %v12464_v56 }
 0x29d   :  { %8223 = vmatprep.subr.bf16.mxu0 %v12418_v61 }
 0x29f   :  { %v1236_v19 = vpop.f32.mrb[8].mxu1 }
 0x2a0   :  { %8225 = vmatpush3.bf16.msra.mxu0 %v12465_v55  ;;  %v1238_v14 = vpop.f32.mrb[9].mxu1 }
 0x2a1   :  { %8226 = vmatprep.subr.bf16.mxu0 %v12418_v61 }
 0x2a4   :  { %8228 = vmatpush3.bf16.msra.mxu0 %v12466_v45 }
 0x2a5   :  { %8229 = vmatprep.subr.bf16.mxu0 %v12418_v61 }
 0x2a8   :  { %8231 = vmatpush3.bf16.msra.mxu0 %v12467_v4  ;;  %v12487_v4 = vld [vmem:[#allocation77_spill] sm:$0xff] }
 0x2a9   :  { %8232 = vmatprep.subr.bf16.mxu0 %v12418_v61  ;;  %v9926_v45 = vadd.f32 %v12487_v4, %v1238_v14 }
 0x2ab   :  { %v5810_v55 = vmul.f32 -1.442695, %v9926_v45 }
 0x2ac   :  { %8234 = vmatpush3.bf16.msra.mxu0 %v12468_v24 }
 0x2ad   :  { %8267 = vmatprep.subr.bf16.mxu0 %v12418_v61 }
 0x2af   :  { %6739 = vmatmul.mubr.f32.vlgmr.msra.gmra.mrb[6].mxu0 %v10716_v58  ;;  %v12473_v58 = vld [vmem:[#allocation43_spill] sm:$0xff] }
 0x2b0   :  { %8269 = vmatpush3.bf16.msra.mxu0 %v12469_v63  ;;  %6773 = vmatprep.mubr.msk.f32.mxu0 %vm10234_vm0, %v12433_v38 }
 0x2b1   :  { %8270 = vmatprep.subr.bf16.mxu0 %v12418_v61 }
 0x2b4   :  { %8272 = vmatpush3.bf16.msra.mxu0 %v12470_v54 }
 0x2b5   :  { %8273 = vmatprep.subr.bf16.mxu0 %v12418_v61 }
 0x2b8   :  { %8275 = vmatpush3.bf16.msra.mxu0 %v12471_v48  ;;  %v12483_v48 = vld [vmem:[#allocation69_spill] sm:$0xff] }
 0x2b9   :  { %8276 = vmatprep.subr.bf16.mxu0 %v12418_v61 }
 0x2bc   :  { %8278 = vmatpush3.bf16.msra.mxu0 %v12472_v18  ;;  %v12477_v18 = vld [vmem:[#allocation51_spill] sm:$0xff] }
 0x2bd   :  { %8279 = vmatprep.subr.bf16.mxu0 %v12418_v61 }
 0x2c0   :  { %8281 = vmatpush3.bf16.msra.mxu0 %v12473_v58  ;;  %v12481_v58 = vld [vmem:[#allocation63_spill] sm:$0xff] }
 0x2c1   :  { %8282 = vmatprep.subr.bf16.mxu0 %v12418_v61 }
 0x2c4   :  { %8284 = vmatpush3.bf16.msra.mxu0 %v12474_v39  ;;  %v12478_v39 = vld [vmem:[#allocation54_spill] sm:$0xff] }
 0x2c5   :  { %8285 = vmatprep.subr.bf16.mxu0 %v12418_v61 }
 0x2c8   :  { %8287 = vmatpush3.bf16.msra.mxu0 %v12475_v6  ;;  %v12479_v6 = vld [vmem:[#allocation57_spill] sm:$0xff] }
 0x2c9   :  { %8288 = vmatprep.subr.bf16.mxu0 %v12418_v61 }
 0x2cc   :  { %8290 = vmatpush3.bf16.msra.mxu0 %v12476_v60  ;;  %v12480_v60 = vld [vmem:[#allocation60_spill] sm:$0xff] }
 0x2cd   :  { %8323 = vmatprep.subr.bf16.mxu0 %v12418_v61 }
 0x2cf   :  { %6774 = vmatmul.mubr.f32.vlgmr.msra.gmra.mrb[8].mxu0 %v10607_v0 }
 0x2d0   :  { %8325 = vmatpush3.bf16.msra.mxu0 %v12477_v18  ;;  %6808 = vmatprep.mubr.msk.f32.mxu0 %vm10234_vm0, %v12433_v38  ;;  %v12482_v18 = vld [vmem:[#allocation66_spill] sm:$0xff] }
 0x2d1   :  { %8326 = vmatprep.subr.bf16.mxu0 %v12418_v61 }
 0x2d4   :  { %8328 = vmatpush3.bf16.msra.mxu0 %v12478_v39  ;;  %v12484_v39 = vld [vmem:[#allocation72_spill] sm:$0xff] }
 0x2d5   :  { %8329 = vmatprep.subr.bf16.mxu0 %v12418_v61 }
 0x2d8   :  { %8331 = vmatpush3.bf16.msra.mxu0 %v12479_v6 }
 0x2d9   :  { %8332 = vmatprep.subr.bf16.mxu0 %v12418_v61 }
 0x2dc   :  { %8334 = vmatpush3.bf16.msra.mxu0 %v12480_v60  ;;  %v10922_v60 = vld [vmem:[%s12158_s7] ss:$0 sm:$0xff] }
 0x2dd   :  { %8335 = vmatprep.subr.bf16.mxu0 %v12418_v61  ;;  %12485 = vst [vmem:[#allocation78_spill] sm:$0xff] %v10922_v60 }
 0x2e0   :  { %8337 = vmatpush3.bf16.msra.mxu0 %v12481_v58 }
 0x2e1   :  { %8338 = vmatprep.subr.bf16.mxu0 %v12418_v61 }
 0x2e4   :  { %8340 = vmatpush3.bf16.msra.mxu0 %v12482_v18 }
 0x2e5   :  { %8341 = vmatprep.subr.bf16.mxu0 %v12418_v61 }
 0x2e8   :  { %8343 = vmatpush3.bf16.msra.mxu0 %v12483_v48  ;;  %v12486_v48 = vld [vmem:[#allocation76_spill] sm:$0xff] }
 0x2e9   :  { %8344 = vmatprep.subr.bf16.mxu0 %v12418_v61  ;;  %v9924_v18 = vadd.f32 %v12486_v48, %v1236_v19  ;;  %v12489_v19 = vld [vmem:[#allocation80_spill] sm:$0xff] }
 0x2ec   :  { %8346 = vmatpush3.bf16.msra.mxu0 %v12484_v39  ;;  %v5809_v39 = vmul.f32 -1.442695, %v9924_v18 }
 0x2ed   :  { %8379 = vmatprep.subr.bf16.mxu0 %v12418_v61 }
 0x2ee   :  { %10038 = vpow2.f32 %v5809_v39 }
 0x2ef   :  { %10040 = vpow2.f32 %v5810_v55  ;;  %v12494_v55 = vld [vmem:[#allocation85_spill] sm:$0xff] }
 0x2f8   :  { %v10039_v56 = vpop.eup %10038 }
 0x2f9   :  { %v1315_v13 = vadd.f32 1.0, %v10039_v56  ;;  %v10041_v37 = vpop.eup %10040 }
 0x2fb   :  { %10042 = vrcp.f32 %v1315_v13 }
 0x362   :  { %v1022_v58 = vpop.f32.mrb[4].mxu0 }
 0x363   :  { %v1023_v6 = vadd.f32 %v10922_v60, %v1022_v58  ;;  %v6705_v54 = vpop.f32.mrb[5].mxu0  ;;  %v1322_v58 = vadd.f32 1.0, %v10041_v37  ;;  %v12488_v60 = vld [vmem:[#allocation79_spill] sm:$0xff]  ;;  %v12493_v37 = vld [vmem:[#allocation84_spill] sm:$0xff] }
 0x365   :  { %1026 = vst [vmem:[%s12159_s8] sm:$0xff] %v1023_v6  ;;  %v10043_v6 = vpop.eup %10042  ;;  %10044 = vrcp.f32 %v1322_v58  ;;  %v12498_v58 = vld [vmem:[#allocation89_spill] sm:$0xff] }
 0x36f   :  { %v10045_v39 = vpop.eup %10044 }
 0x370   :  { %v1328_v14 = vsub.f32 1.0, %v10045_v39  ;;  %v1330_v56 = vmul.f32 %v10045_v39, %v10607_v0  ;;  %v12491_v0 = vld [vmem:[#allocation82_spill] sm:$0xff]  ;;  %v12502_v39 = vld [vmem:[#allocation29_spill] sm:$0xff] }
 0x382   :  { %v1166_v63 = vpop.f32.mrb[6].mxu0 }
 0x383   :  { %v6740_v24 = vpop.f32.mrb[7].mxu0  ;;  %v1167_v48 = vadd.f32 %v1166_v63, %v12489_v19  ;;  %v12496_v63 = vld [vmem:[#allocation87_spill] sm:$0xff] }
 0x3a2   :  { %v1307_v54 = vpop.f32.mrb[8].mxu0 }
 0x3a3   :  { %v1308_v31 = vadd.f32 %v1307_v54, %v12488_v60  ;;  %v6775_v2 = vpop.f32.mrb[9].mxu0  ;;  %v12499_v54 = vld [vmem:[#allocation90_spill] sm:$0xff] }
 0x3a4   :  { %v12490_v2 = vld [vmem:[#allocation81_spill] sm:$0xff] }
 0x3a5   :  { %v1325_v24 = vmul.f32 %v10043_v6, %v1308_v31  ;;  %v12492_v31 = vld [vmem:[#allocation83_spill] sm:$0xff] }
 0x3a6   :  { %v12500_v6 = vld [vmem:[#allocation91_spill] sm:$0xff] }
 0x3a7   :  { %v1326_v18 = vadd.f32 %v1325_v24, %v1167_v48  ;;  %v12497_v48 = vld [vmem:[#allocation88_spill] sm:$0xff] }
 0x3a8   :  { %v12501_v24 = vld [vmem:[#allocation92_spill] sm:$0xff] }
 0x3a9   :  { %10046 = vtanh.f32 %v1326_v18  ;;  %v11009_v18 = vld [vmem:[%s12151_s0 + $0x10] sm:$0xff] }
 0x3b3   :  { %v10047_v45 = vpop.eup %10046 }
 0x3b4   :  { %v1329_v4 = vmul.f32 %v10047_v45, %v1328_v14  ;;  %v12503_v14 = vld [vmem:[#allocation30_spill] sm:$0xff]  ;;  %v12504_v45 = vld [vmem:[#allocation32_spill] sm:$0xff] }
 0x3b6   :  { %v10933_v13 = vadd.f32 %v1330_v56, %v1329_v4  ;;  %v12495_v4 = vld [vmem:[#allocation86_spill] sm:$0xff]  ;;  %v12505_v56 = vld [vmem:[#allocation33_spill] sm:$0xff] }
 0x3b8   :  { %1397 = vmatmul.mubr.f32.vlgmr.msra.gmra.mrb[10].mxu1 %v10933_v13  ;;  %6809 = vmatmul.mubr.f32.vlgmr.msra.gmra.mrb[10].mxu0 %v10933_v13 }
 0x3b9   :  { %8350 = vmatpush1.bf16.msra.mxu1 %v10603_v47  ;;  %8381 = vmatpush3.bf16.msra.mxu0 %v10605_v11 }
 0x3ba   :  { %8352 = vmatprep.subr.bf16.mxu1 %v12490_v2  ;;  %8382 = vmatprep.subr.bf16.mxu0 %v12418_v61 }
 0x3bb   :  { %1537 = vmatprep.mubr.f32.mxu1 %v12433_v38  ;;  %6843 = vmatprep.mubr.msk.f32.mxu0 %vm10234_vm0, %v12433_v38 }
 0x3bd   :  { %8354 = vmatpush1.bf16.msra.mxu1 %v12491_v0  ;;  %8384 = vmatpush3.bf16.msra.mxu0 %v12492_v31 }
 0x3be   :  { %8356 = vmatprep.subr.bf16.mxu1 %v12493_v37  ;;  %8385 = vmatprep.subr.bf16.mxu0 %v12418_v61 }
 0x3c1   :  { %8358 = vmatpush1.bf16.msra.mxu1 %v12494_v55  ;;  %8387 = vmatpush3.bf16.msra.mxu0 %v12495_v4 }
 0x3c2   :  { %8360 = vmatprep.subr.bf16.mxu1 %v12496_v63  ;;  %8388 = vmatprep.subr.bf16.mxu0 %v12418_v61 }
 0x3c5   :  { %8362 = vmatpush1.bf16.msra.mxu1 %v12497_v48  ;;  %8390 = vmatpush3.bf16.msra.mxu0 %v12498_v58 }
 0x3c6   :  { %8364 = vmatprep.subr.bf16.mxu1 %v12499_v54  ;;  %8391 = vmatprep.subr.bf16.mxu0 %v12418_v61 }
 0x3c9   :  { %8366 = vmatpush1.bf16.msra.mxu1 %v10648_v33  ;;  %8393 = vmatpush3.bf16.msra.mxu0 %v10650_v3 }
 0x3ca   :  { %8368 = vmatprep.subr.bf16.mxu1 %v12500_v6  ;;  %8394 = vmatprep.subr.bf16.mxu0 %v12418_v61 }
 0x3cd   :  { %8370 = vmatpush1.bf16.msra.mxu1 %v12501_v24  ;;  %8396 = vmatpush3.bf16.msra.mxu0 %v10660_v42 }
 0x3ce   :  { %8372 = vmatprep.subr.bf16.mxu1 %v10664_v29  ;;  %8397 = vmatprep.subr.bf16.mxu0 %v12418_v61 }
 0x3d1   :  { %8374 = vmatpush1.bf16.msra.mxu1 %v10668_v27  ;;  %8399 = vmatpush3.bf16.msra.mxu0 %v10670_v20 }
 0x3d2   :  { %8376 = vmatprep.subr.bf16.mxu1 %v10674_v52  ;;  %8400 = vmatprep.subr.bf16.mxu0 %v12418_v61 }
 0x3d5   :  { %8378 = vmatpush1.bf16.msra.mxu1 %v10678_v46  ;;  %8402 = vmatpush3.bf16.msra.mxu0 %v10680_v40 }
 0x3d6   :  { %8428 = vmatprep.subr.bf16.mxu0 %v10313_v5  ;;  %8403 = vmatprep.subr.bf16.mxu1 %v12418_v61 }
 0x3d8   :  { %1538 = vmatmul.mubr.f32.vlgmr.msra.gmra.mrb[10].mxu1 %v10860_v8  ;;  %6844 = vmatmul.mubr.f32.vlgmr.msra.gmra.mrb[12].mxu0 %v10860_v8 }
 0x3d9   :  { %8430 = vmatpush1.bf16.msra.mxu0 %v10315_v9  ;;  %1773 = vmatprep.mubr.f32.mxu0 %v12433_v38 }
 0x3da   :  { %8432 = vmatprep.subr.bf16.mxu0 %v10317_v10  ;;  %8405 = vmatpush3.bf16.msra.mxu1 %v10761_v51 }
 0x3db   :  { %8406 = vmatprep.subr.bf16.mxu1 %v12418_v61  ;;  %6878 = vmatprep.mubr.msk.f32.mxu1 %vm10234_vm0, %v12433_v38 }
 0x3dd   :  { %8434 = vmatpush1.bf16.msra.mxu0 %v10321_v15 }
 0x3de   :  { %8436 = vmatprep.subr.bf16.mxu0 %v10324_v16  ;;  %8408 = vmatpush3.bf16.msra.mxu1 %v10771_v25 }
 0x3df   :  { %8409 = vmatprep.subr.bf16.mxu1 %v12418_v61 }
 0x3e1   :  { %8438 = vmatpush1.bf16.msra.mxu0 %v10327_v21 }
 0x3e2   :  { %8440 = vmatprep.subr.bf16.mxu0 %v10330_v23  ;;  %8411 = vmatpush3.bf16.msra.mxu1 %v10780_v17 }
 0x3e3   :  { %8412 = vmatprep.subr.bf16.mxu1 %v12418_v61 }
 0x3e5   :  { %8442 = vmatpush1.bf16.msra.mxu0 %v10335_v32 }
 0x3e6   :  { %8444 = vmatprep.subr.bf16.mxu0 %v10341_v34  ;;  %8414 = vmatpush3.bf16.msra.mxu1 %v10791_v43 }
 0x3e7   :  { %8415 = vmatprep.subr.bf16.mxu1 %v12418_v61 }
 0x3e9   :  { %8446 = vmatpush1.bf16.msra.mxu0 %v10345_v41 }
 0x3ea   :  { %8448 = vmatprep.subr.bf16.mxu0 %v10351_v44  ;;  %8417 = vmatpush3.bf16.msra.mxu1 %v10801_v28  ;;  %v12532_v28 = vld [vmem:[#allocation75_spill] sm:$0xff] }
 0x3eb   :  { %8418 = vmatprep.subr.bf16.mxu1 %v12418_v61 }
 0x3ed   :  { %8450 = vmatpush1.bf16.msra.mxu0 %v10355_v50 }
 0x3ee   :  { %8452 = vmatprep.subr.bf16.mxu0 %v10361_v53  ;;  %8420 = vmatpush3.bf16.msra.mxu1 %v10814_v1 }
 0x3ef   :  { %8421 = vmatprep.subr.bf16.mxu1 %v12418_v61 }
 0x3f1   :  { %8454 = vmatpush1.bf16.msra.mxu0 %v10365_v59 }
 0x3f2   :  { %8456 = vmatprep.subr.bf16.mxu0 %v10371_v62  ;;  %8423 = vmatpush3.bf16.msra.mxu1 %v10820_v30  ;;  %v12510_v30 = vld [vmem:[#allocation41_spill] sm:$0xff] }
 0x3f3   :  { %8424 = vmatprep.subr.bf16.mxu1 %v12418_v61 }
 0x3f5   :  { %8458 = vmatpush1.bf16.msra.mxu0 %v10375_v7  ;;  %v12508_v7 = vld [vmem:[#allocation38_spill] sm:$0xff] }
 0x3f6   :  { %8484 = vmatprep.subr.bf16.mxu0 %v10381_v12  ;;  %8426 = vmatpush3.bf16.msra.mxu1 %v10830_v35  ;;  %v12506_v35 = vld [vmem:[#allocation35_spill] sm:$0xff]  ;;  %v12507_v12 = vld [vmem:[#allocation36_spill] sm:$0xff] }
 0x3f7   :  { %8459 = vmatprep.subr.bf16.mxu1 %v12418_v61 }
 0x3f8   :  { %1774 = vmatmul.mubr.f32.vlgmr.msra.gmra.mrb[14].mxu0 %v11009_v18 }
 0x3f9   :  { %8486 = vmatpush1.bf16.msra.mxu0 %v10388_v22  ;;  %1914 = vmatprep.mubr.f32.mxu0 %v12433_v38  ;;  %v12509_v22 = vld [vmem:[#allocation39_spill] sm:$0xff] }
 0x3fa   :  { %8488 = vmatprep.subr.bf16.mxu0 %v10394_v26  ;;  %v12511_v26 = vld [vmem:[#allocation42_spill] sm:$0xff] }
 0x3fd   :  { %8490 = vmatpush1.bf16.msra.mxu0 %v10398_v36  ;;  %v12512_v36 = vld [vmem:[#allocation44_spill] sm:$0xff] }
 0x3fe   :  { %8492 = vmatprep.subr.bf16.mxu0 %v12502_v39  ;;  %v12513_v39 = vld [vmem:[#allocation45_spill] sm:$0xff] }
 0x401   :  { %8494 = vmatpush1.bf16.msra.mxu0 %v12503_v14  ;;  %v12514_v14 = vld [vmem:[#allocation49_spill] sm:$0xff] }
 0x402   :  { %8496 = vmatprep.subr.bf16.mxu0 %v12504_v45  ;;  %v12526_v45 = vld [vmem:[#allocation67_spill] sm:$0xff] }
 0x405   :  { %8498 = vmatpush1.bf16.msra.mxu0 %v12505_v56  ;;  %v12515_v56 = vld [vmem:[#allocation50_spill] sm:$0xff] }
 0x406   :  { %8500 = vmatprep.subr.bf16.mxu0 %v12506_v35  ;;  %v12524_v35 = vld [vmem:[#allocation64_spill] sm:$0xff] }
 0x409   :  { %8502 = vmatpush1.bf16.msra.mxu0 %v12507_v12  ;;  %v12516_v12 = vld [vmem:[#allocation52_spill] sm:$0xff] }
 0x40a   :  { %8504 = vmatprep.subr.bf16.mxu0 %v12508_v7  ;;  %v12517_v7 = vld [vmem:[#allocation53_spill] sm:$0xff] }
 0x40d   :  { %8506 = vmatpush1.bf16.msra.mxu0 %v12509_v22  ;;  %v12518_v22 = vld [vmem:[#allocation55_spill] sm:$0xff] }
 0x40e   :  { %8508 = vmatprep.subr.bf16.mxu0 %v12510_v30  ;;  %v12519_v30 = vld [vmem:[#allocation56_spill] sm:$0xff] }
 0x411   :  { %8510 = vmatpush1.bf16.msra.mxu0 %v12511_v26  ;;  %v12520_v26 = vld [vmem:[#allocation58_spill] sm:$0xff] }
 0x412   :  { %8512 = vmatprep.subr.bf16.mxu0 %v12512_v36  ;;  %v12521_v36 = vld [vmem:[#allocation59_spill] sm:$0xff] }
 0x415   :  { %8514 = vmatpush1.bf16.msra.mxu0 %v12513_v39  ;;  %v12522_v39 = vld [vmem:[#allocation61_spill] sm:$0xff] }
 0x416   :  { %8540 = vmatprep.subr.bf16.mxu0 %v12514_v14  ;;  %v12523_v14 = vld [vmem:[#allocation62_spill] sm:$0xff] }
 0x418   :  { %1915 = vmatmul.mubr.f32.vlgmr.msra.gmra.mrb[14].mxu0 %v10933_v13 }
 0x419   :  { %8542 = vmatpush1.bf16.msra.mxu0 %v12515_v56  ;;  %2076 = vmatprep.mubr.f32.mxu0 %v12433_v38  ;;  %v12525_v56 = vld [vmem:[#allocation65_spill] sm:$0xff] }
 0x41a   :  { %8544 = vmatprep.subr.bf16.mxu0 %v12516_v12  ;;  %v12527_v12 = vld [vmem:[#allocation68_spill] sm:$0xff] }
 0x41d   :  { %8546 = vmatpush1.bf16.msra.mxu0 %v12517_v7  ;;  %v12528_v7 = vld [vmem:[#allocation70_spill] sm:$0xff] }
 0x41e   :  { %8548 = vmatprep.subr.bf16.mxu0 %v12518_v22  ;;  %v12529_v22 = vld [vmem:[#allocation71_spill] sm:$0xff] }
 0x421   :  { %8550 = vmatpush1.bf16.msra.mxu0 %v12519_v30  ;;  %v12530_v30 = vld [vmem:[#allocation73_spill] sm:$0xff] }
 0x422   :  { %8552 = vmatprep.subr.bf16.mxu0 %v12520_v26 }
 0x425   :  { %8554 = vmatpush1.bf16.msra.mxu0 %v12521_v36 }
 0x426   :  { %8556 = vmatprep.subr.bf16.mxu0 %v12522_v39 }
 0x429   :  { %8558 = vmatpush1.bf16.msra.mxu0 %v12523_v14 }
 0x42a   :  { %8560 = vmatprep.subr.bf16.mxu0 %v12524_v35 }
 0x42d   :  { %8562 = vmatpush1.bf16.msra.mxu0 %v12525_v56  ;;  %v12531_v56 = vld [vmem:[#allocation74_spill] sm:$0xff] }
 0x42e   :  { %8564 = vmatprep.subr.bf16.mxu0 %v12526_v45 }
 0x431   :  { %8566 = vmatpush1.bf16.msra.mxu0 %v12527_v12 }
 0x432   :  { %8568 = vmatprep.subr.bf16.mxu0 %v12528_v7 }
 0x435   :  { %8570 = vmatpush1.bf16.msra.mxu0 %v12529_v22 }
 0x436   :  { %8596 = vmatprep.subr.bf16.mxu0 %v12530_v30 }
 0x48b   :  { %v1469_v26 = vpop.f32.mrb[10].mxu0 }
 0x48c   :  { %v6810_v36 = vpop.f32.mrb[11].mxu0  ;;  %v1470_v44 = vadd.f32 %v1469_v26, %v12532_v28 }
 0x4ab   :  { %v1539_v62 = vpop.f32.mrb[10].mxu1  ;;  %v1610_v39 = vpop.f32.mrb[12].mxu0 }
 0x4ac   :  { %v9928_v14 = vadd.f32 %v10845_v57, %v1539_v62  ;;  %v1541_v59 = vpop.f32.mrb[11].mxu1  ;;  %v6845_v35 = vpop.f32.mrb[13].mxu0  ;;  %v1611_v30 = vadd.f32 %v1610_v39, %v10852_v49  ;;  %v12540_v39 = vld [vmem:[#allocation28_spill] sm:$0xff] }
 0x4ad   :  { %v9930_v53 = vadd.f32 %v12531_v56, %v1541_v59 }
 0x4ae   :  { %v5811_v1 = vmul.f32 -1.442695, %v9928_v14 }
 0x4af   :  { %v5812_v45 = vmul.f32 -1.442695, %v9930_v53 }
 0x4b0   :  { %10048 = vpow2.f32 %v5811_v1 }
 0x4b1   :  { %10050 = vpow2.f32 %v5812_v45 }
 0x4ba   :  { %v10049_v12 = vpop.eup %10048 }
 0x4bb   :  { %v1618_v7 = vadd.f32 1.0, %v10049_v12  ;;  %v10051_v22 = vpop.eup %10050 }
 0x4bc   :  { %v1625_v50 = vadd.f32 1.0, %v10051_v22  ;;  %v12537_v22 = vld [vmem:[#allocation19_spill] sm:$0xff] }
 0x4bd   :  { %10052 = vrcp.f32 %v1618_v7  ;;  %v12533_v7 = vld [vmem:[#allocation8_spill] sm:$0xff] }
 0x4be   :  { %10054 = vrcp.f32 %v1625_v50  ;;  %v12534_v50 = vld [vmem:[#allocation10_spill] sm:$0xff] }
 0x4c7   :  { %v10053_v36 = vpop.eup %10052 }
 0x4c8   :  { %v1628_v41 = vmul.f32 %v10053_v36, %v1611_v30  ;;  %v10055_v35 = vpop.eup %10054  ;;  %v12538_v30 = vld [vmem:[#allocation22_spill] sm:$0xff]  ;;  %v12541_v36 = vld [vmem:[#allocation31_spill] sm:$0xff] }
 0x4c9   :  { %v1631_v14 = vsub.f32 1.0, %v10055_v35  ;;  %v1633_v53 = vmul.f32 %v10055_v35, %v10860_v8  ;;  %v12539_v8 = vld [vmem:[#allocation25_spill] sm:$0xff] }
 0x4ca   :  { %v1629_v62 = vadd.f32 %v1628_v41, %v1470_v44  ;;  %v12535_v41 = vld [vmem:[#allocation13_spill] sm:$0xff]  ;;  %v12536_v44 = vld [vmem:[#allocation16_spill] sm:$0xff] }
 0x4cb   :  { %v12543_v35 = vld [vmem:[#allocation37_spill] sm:$0xff] }
 0x4cc   :  { %10056 = vtanh.f32 %v1629_v62  ;;  %v12542_v62 = vld [vmem:[#allocation34_spill] sm:$0xff] }
 0x4d6   :  { %v10057_v59 = vpop.eup %10056 }
 0x4d7   :  { %v1632_v1 = vmul.f32 %v10057_v59, %v1631_v14  ;;  %v12544_v14 = vld [vmem:[#allocation40_spill] sm:$0xff]  ;;  %v12546_v59 = vld [vmem:[#allocation46_spill] sm:$0xff] }
 0x4d9   :  { %v11055_v45 = vadd.f32 %v1633_v53, %v1632_v1  ;;  %v12547_v1 = vld [vmem:[#allocation47_spill] sm:$0xff]  ;;  %v12548_v53 = vld [vmem:[#allocation48_spill] sm:$0xff] }
 0x4db   :  { %6879 = vmatmul.mubr.f32.vlgmr.msra.gmra.mrb[12].mxu1 %v11055_v45 }
 0x4dc   :  { %8461 = vmatpush3.bf16.msra.mxu1 %v12533_v7  ;;  %6913 = vmatprep.mubr.msk.f32.mxu1 %vm10234_vm0, %v12433_v38 }
 0x4dd   :  { %8462 = vmatprep.subr.bf16.mxu1 %v12418_v61 }
 0x4e0   :  { %8464 = vmatpush3.bf16.msra.mxu1 %v12534_v50 }
 0x4e1   :  { %8465 = vmatprep.subr.bf16.mxu1 %v12418_v61 }
 0x4e4   :  { %8467 = vmatpush3.bf16.msra.mxu1 %v12535_v41 }
 0x4e5   :  { %8468 = vmatprep.subr.bf16.mxu1 %v12418_v61 }
 0x4e8   :  { %8470 = vmatpush3.bf16.msra.mxu1 %v12536_v44 }
 0x4e9   :  { %8471 = vmatprep.subr.bf16.mxu1 %v12418_v61 }
 0x4eb   :  { %v1916_v12 = vpop.f32.mrb[14].mxu0 }
 0x4ec   :  { %8473 = vmatpush3.bf16.msra.mxu1 %v12537_v22  ;;  %v1918_v26 = vpop.f32.mrb[15].mxu0 }
 0x4ed   :  { %8474 = vmatprep.subr.bf16.mxu1 %v12418_v61 }
 0x4f0   :  { %8476 = vmatpush3.bf16.msra.mxu1 %v12538_v30 }
 0x4f1   :  { %8477 = vmatprep.subr.bf16.mxu1 %v12418_v61 }
 0x4f4   :  { %8479 = vmatpush3.bf16.msra.mxu1 %v12539_v8 }
 0x4f5   :  { %8480 = vmatprep.subr.bf16.mxu1 %v12418_v61 }
 0x4f8   :  { %8482 = vmatpush3.bf16.msra.mxu1 %v12540_v39 }
 0x4f9   :  { %8515 = vmatprep.subr.bf16.mxu1 %v12418_v61 }
 0x4fb   :  { %6914 = vmatmul.mubr.f32.vlgmr.msra.gmra.mrb[14].mxu1 %v11009_v18  ;;  %v12545_v18 = vld [vmem:[#allocation43_spill] sm:$0xff] }
 0x4fc   :  { %8517 = vmatpush3.bf16.msra.mxu1 %v12541_v36  ;;  %6948 = vmatprep.mubr.msk.f32.mxu1 %vm10234_vm0, %v12433_v38 }
 0x4fd   :  { %8518 = vmatprep.subr.bf16.mxu1 %v12418_v61 }
 0x500   :  { %8520 = vmatpush3.bf16.msra.mxu1 %v12542_v62 }
 0x501   :  { %8521 = vmatprep.subr.bf16.mxu1 %v12418_v61 }
 0x504   :  { %8523 = vmatpush3.bf16.msra.mxu1 %v12543_v35  ;;  %v12555_v35 = vld [vmem:[#allocation69_spill] sm:$0xff] }
 0x505   :  { %8524 = vmatprep.subr.bf16.mxu1 %v12418_v61 }
 0x508   :  { %8526 = vmatpush3.bf16.msra.mxu1 %v12544_v14  ;;  %v12549_v14 = vld [vmem:[#allocation51_spill] sm:$0xff] }
 0x509   :  { %8527 = vmatprep.subr.bf16.mxu1 %v12418_v61 }
 0x50c   :  { %8529 = vmatpush3.bf16.msra.mxu1 %v12545_v18  ;;  %v12553_v18 = vld [vmem:[#allocation63_spill] sm:$0xff] }
 0x50d   :  { %8530 = vmatprep.subr.bf16.mxu1 %v12418_v61 }
 0x510   :  { %8532 = vmatpush3.bf16.msra.mxu1 %v12546_v59  ;;  %v12550_v59 = vld [vmem:[#allocation54_spill] sm:$0xff] }
 0x511   :  { %8533 = vmatprep.subr.bf16.mxu1 %v12418_v61 }
 0x514   :  { %8535 = vmatpush3.bf16.msra.mxu1 %v12547_v1  ;;  %v12551_v1 = vld [vmem:[#allocation57_spill] sm:$0xff] }
 0x515   :  { %8536 = vmatprep.subr.bf16.mxu1 %v12418_v61 }
 0x518   :  { %8538 = vmatpush3.bf16.msra.mxu1 %v12548_v53  ;;  %v12552_v53 = vld [vmem:[#allocation60_spill] sm:$0xff] }
 0x519   :  { %8571 = vmatprep.subr.bf16.mxu1 %v12418_v61 }
 0x51b   :  { %6949 = vmatmul.mubr.f32.vlgmr.msra.gmra.mrb[16].mxu1 %v10933_v13 }
 0x51c   :  { %8573 = vmatpush3.bf16.msra.mxu1 %v12549_v14  ;;  %6983 = vmatprep.mubr.msk.f32.mxu1 %vm10234_vm0, %v12433_v38  ;;  %v12554_v14 = vld [vmem:[#allocation66_spill] sm:$0xff] }
 0x51d   :  { %8574 = vmatprep.subr.bf16.mxu1 %v12418_v61 }
 0x520   :  { %8576 = vmatpush3.bf16.msra.mxu1 %v12550_v59  ;;  %v12556_v59 = vld [vmem:[#allocation72_spill] sm:$0xff] }
 0x521   :  { %8577 = vmatprep.subr.bf16.mxu1 %v12418_v61 }
 0x524   :  { %8579 = vmatpush3.bf16.msra.mxu1 %v12551_v1 }
 0x525   :  { %8580 = vmatprep.subr.bf16.mxu1 %v12418_v61 }
 0x528   :  { %8582 = vmatpush3.bf16.msra.mxu1 %v12552_v53  ;;  %v12557_v53 = vld [vmem:[#allocation78_spill] sm:$0xff] }
 0x529   :  { %8583 = vmatprep.subr.bf16.mxu1 %v12418_v61 }
 0x52c   :  { %8585 = vmatpush3.bf16.msra.mxu1 %v12553_v18  ;;  %v12558_v18 = vld [vmem:[#allocation76_spill] sm:$0xff] }
 0x52d   :  { %8586 = vmatprep.subr.bf16.mxu1 %v12418_v61 }
 0x530   :  { %8588 = vmatpush3.bf16.msra.mxu1 %v12554_v14  ;;  %v9932_v14 = vadd.f32 %v12558_v18, %v1916_v12 }
 0x531   :  { %8589 = vmatprep.subr.bf16.mxu1 %v12418_v61 }
 0x532   :  { %v5815_v30 = vmul.f32 -1.442695, %v9932_v14 }
 0x534   :  { %8591 = vmatpush3.bf16.msra.mxu1 %v12555_v35  ;;  %10058 = vpow2.f32 %v5815_v30  ;;  %v12559_v35 = vld [vmem:[#allocation77_spill] sm:$0xff] }
 0x535   :  { %8592 = vmatprep.subr.bf16.mxu1 %v12418_v61  ;;  %v9934_v22 = vadd.f32 %v12559_v35, %v1918_v26 }
 0x537   :  { %v5816_v44 = vmul.f32 -1.442695, %v9934_v22 }
 0x538   :  { %8594 = vmatpush3.bf16.msra.mxu1 %v12556_v59 }
 0x539   :  { %8627 = vmatprep.subr.bf16.mxu1 %v12418_v61  ;;  %10060 = vpow2.f32 %v5816_v44 }
 0x53e   :  { %v10059_v59 = vpop.eup %10058 }
 0x53f   :  { %v1995_v41 = vadd.f32 1.0, %v10059_v59  ;;  %v12565_v59 = vld [vmem:[#allocation96_spill] sm:$0xff] }
 0x541   :  { %10062 = vrcp.f32 %v1995_v41 }
 0x543   :  { %v10061_v50 = vpop.eup %10060 }
 0x5ae   :  { %v1701_v1 = vpop.f32.mrb[12].mxu1 }
 0x5af   :  { %v1702_v62 = vadd.f32 %v12557_v53, %v1701_v1  ;;  %v6880_v36 = vpop.f32.mrb[13].mxu1  ;;  %v2002_v1 = vadd.f32 1.0, %v10061_v50  ;;  %v12562_v50 = vld [vmem:[#allocation95_spill] sm:$0xff] }
 0x5b1   :  { %5813 = vst [vmem:[%s12159_s8 + $0x8] sm:$0xff] %v1702_v62  ;;  %v10063_v62 = vpop.eup %10062  ;;  %10064 = vrcp.f32 %v2002_v1  ;;  %v12567_v1 = vld [vmem:[#allocation20_spill] sm:$0xff] }
 0x5bb   :  { %v10065_v30 = vpop.eup %10064 }
 0x5bc   :  { %v2008_v26 = vsub.f32 1.0, %v10065_v30  ;;  %v2010_v44 = vmul.f32 %v10065_v30, %v10933_v13  ;;  %v12560_v13 = vld [vmem:[#allocation12_spill] sm:$0xff] }
 0x5bd   :  { %v12572_v30 = vld [vmem:[#allocation24_spill] sm:$0xff] }
 0x5ce   :  { %v1846_v39 = vpop.f32.mrb[14].mxu1 }
 0x5cf   :  { %v6915_v8 = vpop.f32.mrb[15].mxu1  ;;  %v1847_v12 = vadd.f32 %v1846_v39, %v12489_v19  ;;  %v12563_v39 = vld [vmem:[#allocation15_spill] sm:$0xff] }
 0x5ee   :  { %v1987_v36 = vpop.f32.mrb[16].mxu1 }
 0x5ef   :  { %v1988_v53 = vadd.f32 %v1987_v36, %v12488_v60  ;;  %v6950_v7 = vpop.f32.mrb[17].mxu1  ;;  %v12568_v36 = vld [vmem:[#allocation97_spill] sm:$0xff] }
 0x5f0   :  { %v12561_v7 = vld [vmem:[#allocation14_spill] sm:$0xff] }
 0x5f1   :  { %v2005_v8 = vmul.f32 %v10063_v62, %v1988_v53  ;;  %v12566_v53 = vld [vmem:[#allocation18_spill] sm:$0xff]  ;;  %v12569_v62 = vld [vmem:[#allocation21_spill] sm:$0xff] }
 0x5f3   :  { %v2006_v14 = vadd.f32 %v2005_v8, %v1847_v12  ;;  %v11199_v12 = vld [vmem:[%s12151_s0 + $0x18] sm:$0xff] }
 0x5f4   :  { %v12570_v8 = vld [vmem:[#allocation23_spill] sm:$0xff] }
 0x5f5   :  { %10066 = vtanh.f32 %v2006_v14  ;;  %v12571_v14 = vld [vmem:[#allocation98_spill] sm:$0xff] }
 0x5ff   :  { %v10067_v22 = vpop.eup %10066 }
 0x600   :  { %v2009_v35 = vmul.f32 %v10067_v22, %v2008_v26  ;;  %v12573_v26 = vld [vmem:[#allocation26_spill] sm:$0xff]  ;;  %v12574_v22 = vld [vmem:[#allocation27_spill] sm:$0xff] }
 0x602   :  { %v11123_v41 = vadd.f32 %v2010_v44, %v2009_v35  ;;  %v12564_v35 = vld [vmem:[#allocation17_spill] sm:$0xff] }
 0x603   :  { %v12575_v44 = vld [vmem:[#allocation29_spill] sm:$0xff] }
 0x604   :  { %2077 = vmatmul.mubr.f32.vlgmr.msra.gmra.mrb[16].mxu0 %v11123_v41  ;;  %6984 = vmatmul.mubr.f32.vlgmr.msra.gmra.mrb[18].mxu1 %v11123_v41 }
 0x605   :  { %8598 = vmatpush1.bf16.msra.mxu0 %v10603_v47  ;;  %8629 = vmatpush3.bf16.msra.mxu1 %v10605_v11 }
 0x606   :  { %8600 = vmatprep.subr.bf16.mxu0 %v12490_v2  ;;  %8630 = vmatprep.subr.bf16.mxu1 %v12418_v61 }
 0x607   :  { %2217 = vmatprep.mubr.f32.mxu0 %v12433_v38  ;;  %7018 = vmatprep.mubr.msk.f32.mxu1 %vm10234_vm0, %v12433_v38 }
 0x609   :  { %8602 = vmatpush1.bf16.msra.mxu0 %v12491_v0  ;;  %8632 = vmatpush3.bf16.msra.mxu1 %v12492_v31 }
 0x60a   :  { %8604 = vmatprep.subr.bf16.mxu0 %v12493_v37  ;;  %8633 = vmatprep.subr.bf16.mxu1 %v12418_v61 }
 0x60d   :  { %8606 = vmatpush1.bf16.msra.mxu0 %v12494_v55  ;;  %8635 = vmatpush3.bf16.msra.mxu1 %v12495_v4 }
 0x60e   :  { %8608 = vmatprep.subr.bf16.mxu0 %v12496_v63  ;;  %8636 = vmatprep.subr.bf16.mxu1 %v12418_v61 }
 0x611   :  { %8610 = vmatpush1.bf16.msra.mxu0 %v12497_v48  ;;  %8638 = vmatpush3.bf16.msra.mxu1 %v12498_v58 }
 0x612   :  { %8612 = vmatprep.subr.bf16.mxu0 %v12499_v54  ;;  %8639 = vmatprep.subr.bf16.mxu1 %v12418_v61 }
 0x615   :  { %8614 = vmatpush1.bf16.msra.mxu0 %v10648_v33  ;;  %8641 = vmatpush3.bf16.msra.mxu1 %v10650_v3 }
 0x616   :  { %8616 = vmatprep.subr.bf16.mxu0 %v12500_v6  ;;  %8642 = vmatprep.subr.bf16.mxu1 %v12418_v61 }
 0x619   :  { %8618 = vmatpush1.bf16.msra.mxu0 %v12501_v24  ;;  %8644 = vmatpush3.bf16.msra.mxu1 %v10660_v42 }
 0x61a   :  { %8620 = vmatprep.subr.bf16.mxu0 %v10664_v29  ;;  %8645 = vmatprep.subr.bf16.mxu1 %v12418_v61 }
 0x61d   :  { %8622 = vmatpush1.bf16.msra.mxu0 %v10668_v27  ;;  %8647 = vmatpush3.bf16.msra.mxu1 %v10670_v20 }
 0x61e   :  { %8624 = vmatprep.subr.bf16.mxu0 %v10674_v52  ;;  %8648 = vmatprep.subr.bf16.mxu1 %v12418_v61 }
 0x621   :  { %8626 = vmatpush1.bf16.msra.mxu0 %v10678_v46  ;;  %8650 = vmatpush3.bf16.msra.mxu1 %v10680_v40 }
 0x622   :  { %8676 = vmatprep.subr.bf16.mxu1 %v10313_v5  ;;  %8651 = vmatprep.subr.bf16.mxu0 %v12418_v61 }
 0x624   :  { %2218 = vmatmul.mubr.f32.vlgmr.msra.gmra.mrb[16].mxu0 %v11055_v45  ;;  %7019 = vmatmul.mubr.f32.vlgmr.msra.gmra.mrb[20].mxu1 %v11055_v45 }
 0x625   :  { %8678 = vmatpush1.bf16.msra.mxu1 %v10315_v9  ;;  %2453 = vmatprep.mubr.f32.mxu1 %v12433_v38 }
 0x626   :  { %8680 = vmatprep.subr.bf16.mxu1 %v10317_v10  ;;  %8653 = vmatpush3.bf16.msra.mxu0 %v10761_v51 }
 0x627   :  { %8654 = vmatprep.subr.bf16.mxu0 %v12418_v61  ;;  %7053 = vmatprep.mubr.msk.f32.mxu0 %vm10234_vm0, %v12433_v38 }
 0x629   :  { %8682 = vmatpush1.bf16.msra.mxu1 %v10321_v15 }
 0x62a   :  { %8684 = vmatprep.subr.bf16.mxu1 %v10324_v16  ;;  %8656 = vmatpush3.bf16.msra.mxu0 %v10771_v25 }
 0x62b   :  { %8657 = vmatprep.subr.bf16.mxu0 %v12418_v61 }
 0x62d   :  { %8686 = vmatpush1.bf16.msra.mxu1 %v10327_v21 }
 0x62e   :  { %8688 = vmatprep.subr.bf16.mxu1 %v10330_v23  ;;  %8659 = vmatpush3.bf16.msra.mxu0 %v10780_v17 }
 0x62f   :  { %8660 = vmatprep.subr.bf16.mxu0 %v12418_v61 }
 0x631   :  { %8690 = vmatpush1.bf16.msra.mxu1 %v10335_v32 }
 0x632   :  { %8692 = vmatprep.subr.bf16.mxu1 %v10341_v34  ;;  %8662 = vmatpush3.bf16.msra.mxu0 %v10791_v43 }
 0x633   :  { %8663 = vmatprep.subr.bf16.mxu0 %v12418_v61 }
 0x635   :  { %8694 = vmatpush1.bf16.msra.mxu1 %v12560_v13 }
 0x636   :  { %8696 = vmatprep.subr.bf16.mxu1 %v12561_v7  ;;  %8665 = vmatpush3.bf16.msra.mxu0 %v12562_v50 }
 0x637   :  { %8666 = vmatprep.subr.bf16.mxu0 %v12418_v61 }
 0x639   :  { %8698 = vmatpush1.bf16.msra.mxu1 %v12563_v39 }
 0x63a   :  { %8700 = vmatprep.subr.bf16.mxu1 %v12564_v35  ;;  %8668 = vmatpush3.bf16.msra.mxu0 %v12565_v59  ;;  %v12583_v59 = vld [vmem:[#allocation41_spill] sm:$0xff] }
 0x63b   :  { %8669 = vmatprep.subr.bf16.mxu0 %v12418_v61 }
 0x63d   :  { %8702 = vmatpush1.bf16.msra.mxu1 %v12566_v53  ;;  %v12581_v53 = vld [vmem:[#allocation38_spill] sm:$0xff] }
 0x63e   :  { %8704 = vmatprep.subr.bf16.mxu1 %v12567_v1  ;;  %8671 = vmatpush3.bf16.msra.mxu0 %v12568_v36  ;;  %v12577_v36 = vld [vmem:[#allocation32_spill] sm:$0xff] }
 0x63f   :  { %8672 = vmatprep.subr.bf16.mxu0 %v12418_v61  ;;  %v12580_v1 = vld [vmem:[#allocation36_spill] sm:$0xff] }
 0x641   :  { %8706 = vmatpush1.bf16.msra.mxu1 %v12569_v62  ;;  %v12576_v62 = vld [vmem:[#allocation30_spill] sm:$0xff] }
 0x642   :  { %8732 = vmatprep.subr.bf16.mxu1 %v12570_v8  ;;  %8674 = vmatpush3.bf16.msra.mxu0 %v12571_v14  ;;  %v12578_v8 = vld [vmem:[#allocation33_spill] sm:$0xff]  ;;  %v12579_v14 = vld [vmem:[#allocation35_spill] sm:$0xff] }
 0x643   :  { %8707 = vmatprep.subr.bf16.mxu0 %v12418_v61 }
 0x644   :  { %2454 = vmatmul.mubr.f32.vlgmr.msra.gmra.mrb[22].mxu1 %v11199_v12 }
 0x645   :  { %8734 = vmatpush1.bf16.msra.mxu1 %v12572_v30  ;;  %2594 = vmatprep.mubr.f32.mxu1 %v12433_v38  ;;  %v12582_v30 = vld [vmem:[#allocation39_spill] sm:$0xff] }
 0x646   :  { %8736 = vmatprep.subr.bf16.mxu1 %v12573_v26  ;;  %v12584_v26 = vld [vmem:[#allocation42_spill] sm:$0xff] }
 0x649   :  { %8738 = vmatpush1.bf16.msra.mxu1 %v12574_v22  ;;  %v12585_v22 = vld [vmem:[#allocation44_spill] sm:$0xff] }
 0x64a   :  { %8740 = vmatprep.subr.bf16.mxu1 %v12575_v44  ;;  %v12586_v44 = vld [vmem:[#allocation45_spill] sm:$0xff] }
 0x64d   :  { %8742 = vmatpush1.bf16.msra.mxu1 %v12576_v62  ;;  %v12587_v62 = vld [vmem:[#allocation49_spill] sm:$0xff] }
 0x64e   :  { %8744 = vmatprep.subr.bf16.mxu1 %v12577_v36  ;;  %v12599_v36 = vld [vmem:[#allocation67_spill] sm:$0xff] }
 0x651   :  { %8746 = vmatpush1.bf16.msra.mxu1 %v12578_v8  ;;  %v12588_v8 = vld [vmem:[#allocation50_spill] sm:$0xff] }
 0x652   :  { %8748 = vmatprep.subr.bf16.mxu1 %v12579_v14  ;;  %v12597_v14 = vld [vmem:[#allocation64_spill] sm:$0xff] }
 0x655   :  { %8750 = vmatpush1.bf16.msra.mxu1 %v12580_v1  ;;  %v12589_v1 = vld [vmem:[#allocation52_spill] sm:$0xff] }
 0x656   :  { %8752 = vmatprep.subr.bf16.mxu1 %v12581_v53  ;;  %v12590_v53 = vld [vmem:[#allocation53_spill] sm:$0xff] }
 0x659   :  { %8754 = vmatpush1.bf16.msra.mxu1 %v12582_v30  ;;  %v12591_v30 = vld [vmem:[#allocation55_spill] sm:$0xff] }
 0x65a   :  { %8756 = vmatprep.subr.bf16.mxu1 %v12583_v59  ;;  %v12592_v59 = vld [vmem:[#allocation56_spill] sm:$0xff] }
 0x65d   :  { %8758 = vmatpush1.bf16.msra.mxu1 %v12584_v26  ;;  %v12593_v26 = vld [vmem:[#allocation58_spill] sm:$0xff] }
 0x65e   :  { %8760 = vmatprep.subr.bf16.mxu1 %v12585_v22  ;;  %v12594_v22 = vld [vmem:[#allocation59_spill] sm:$0xff] }
 0x661   :  { %8762 = vmatpush1.bf16.msra.mxu1 %v12586_v44  ;;  %v12595_v44 = vld [vmem:[#allocation61_spill] sm:$0xff] }
 0x662   :  { %8788 = vmatprep.subr.bf16.mxu1 %v12587_v62  ;;  %v12596_v62 = vld [vmem:[#allocation62_spill] sm:$0xff] }
 0x664   :  { %2595 = vmatmul.mubr.f32.vlgmr.msra.gmra.mrb[22].mxu1 %v11123_v41 }
 0x665   :  { %8790 = vmatpush1.bf16.msra.mxu1 %v12588_v8  ;;  %2756 = vmatprep.mubr.f32.mxu1 %v12433_v38  ;;  %v12598_v8 = vld [vmem:[#allocation65_spill] sm:$0xff] }
 0x666   :  { %8792 = vmatprep.subr.bf16.mxu1 %v12589_v1  ;;  %v12600_v1 = vld [vmem:[#allocation68_spill] sm:$0xff] }
 0x669   :  { %8794 = vmatpush1.bf16.msra.mxu1 %v12590_v53  ;;  %v12601_v53 = vld [vmem:[#allocation70_spill] sm:$0xff] }
 0x66a   :  { %8796 = vmatprep.subr.bf16.mxu1 %v12591_v30  ;;  %v12602_v30 = vld [vmem:[#allocation71_spill] sm:$0xff] }
 0x66d   :  { %8798 = vmatpush1.bf16.msra.mxu1 %v12592_v59  ;;  %v12603_v59 = vld [vmem:[#allocation73_spill] sm:$0xff] }
 0x66e   :  { %8800 = vmatprep.subr.bf16.mxu1 %v12593_v26 }
 0x671   :  { %8802 = vmatpush1.bf16.msra.mxu1 %v12594_v22 }
 0x672   :  { %8804 = vmatprep.subr.bf16.mxu1 %v12595_v44 }
 0x675   :  { %8806 = vmatpush1.bf16.msra.mxu1 %v12596_v62 }
 0x676   :  { %8808 = vmatprep.subr.bf16.mxu1 %v12597_v14 }
 0x679   :  { %8810 = vmatpush1.bf16.msra.mxu1 %v12598_v8 }
 0x67a   :  { %8812 = vmatprep.subr.bf16.mxu1 %v12599_v36 }
 0x67d   :  { %8814 = vmatpush1.bf16.msra.mxu1 %v12600_v1 }
 0x67e   :  { %8816 = vmatprep.subr.bf16.mxu1 %v12601_v53 }
 0x681   :  { %8818 = vmatpush1.bf16.msra.mxu1 %v12602_v30 }
 0x682   :  { %8844 = vmatprep.subr.bf16.mxu1 %v12603_v59 }
 0x6d7   :  { %v2149_v26 = vpop.f32.mrb[18].mxu1 }
 0x6d8   :  { %v6985_v22 = vpop.f32.mrb[19].mxu1  ;;  %v2150_v13 = vadd.f32 %v2149_v26, %v12532_v28  ;;  %v12610_v26 = vld [vmem:[#allocation25_spill] sm:$0xff] }
 0x6f7   :  { %v2219_v35 = vpop.f32.mrb[16].mxu0  ;;  %v2290_v44 = vpop.f32.mrb[20].mxu1 }
 0x6f8   :  { %v9936_v62 = vadd.f32 %v10845_v57, %v2219_v35  ;;  %v2221_v39 = vpop.f32.mrb[17].mxu0  ;;  %v7020_v14 = vpop.f32.mrb[21].mxu1  ;;  %v2291_v59 = vadd.f32 %v2290_v44, %v10852_v49  ;;  %v12611_v44 = vld [vmem:[#allocation28_spill] sm:$0xff] }
 0x6f9   :  { %v9938_v8 = vadd.f32 %v12531_v56, %v2221_v39 }
 0x6fa   :  { %v5817_v50 = vmul.f32 -1.442695, %v9936_v62 }
 0x6fb   :  { %v5818_v36 = vmul.f32 -1.442695, %v9938_v8 }
 0x6fc   :  { %10068 = vpow2.f32 %v5817_v50 }
 0x6fd   :  { %10070 = vpow2.f32 %v5818_v36 }
 0x706   :  { %v10069_v1 = vpop.eup %10068 }
 0x707   :  { %v2298_v53 = vadd.f32 1.0, %v10069_v1  ;;  %v10071_v30 = vpop.eup %10070 }
 0x708   :  { %v2305_v7 = vadd.f32 1.0, %v10071_v30  ;;  %v12609_v30 = vld [vmem:[#allocation22_spill] sm:$0xff] }
 0x709   :  { %10072 = vrcp.f32 %v2298_v53  ;;  %v12604_v53 = vld [vmem:[#allocation8_spill] sm:$0xff] }
 0x70a   :  { %10074 = vrcp.f32 %v2305_v7  ;;  %v12605_v7 = vld [vmem:[#allocation10_spill] sm:$0xff] }
 0x713   :  { %v10073_v22 = vpop.eup %10072 }
 0x714   :  { %v2308_v43 = vmul.f32 %v10073_v22, %v2291_v59  ;;  %v10075_v62 = vpop.eup %10074  ;;  %v12608_v59 = vld [vmem:[#allocation19_spill] sm:$0xff] }
 0x715   :  { %v2311_v14 = vsub.f32 1.0, %v10075_v62  ;;  %v2313_v36 = vmul.f32 %v10075_v62, %v11055_v45  ;;  %v12607_v45 = vld [vmem:[#allocation16_spill] sm:$0xff]  ;;  %v12612_v22 = vld [vmem:[#allocation31_spill] sm:$0xff]  ;;  %v12614_v62 = vld [vmem:[#allocation37_spill] sm:$0xff] }
 0x716   :  { %v2309_v35 = vadd.f32 %v2308_v43, %v2150_v13  ;;  %v12606_v43 = vld [vmem:[#allocation13_spill] sm:$0xff] }
 0x718   :  { %10076 = vtanh.f32 %v2309_v35  ;;  %v12613_v35 = vld [vmem:[#allocation34_spill] sm:$0xff] }
 0x722   :  { %v10077_v39 = vpop.eup %10076 }
 0x723   :  { %v2312_v50 = vmul.f32 %v10077_v39, %v2311_v14  ;;  %v12615_v14 = vld [vmem:[#allocation40_spill] sm:$0xff]  ;;  %v12617_v39 = vld [vmem:[#allocation46_spill] sm:$0xff] }
 0x725   :  { %v11245_v8 = vadd.f32 %v2313_v36, %v2312_v50  ;;  %v12618_v50 = vld [vmem:[#allocation47_spill] sm:$0xff]  ;;  %v12619_v36 = vld [vmem:[#allocation48_spill] sm:$0xff] }
 0x727   :  { %7054 = vmatmul.mubr.f32.vlgmr.msra.gmra.mrb[18].mxu0 %v11245_v8 }
 0x728   :  { %8709 = vmatpush3.bf16.msra.mxu0 %v12604_v53  ;;  %7088 = vmatprep.mubr.msk.f32.mxu0 %vm10234_vm0, %v12433_v38 }
 0x729   :  { %8710 = vmatprep.subr.bf16.mxu0 %v12418_v61 }
 0x72c   :  { %8712 = vmatpush3.bf16.msra.mxu0 %v12605_v7 }
 0x72d   :  { %8713 = vmatprep.subr.bf16.mxu0 %v12418_v61 }
 0x730   :  { %8715 = vmatpush3.bf16.msra.mxu0 %v12606_v43 }
 0x731   :  { %8716 = vmatprep.subr.bf16.mxu0 %v12418_v61 }
 0x734   :  { %8718 = vmatpush3.bf16.msra.mxu0 %v12607_v45 }
 0x735   :  { %8719 = vmatprep.subr.bf16.mxu0 %v12418_v61 }
 0x737   :  { %v2596_v13 = vpop.f32.mrb[22].mxu1 }
 0x738   :  { %8721 = vmatpush3.bf16.msra.mxu0 %v12608_v59  ;;  %v2598_v1 = vpop.f32.mrb[23].mxu1 }
 0x739   :  { %8722 = vmatprep.subr.bf16.mxu0 %v12418_v61 }
 0x73c   :  { %8724 = vmatpush3.bf16.msra.mxu0 %v12609_v30 }
 0x73d   :  { %8725 = vmatprep.subr.bf16.mxu0 %v12418_v61 }
 0x740   :  { %8727 = vmatpush3.bf16.msra.mxu0 %v12610_v26 }
 0x741   :  { %8728 = vmatprep.subr.bf16.mxu0 %v12418_v61 }
 0x744   :  { %8730 = vmatpush3.bf16.msra.mxu0 %v12611_v44 }
 0x745   :  { %8763 = vmatprep.subr.bf16.mxu0 %v12418_v61 }
 0x747   :  { %7089 = vmatmul.mubr.f32.vlgmr.msra.gmra.mrb[20].mxu0 %v11199_v12  ;;  %v12616_v12 = vld [vmem:[#allocation43_spill] sm:$0xff] }
 0x748   :  { %8765 = vmatpush3.bf16.msra.mxu0 %v12612_v22  ;;  %7123 = vmatprep.mubr.msk.f32.mxu0 %vm10234_vm0, %v12433_v38 }
 0x749   :  { %8766 = vmatprep.subr.bf16.mxu0 %v12418_v61 }
 0x74c   :  { %8768 = vmatpush3.bf16.msra.mxu0 %v12613_v35 }
 0x74d   :  { %8769 = vmatprep.subr.bf16.mxu0 %v12418_v61 }
 0x750   :  { %8771 = vmatpush3.bf16.msra.mxu0 %v12614_v62  ;;  %v12626_v62 = vld [vmem:[#allocation69_spill] sm:$0xff] }
 0x751   :  { %8772 = vmatprep.subr.bf16.mxu0 %v12418_v61 }
 0x754   :  { %8774 = vmatpush3.bf16.msra.mxu0 %v12615_v14  ;;  %v12620_v14 = vld [vmem:[#allocation51_spill] sm:$0xff] }
 0x755   :  { %8775 = vmatprep.subr.bf16.mxu0 %v12418_v61 }
 0x758   :  { %8777 = vmatpush3.bf16.msra.mxu0 %v12616_v12  ;;  %v12624_v12 = vld [vmem:[#allocation63_spill] sm:$0xff] }
 0x759   :  { %8778 = vmatprep.subr.bf16.mxu0 %v12418_v61 }
 0x75c   :  { %8780 = vmatpush3.bf16.msra.mxu0 %v12617_v39  ;;  %v12621_v39 = vld [vmem:[#allocation54_spill] sm:$0xff] }
 0x75d   :  { %8781 = vmatprep.subr.bf16.mxu0 %v12418_v61 }
 0x760   :  { %8783 = vmatpush3.bf16.msra.mxu0 %v12618_v50  ;;  %v12622_v50 = vld [vmem:[#allocation57_spill] sm:$0xff] }
 0x761   :  { %8784 = vmatprep.subr.bf16.mxu0 %v12418_v61 }
 0x764   :  { %8786 = vmatpush3.bf16.msra.mxu0 %v12619_v36  ;;  %v12623_v36 = vld [vmem:[#allocation60_spill] sm:$0xff] }
 0x765   :  { %8819 = vmatprep.subr.bf16.mxu0 %v12418_v61 }
 0x767   :  { %7124 = vmatmul.mubr.f32.vlgmr.msra.gmra.mrb[22].mxu0 %v11123_v41 }
 0x768   :  { %8821 = vmatpush3.bf16.msra.mxu0 %v12620_v14  ;;  %7158 = vmatprep.mubr.msk.f32.mxu0 %vm10234_vm0, %v12433_v38  ;;  %v12625_v14 = vld [vmem:[#allocation66_spill] sm:$0xff] }
 0x769   :  { %8822 = vmatprep.subr.bf16.mxu0 %v12418_v61 }
 0x76c   :  { %8824 = vmatpush3.bf16.msra.mxu0 %v12621_v39  ;;  %v12627_v39 = vld [vmem:[#allocation72_spill] sm:$0xff] }
 0x76d   :  { %8825 = vmatprep.subr.bf16.mxu0 %v12418_v61 }
 0x770   :  { %8827 = vmatpush3.bf16.msra.mxu0 %v12622_v50 }
 0x771   :  { %8828 = vmatprep.subr.bf16.mxu0 %v12418_v61 }
 0x774   :  { %8830 = vmatpush3.bf16.msra.mxu0 %v12623_v36  ;;  %v12628_v36 = vld [vmem:[#allocation78_spill] sm:$0xff] }
 0x775   :  { %8831 = vmatprep.subr.bf16.mxu0 %v12418_v61 }
 0x778   :  { %8833 = vmatpush3.bf16.msra.mxu0 %v12624_v12 }
 0x779   :  { %8834 = vmatprep.subr.bf16.mxu0 %v12418_v61 }
 0x77c   :  { %8836 = vmatpush3.bf16.msra.mxu0 %v12625_v14  ;;  %v9940_v14 = vadd.f32 %v12558_v18, %v2596_v13 }
 0x77d   :  { %8837 = vmatprep.subr.bf16.mxu0 %v12418_v61 }
 0x77e   :  { %v5821_v26 = vmul.f32 -1.442695, %v9940_v14 }
 0x780   :  { %8839 = vmatpush3.bf16.msra.mxu0 %v12626_v62  ;;  %10078 = vpow2.f32 %v5821_v26  ;;  %v12629_v62 = vld [vmem:[#allocation77_spill] sm:$0xff] }
 0x781   :  { %8840 = vmatprep.subr.bf16.mxu0 %v12418_v61  ;;  %v9942_v30 = vadd.f32 %v12629_v62, %v2598_v1 }
 0x783   :  { %v5822_v59 = vmul.f32 -1.442695, %v9942_v30 }
 0x784   :  { %8842 = vmatpush3.bf16.msra.mxu0 %v12627_v39 }
 0x785   :  { %8875 = vmatprep.subr.bf16.mxu0 %v12418_v61  ;;  %10080 = vpow2.f32 %v5822_v59 }
 0x78a   :  { %v10079_v39 = vpop.eup %10078 }
 0x78b   :  { %v2675_v45 = vadd.f32 1.0, %v10079_v39  ;;  %v12635_v39 = vld [vmem:[#allocation17_spill] sm:$0xff] }
 0x78d   :  { %10082 = vrcp.f32 %v2675_v45 }
 0x78f   :  { %v10081_v43 = vpop.eup %10080 }
 0x7fa   :  { %v2381_v50 = vpop.f32.mrb[18].mxu0 }
 0x7fb   :  { %v2382_v35 = vadd.f32 %v12628_v36, %v2381_v50  ;;  %v7055_v22 = vpop.f32.mrb[19].mxu0  ;;  %v2682_v50 = vadd.f32 1.0, %v10081_v43  ;;  %v12632_v43 = vld [vmem:[#allocation14_spill] sm:$0xff] }
 0x7fd   :  { %5819 = vst [vmem:[%s12159_s8 + $0x10] sm:$0xff] %v2382_v35  ;;  %v10083_v35 = vpop.eup %10082  ;;  %10084 = vrcp.f32 %v2682_v50  ;;  %v12636_v50 = vld [vmem:[#allocation96_spill] sm:$0xff] }
 0x807   :  { %v10085_v26 = vpop.eup %10084 }
 0x808   :  { %v2688_v1 = vsub.f32 1.0, %v10085_v26  ;;  %v2690_v59 = vmul.f32 %v10085_v26, %v11123_v41  ;;  %v12630_v41 = vld [vmem:[#allocation94_spill] sm:$0xff] }
 0x809   :  { %v12642_v26 = vld [vmem:[#allocation98_spill] sm:$0xff] }
 0x81a   :  { %v2526_v12 = vpop.f32.mrb[20].mxu0 }
 0x81b   :  { %v7090_v44 = vpop.f32.mrb[21].mxu0  ;;  %v2527_v13 = vadd.f32 %v2526_v12, %v12489_v19  ;;  %v12634_v12 = vld [vmem:[#allocation15_spill] sm:$0xff] }
 0x83a   :  { %v2667_v22 = vpop.f32.mrb[22].mxu0 }
 0x83b   :  { %v2668_v36 = vadd.f32 %v2667_v22, %v12488_v60  ;;  %v7125_v7 = vpop.f32.mrb[23].mxu0  ;;  %v12637_v22 = vld [vmem:[#allocation18_spill] sm:$0xff] }
 0x83c   :  { %v12631_v7 = vld [vmem:[#allocation12_spill] sm:$0xff] }
 0x83d   :  { %v2685_v44 = vmul.f32 %v10083_v35, %v2668_v36  ;;  %v12638_v36 = vld [vmem:[#allocation20_spill] sm:$0xff]  ;;  %v12639_v35 = vld [vmem:[#allocation97_spill] sm:$0xff] }
 0x83f   :  { %v2686_v14 = vadd.f32 %v2685_v44, %v2527_v13  ;;  %v12640_v13 = vld [vmem:[#allocation21_spill] sm:$0xff]  ;;  %v11389_v44 = vld [vmem:[%s12151_s0 + $0x20] sm:$0xff] }
 0x841   :  { %10086 = vtanh.f32 %v2686_v14  ;;  %v12641_v14 = vld [vmem:[#allocation23_spill] sm:$0xff] }
 0x84b   :  { %v10087_v30 = vpop.eup %10086 }
 0x84c   :  { %v2689_v62 = vmul.f32 %v10087_v30, %v2688_v1  ;;  %v12643_v1 = vld [vmem:[#allocation24_spill] sm:$0xff]  ;;  %v12644_v30 = vld [vmem:[#allocation26_spill] sm:$0xff] }
 0x84e   :  { %v11313_v45 = vadd.f32 %v2690_v59, %v2689_v62  ;;  %v12633_v62 = vld [vmem:[#allocation95_spill] sm:$0xff] }
 0x84f   :  { %v12645_v59 = vld [vmem:[#allocation27_spill] sm:$0xff] }
 0x850   :  { %2757 = vmatmul.mubr.f32.vlgmr.msra.gmra.mrb[24].mxu1 %v11313_v45  ;;  %7159 = vmatmul.mubr.f32.vlgmr.msra.gmra.mrb[24].mxu0 %v11313_v45 }
 0x851   :  { %8846 = vmatpush1.bf16.msra.mxu1 %v10603_v47  ;;  %8877 = vmatpush3.bf16.msra.mxu0 %v10605_v11 }
 0x852   :  { %8848 = vmatprep.subr.bf16.mxu1 %v12490_v2  ;;  %8878 = vmatprep.subr.bf16.mxu0 %v12418_v61 }
 0x853   :  { %2897 = vmatprep.mubr.f32.mxu1 %v12433_v38  ;;  %7193 = vmatprep.mubr.msk.f32.mxu0 %vm10234_vm0, %v12433_v38 }
 0x855   :  { %8850 = vmatpush1.bf16.msra.mxu1 %v12491_v0  ;;  %8880 = vmatpush3.bf16.msra.mxu0 %v12492_v31 }
 0x856   :  { %8852 = vmatprep.subr.bf16.mxu1 %v12493_v37  ;;  %8881 = vmatprep.subr.bf16.mxu0 %v12418_v61 }
 0x859   :  { %8854 = vmatpush1.bf16.msra.mxu1 %v12494_v55  ;;  %8883 = vmatpush3.bf16.msra.mxu0 %v12495_v4 }
 0x85a   :  { %8856 = vmatprep.subr.bf16.mxu1 %v12496_v63  ;;  %8884 = vmatprep.subr.bf16.mxu0 %v12418_v61 }
 0x85d   :  { %8858 = vmatpush1.bf16.msra.mxu1 %v12497_v48  ;;  %8886 = vmatpush3.bf16.msra.mxu0 %v12498_v58 }
 0x85e   :  { %8860 = vmatprep.subr.bf16.mxu1 %v12499_v54  ;;  %8887 = vmatprep.subr.bf16.mxu0 %v12418_v61 }
 0x861   :  { %8862 = vmatpush1.bf16.msra.mxu1 %v10648_v33  ;;  %8889 = vmatpush3.bf16.msra.mxu0 %v10650_v3 }
 0x862   :  { %8864 = vmatprep.subr.bf16.mxu1 %v12500_v6  ;;  %8890 = vmatprep.subr.bf16.mxu0 %v12418_v61 }
 0x865   :  { %8866 = vmatpush1.bf16.msra.mxu1 %v12501_v24  ;;  %8892 = vmatpush3.bf16.msra.mxu0 %v10660_v42 }
 0x866   :  { %8868 = vmatprep.subr.bf16.mxu1 %v10664_v29  ;;  %8893 = vmatprep.subr.bf16.mxu0 %v12418_v61 }
 0x869   :  { %8870 = vmatpush1.bf16.msra.mxu1 %v10668_v27  ;;  %8895 = vmatpush3.bf16.msra.mxu0 %v10670_v20 }
 0x86a   :  { %8872 = vmatprep.subr.bf16.mxu1 %v10674_v52  ;;  %8896 = vmatprep.subr.bf16.mxu0 %v12418_v61 }
 0x86d   :  { %8874 = vmatpush1.bf16.msra.mxu1 %v10678_v46  ;;  %8898 = vmatpush3.bf16.msra.mxu0 %v10680_v40 }
 0x86e   :  { %8924 = vmatprep.subr.bf16.mxu0 %v10313_v5  ;;  %8899 = vmatprep.subr.bf16.mxu1 %v12418_v61 }
 0x870   :  { %2898 = vmatmul.mubr.f32.vlgmr.msra.gmra.mrb[24].mxu1 %v11245_v8  ;;  %7194 = vmatmul.mubr.f32.vlgmr.msra.gmra.mrb[26].mxu0 %v11245_v8 }
 0x871   :  { %8926 = vmatpush1.bf16.msra.mxu0 %v10315_v9  ;;  %3133 = vmatprep.mubr.f32.mxu0 %v12433_v38 }
 0x872   :  { %8928 = vmatprep.subr.bf16.mxu0 %v10317_v10  ;;  %8901 = vmatpush3.bf16.msra.mxu1 %v10761_v51 }
 0x873   :  { %8902 = vmatprep.subr.bf16.mxu1 %v12418_v61  ;;  %7228 = vmatprep.mubr.msk.f32.mxu1 %vm10234_vm0, %v12433_v38 }
 0x875   :  { %8930 = vmatpush1.bf16.msra.mxu0 %v10321_v15 }
 0x876   :  { %8932 = vmatprep.subr.bf16.mxu0 %v10324_v16  ;;  %8904 = vmatpush3.bf16.msra.mxu1 %v10771_v25 }
 0x877   :  { %8905 = vmatprep.subr.bf16.mxu1 %v12418_v61 }
 0x879   :  { %8934 = vmatpush1.bf16.msra.mxu0 %v10327_v21 }
 0x87a   :  { %8936 = vmatprep.subr.bf16.mxu0 %v10330_v23  ;;  %8907 = vmatpush3.bf16.msra.mxu1 %v10780_v17 }
 0x87b   :  { %8908 = vmatprep.subr.bf16.mxu1 %v12418_v61 }
 0x87d   :  { %8938 = vmatpush1.bf16.msra.mxu0 %v10335_v32 }
 0x87e   :  { %8940 = vmatprep.subr.bf16.mxu0 %v10341_v34  ;;  %8910 = vmatpush3.bf16.msra.mxu1 %v12630_v41 }
 0x87f   :  { %8911 = vmatprep.subr.bf16.mxu1 %v12418_v61 }
 0x881   :  { %8942 = vmatpush1.bf16.msra.mxu0 %v12631_v7 }
 0x882   :  { %8944 = vmatprep.subr.bf16.mxu0 %v12632_v43  ;;  %8913 = vmatpush3.bf16.msra.mxu1 %v12633_v62 }
 0x883   :  { %8914 = vmatprep.subr.bf16.mxu1 %v12418_v61 }
 0x885   :  { %8946 = vmatpush1.bf16.msra.mxu0 %v12634_v12 }
 0x886   :  { %8948 = vmatprep.subr.bf16.mxu0 %v12635_v39  ;;  %8916 = vmatpush3.bf16.msra.mxu1 %v12636_v50  ;;  %v12652_v50 = vld [vmem:[#allocation38_spill] sm:$0xff]  ;;  %v12654_v39 = vld [vmem:[#allocation41_spill] sm:$0xff] }
 0x887   :  { %8917 = vmatprep.subr.bf16.mxu1 %v12418_v61 }
 0x889   :  { %8950 = vmatpush1.bf16.msra.mxu0 %v12637_v22  ;;  %v12651_v22 = vld [vmem:[#allocation36_spill] sm:$0xff] }
 0x88a   :  { %8952 = vmatprep.subr.bf16.mxu0 %v12638_v36  ;;  %8919 = vmatpush3.bf16.msra.mxu1 %v12639_v35  ;;  %v12647_v35 = vld [vmem:[#allocation30_spill] sm:$0xff]  ;;  %v12648_v36 = vld [vmem:[#allocation32_spill] sm:$0xff] }
 0x88b   :  { %8920 = vmatprep.subr.bf16.mxu1 %v12418_v61 }
 0x88d   :  { %8954 = vmatpush1.bf16.msra.mxu0 %v12640_v13  ;;  %v12646_v13 = vld [vmem:[#allocation29_spill] sm:$0xff] }
 0x88e   :  { %8980 = vmatprep.subr.bf16.mxu0 %v12641_v14  ;;  %8922 = vmatpush3.bf16.msra.mxu1 %v12642_v26  ;;  %v12649_v14 = vld [vmem:[#allocation33_spill] sm:$0xff]  ;;  %v12650_v26 = vld [vmem:[#allocation35_spill] sm:$0xff] }
 0x88f   :  { %8955 = vmatprep.subr.bf16.mxu1 %v12418_v61 }
 0x890   :  { %3134 = vmatmul.mubr.f32.vlgmr.msra.gmra.mrb[28].mxu0 %v11389_v44 }
 0x891   :  { %8982 = vmatpush1.bf16.msra.mxu0 %v12643_v1  ;;  %3274 = vmatprep.mubr.f32.mxu0 %v12433_v38  ;;  %v12653_v1 = vld [vmem:[#allocation39_spill] sm:$0xff] }
 0x892   :  { %8984 = vmatprep.subr.bf16.mxu0 %v12644_v30  ;;  %v12655_v30 = vld [vmem:[#allocation42_spill] sm:$0xff] }
 0x895   :  { %8986 = vmatpush1.bf16.msra.mxu0 %v12645_v59  ;;  %v12656_v59 = vld [vmem:[#allocation44_spill] sm:$0xff] }
 0x896   :  { %8988 = vmatprep.subr.bf16.mxu0 %v12646_v13  ;;  %v12657_v13 = vld [vmem:[#allocation45_spill] sm:$0xff] }
 0x899   :  { %8990 = vmatpush1.bf16.msra.mxu0 %v12647_v35  ;;  %v12658_v35 = vld [vmem:[#allocation49_spill] sm:$0xff] }
 0x89a   :  { %8992 = vmatprep.subr.bf16.mxu0 %v12648_v36  ;;  %v12670_v36 = vld [vmem:[#allocation67_spill] sm:$0xff] }
 0x89d   :  { %8994 = vmatpush1.bf16.msra.mxu0 %v12649_v14  ;;  %v12659_v14 = vld [vmem:[#allocation50_spill] sm:$0xff] }
 0x89e   :  { %8996 = vmatprep.subr.bf16.mxu0 %v12650_v26  ;;  %v12668_v26 = vld [vmem:[#allocation64_spill] sm:$0xff] }
 0x8a1   :  { %8998 = vmatpush1.bf16.msra.mxu0 %v12651_v22  ;;  %v12660_v22 = vld [vmem:[#allocation52_spill] sm:$0xff] }
 0x8a2   :  { %9000 = vmatprep.subr.bf16.mxu0 %v12652_v50  ;;  %v12661_v50 = vld [vmem:[#allocation53_spill] sm:$0xff] }
 0x8a5   :  { %9002 = vmatpush1.bf16.msra.mxu0 %v12653_v1  ;;  %v12662_v1 = vld [vmem:[#allocation55_spill] sm:$0xff] }
 0x8a6   :  { %9004 = vmatprep.subr.bf16.mxu0 %v12654_v39  ;;  %v12663_v39 = vld [vmem:[#allocation56_spill] sm:$0xff] }
 0x8a9   :  { %9006 = vmatpush1.bf16.msra.mxu0 %v12655_v30  ;;  %v12664_v30 = vld [vmem:[#allocation58_spill] sm:$0xff] }
 0x8aa   :  { %9008 = vmatprep.subr.bf16.mxu0 %v12656_v59  ;;  %v12665_v59 = vld [vmem:[#allocation59_spill] sm:$0xff] }
 0x8ad   :  { %9010 = vmatpush1.bf16.msra.mxu0 %v12657_v13  ;;  %v12666_v13 = vld [vmem:[#allocation61_spill] sm:$0xff] }
 0x8ae   :  { %9036 = vmatprep.subr.bf16.mxu0 %v12658_v35  ;;  %v12667_v35 = vld [vmem:[#allocation62_spill] sm:$0xff] }
 0x8b0   :  { %3275 = vmatmul.mubr.f32.vlgmr.msra.gmra.mrb[28].mxu0 %v11313_v45 }
 0x8b1   :  { %9038 = vmatpush1.bf16.msra.mxu0 %v12659_v14  ;;  %3436 = vmatprep.mubr.f32.mxu0 %v12433_v38  ;;  %v12669_v14 = vld [vmem:[#allocation65_spill] sm:$0xff] }
 0x8b2   :  { %9040 = vmatprep.subr.bf16.mxu0 %v12660_v22  ;;  %v12671_v22 = vld [vmem:[#allocation68_spill] sm:$0xff] }
 0x8b5   :  { %9042 = vmatpush1.bf16.msra.mxu0 %v12661_v50  ;;  %v12672_v50 = vld [vmem:[#allocation70_spill] sm:$0xff] }
 0x8b6   :  { %9044 = vmatprep.subr.bf16.mxu0 %v12662_v1  ;;  %v12673_v1 = vld [vmem:[#allocation71_spill] sm:$0xff] }
 0x8b9   :  { %9046 = vmatpush1.bf16.msra.mxu0 %v12663_v39  ;;  %v12674_v39 = vld [vmem:[#allocation73_spill] sm:$0xff] }
 0x8ba   :  { %9048 = vmatprep.subr.bf16.mxu0 %v12664_v30 }
 0x8bd   :  { %9050 = vmatpush1.bf16.msra.mxu0 %v12665_v59 }
 0x8be   :  { %9052 = vmatprep.subr.bf16.mxu0 %v12666_v13 }
 0x8c1   :  { %9054 = vmatpush1.bf16.msra.mxu0 %v12667_v35 }
 0x8c2   :  { %9056 = vmatprep.subr.bf16.mxu0 %v12668_v26 }
 0x8c5   :  { %9058 = vmatpush1.bf16.msra.mxu0 %v12669_v14 }
 0x8c6   :  { %9060 = vmatprep.subr.bf16.mxu0 %v12670_v36 }
 0x8c9   :  { %9062 = vmatpush1.bf16.msra.mxu0 %v12671_v22 }
 0x8ca   :  { %9064 = vmatprep.subr.bf16.mxu0 %v12672_v50 }
 0x8cd   :  { %9066 = vmatpush1.bf16.msra.mxu0 %v12673_v1 }
 0x8ce   :  { %9092 = vmatprep.subr.bf16.mxu0 %v12674_v39 }
 0x923   :  { %v2829_v30 = vpop.f32.mrb[24].mxu0 }
 0x924   :  { %v7160_v59 = vpop.f32.mrb[25].mxu0  ;;  %v2830_v41 = vadd.f32 %v2829_v30, %v12532_v28  ;;  %v12682_v30 = vld [vmem:[#allocation31_spill] sm:$0xff] }
 0x943   :  { %v2899_v12 = vpop.f32.mrb[24].mxu1  ;;  %v2970_v13 = vpop.f32.mrb[26].mxu0 }
 0x944   :  { %v9944_v35 = vadd.f32 %v10845_v57, %v2899_v12  ;;  %v2901_v62 = vpop.f32.mrb[25].mxu1  ;;  %v7195_v26 = vpop.f32.mrb[27].mxu0  ;;  %v2971_v39 = vadd.f32 %v2970_v13, %v10852_v49  ;;  %v12680_v13 = vld [vmem:[#allocation25_spill] sm:$0xff] }
 0x945   :  { %v9946_v14 = vadd.f32 %v12531_v56, %v2901_v62 }
 0x946   :  { %v5823_v43 = vmul.f32 -1.442695, %v9944_v35 }
 0x947   :  { %v5824_v36 = vmul.f32 -1.442695, %v9946_v14 }
 0x948   :  { %10088 = vpow2.f32 %v5823_v43 }
 0x949   :  { %10090 = vpow2.f32 %v5824_v36 }
 0x952   :  { %v10089_v22 = vpop.eup %10088 }
 0x953   :  { %v2978_v50 = vadd.f32 1.0, %v10089_v22  ;;  %v10091_v1 = vpop.eup %10090  ;;  %v12679_v22 = vld [vmem:[#allocation22_spill] sm:$0xff] }
 0x954   :  { %v2985_v7 = vadd.f32 1.0, %v10091_v1  ;;  %v12681_v1 = vld [vmem:[#allocation28_spill] sm:$0xff] }
 0x955   :  { %10092 = vrcp.f32 %v2978_v50 }
 0x956   :  { %10094 = vrcp.f32 %v2985_v7  ;;  %v12675_v7 = vld [vmem:[#allocation10_spill] sm:$0xff] }
 0x95f   :  { %v10093_v59 = vpop.eup %10092 }
 0x960   :  { %v2988_v34 = vmul.f32 %v10093_v59, %v2971_v39  ;;  %v10095_v35 = vpop.eup %10094  ;;  %v12678_v39 = vld [vmem:[#allocation19_spill] sm:$0xff]  ;;  %v12683_v59 = vld [vmem:[#allocation34_spill] sm:$0xff] }
 0x961   :  { %v2991_v26 = vsub.f32 1.0, %v10095_v35  ;;  %v2993_v36 = vmul.f32 %v10095_v35, %v11245_v8  ;;  %v12677_v8 = vld [vmem:[#allocation16_spill] sm:$0xff] }
 0x962   :  { %v2989_v12 = vadd.f32 %v2988_v34, %v2830_v41  ;;  %v12676_v34 = vld [vmem:[#allocation13_spill] sm:$0xff]  ;;  %v12685_v35 = vld [vmem:[#allocation40_spill] sm:$0xff] }
 0x964   :  { %10096 = vtanh.f32 %v2989_v12  ;;  %v12684_v12 = vld [vmem:[#allocation37_spill] sm:$0xff] }
 0x96e   :  { %v10097_v62 = vpop.eup %10096 }
 0x96f   :  { %v2992_v43 = vmul.f32 %v10097_v62, %v2991_v26  ;;  %v12687_v26 = vld [vmem:[#allocation46_spill] sm:$0xff]  ;;  %v12688_v62 = vld [vmem:[#allocation47_spill] sm:$0xff] }
 0x971   :  { %v11435_v14 = vadd.f32 %v2993_v36, %v2992_v43  ;;  %v12689_v43 = vld [vmem:[#allocation48_spill] sm:$0xff]  ;;  %v12690_v36 = vld [vmem:[#allocation51_spill] sm:$0xff] }
 0x973   :  { %7229 = vmatmul.mubr.f32.vlgmr.msra.gmra.mrb[26].mxu1 %v11435_v14 }
 0x974   :  { %8957 = vmatpush3.bf16.msra.mxu1 %v12604_v53  ;;  %7263 = vmatprep.mubr.msk.f32.mxu1 %vm10234_vm0, %v12433_v38 }
 0x975   :  { %8958 = vmatprep.subr.bf16.mxu1 %v12418_v61 }
 0x978   :  { %8960 = vmatpush3.bf16.msra.mxu1 %v12675_v7 }
 0x979   :  { %8961 = vmatprep.subr.bf16.mxu1 %v12418_v61 }
 0x97c   :  { %8963 = vmatpush3.bf16.msra.mxu1 %v12676_v34 }
 0x97d   :  { %8964 = vmatprep.subr.bf16.mxu1 %v12418_v61 }
 0x980   :  { %8966 = vmatpush3.bf16.msra.mxu1 %v12677_v8 }
 0x981   :  { %8967 = vmatprep.subr.bf16.mxu1 %v12418_v61 }
 0x983   :  { %v3276_v41 = vpop.f32.mrb[28].mxu0 }
 0x984   :  { %8969 = vmatpush3.bf16.msra.mxu1 %v12678_v39  ;;  %v3278_v50 = vpop.f32.mrb[29].mxu0 }
 0x985   :  { %8970 = vmatprep.subr.bf16.mxu1 %v12418_v61 }
 0x988   :  { %8972 = vmatpush3.bf16.msra.mxu1 %v12679_v22 }
 0x989   :  { %8973 = vmatprep.subr.bf16.mxu1 %v12418_v61 }
 0x98c   :  { %8975 = vmatpush3.bf16.msra.mxu1 %v12680_v13 }
 0x98d   :  { %8976 = vmatprep.subr.bf16.mxu1 %v12418_v61 }
 0x990   :  { %8978 = vmatpush3.bf16.msra.mxu1 %v12681_v1 }
 0x991   :  { %9011 = vmatprep.subr.bf16.mxu1 %v12418_v61 }
 0x993   :  { %7264 = vmatmul.mubr.f32.vlgmr.msra.gmra.mrb[28].mxu1 %v11389_v44  ;;  %v12686_v44 = vld [vmem:[#allocation43_spill] sm:$0xff] }
 0x994   :  { %9013 = vmatpush3.bf16.msra.mxu1 %v12682_v30  ;;  %7298 = vmatprep.mubr.msk.f32.mxu1 %vm10234_vm0, %v12433_v38  ;;  %v12699_v30 = vld [vmem:[#allocation77_spill] sm:$0xff] }
 0x995   :  { %9014 = vmatprep.subr.bf16.mxu1 %v12418_v61  ;;  %v9950_v1 = vadd.f32 %v12699_v30, %v3278_v50 }
 0x997   :  { %v5828_v13 = vmul.f32 -1.442695, %v9950_v1 }
 0x998   :  { %9016 = vmatpush3.bf16.msra.mxu1 %v12683_v59 }
 0x999   :  { %9017 = vmatprep.subr.bf16.mxu1 %v12418_v61 }
 0x99c   :  { %9019 = vmatpush3.bf16.msra.mxu1 %v12684_v12 }
 0x99d   :  { %9020 = vmatprep.subr.bf16.mxu1 %v12418_v61 }
 0x9a0   :  { %9022 = vmatpush3.bf16.msra.mxu1 %v12685_v35  ;;  %v12696_v35 = vld [vmem:[#allocation69_spill] sm:$0xff] }
 0x9a1   :  { %9023 = vmatprep.subr.bf16.mxu1 %v12418_v61 }
 0x9a4   :  { %9025 = vmatpush3.bf16.msra.mxu1 %v12686_v44  ;;  %v12694_v44 = vld [vmem:[#allocation63_spill] sm:$0xff] }
 0x9a5   :  { %9026 = vmatprep.subr.bf16.mxu1 %v12418_v61 }
 0x9a8   :  { %9028 = vmatpush3.bf16.msra.mxu1 %v12687_v26  ;;  %v12691_v26 = vld [vmem:[#allocation54_spill] sm:$0xff] }
 0x9a9   :  { %9029 = vmatprep.subr.bf16.mxu1 %v12418_v61 }
 0x9ac   :  { %9031 = vmatpush3.bf16.msra.mxu1 %v12688_v62  ;;  %v12692_v62 = vld [vmem:[#allocation57_spill] sm:$0xff] }
 0x9ad   :  { %9032 = vmatprep.subr.bf16.mxu1 %v12418_v61 }
 0x9b0   :  { %9034 = vmatpush3.bf16.msra.mxu1 %v12689_v43  ;;  %v12693_v43 = vld [vmem:[#allocation60_spill] sm:$0xff] }
 0x9b1   :  { %9067 = vmatprep.subr.bf16.mxu1 %v12418_v61 }
 0x9b3   :  { %7299 = vmatmul.mubr.f32.vlgmr.msra.gmra.mrb[30].mxu1 %v11313_v45 }
 0x9b4   :  { %9069 = vmatpush3.bf16.msra.mxu1 %v12690_v36  ;;  %7333 = vmatprep.mubr.msk.f32.mxu1 %vm10234_vm0, %v12433_v38  ;;  %v12695_v36 = vld [vmem:[#allocation66_spill] sm:$0xff] }
 0x9b5   :  { %9070 = vmatprep.subr.bf16.mxu1 %v12418_v61 }
 0x9b8   :  { %9072 = vmatpush3.bf16.msra.mxu1 %v12691_v26  ;;  %v12697_v26 = vld [vmem:[#allocation72_spill] sm:$0xff] }
 0x9b9   :  { %9073 = vmatprep.subr.bf16.mxu1 %v12418_v61 }
 0x9bc   :  { %9075 = vmatpush3.bf16.msra.mxu1 %v12692_v62 }
 0x9bd   :  { %9076 = vmatprep.subr.bf16.mxu1 %v12418_v61 }
 0x9c0   :  { %9078 = vmatpush3.bf16.msra.mxu1 %v12693_v43  ;;  %v11497_v43 = vld [vmem:[%s12158_s7] ss:$0 sm:$0xff] }
 0x9c1   :  { %9079 = vmatprep.subr.bf16.mxu1 %v12418_v61  ;;  %12698 = vst [vmem:[#allocation79_spill] sm:$0xff] %v11497_v43 }
 0x9c4   :  { %9081 = vmatpush3.bf16.msra.mxu1 %v12694_v44 }
 0x9c5   :  { %9082 = vmatprep.subr.bf16.mxu1 %v12418_v61 }
 0x9c8   :  { %9084 = vmatpush3.bf16.msra.mxu1 %v12695_v36 }
 0x9c9   :  { %9085 = vmatprep.subr.bf16.mxu1 %v12418_v61 }
 0x9cc   :  { %9087 = vmatpush3.bf16.msra.mxu1 %v12696_v35  ;;  %v9948_v35 = vadd.f32 %v12558_v18, %v3276_v41 }
 0x9cd   :  { %9088 = vmatprep.subr.bf16.mxu1 %v12418_v61 }
 0x9d0   :  { %9090 = vmatpush3.bf16.msra.mxu1 %v12697_v26  ;;  %v5827_v26 = vmul.f32 -1.442695, %v9948_v35 }
 0x9d1   :  { %9123 = vmatprep.subr.bf16.mxu1 %v12418_v61 }
 0x9d2   :  { %10098 = vpow2.f32 %v5827_v26 }
 0x9d3   :  { %10100 = vpow2.f32 %v5828_v13  ;;  %v12703_v13 = vld [vmem:[#allocation14_spill] sm:$0xff] }
 0x9dc   :  { %v10099_v22 = vpop.eup %10098 }
 0x9dd   :  { %v3355_v39 = vadd.f32 1.0, %v10099_v22  ;;  %v10101_v8 = vpop.eup %10100 }
 0x9df   :  { %10102 = vrcp.f32 %v3355_v39 }
 0xa46   :  { %v3061_v62 = vpop.f32.mrb[26].mxu1 }
 0xa47   :  { %v3062_v44 = vadd.f32 %v11497_v43, %v3061_v62  ;;  %v7230_v12 = vpop.f32.mrb[27].mxu1  ;;  %v3362_v62 = vadd.f32 1.0, %v10101_v8  ;;  %v12702_v8 = vld [vmem:[#allocation12_spill] sm:$0xff] }
 0xa49   :  { %5825 = vst [vmem:[%s12159_s8 + $0x18] sm:$0xff] %v3062_v44  ;;  %v10103_v44 = vpop.eup %10102  ;;  %10104 = vrcp.f32 %v3362_v62  ;;  %v12707_v62 = vld [vmem:[#allocation96_spill] sm:$0xff] }
 0xa53   :  { %v10105_v26 = vpop.eup %10104 }
 0xa54   :  { %v3368_v50 = vsub.f32 1.0, %v10105_v26  ;;  %v3370_v22 = vmul.f32 %v10105_v26, %v11313_v45  ;;  %v12700_v45 = vld [vmem:[#allocation11_spill] sm:$0xff] }
 0xa55   :  { %v12712_v26 = vld [vmem:[#allocation23_spill] sm:$0xff] }
 0xa66   :  { %v3206_v36 = vpop.f32.mrb[28].mxu1 }
 0xa67   :  { %v7265_v59 = vpop.f32.mrb[29].mxu1  ;;  %v3207_v41 = vadd.f32 %v3206_v36, %v12489_v19  ;;  %v12706_v36 = vld [vmem:[#allocation17_spill] sm:$0xff] }
 0xa86   :  { %v3347_v12 = vpop.f32.mrb[30].mxu1 }
 0xa87   :  { %v3348_v43 = vadd.f32 %v3347_v12, %v12488_v60  ;;  %v7300_v34 = vpop.f32.mrb[31].mxu1  ;;  %v12708_v12 = vld [vmem:[#allocation18_spill] sm:$0xff] }
 0xa88   :  { %v12701_v34 = vld [vmem:[#allocation94_spill] sm:$0xff] }
 0xa89   :  { %v3365_v59 = vmul.f32 %v10103_v44, %v3348_v43  ;;  %v12705_v43 = vld [vmem:[#allocation15_spill] sm:$0xff]  ;;  %v12709_v44 = vld [vmem:[#allocation20_spill] sm:$0xff] }
 0xa8b   :  { %v3366_v35 = vadd.f32 %v3365_v59, %v3207_v41  ;;  %v12710_v41 = vld [vmem:[#allocation97_spill] sm:$0xff] }
 0xa8c   :  { %v12711_v59 = vld [vmem:[#allocation21_spill] sm:$0xff] }
 0xa8d   :  { %10106 = vtanh.f32 %v3366_v35  ;;  %v11584_v35 = vld [vmem:[%s12151_s0 + $0x28] sm:$0xff] }
 0xa97   :  { %v10107_v1 = vpop.eup %10106 }
 0xa98   :  { %v3369_v30 = vmul.f32 %v10107_v1, %v3368_v50  ;;  %v12713_v50 = vld [vmem:[#allocation98_spill] sm:$0xff]  ;;  %v12714_v1 = vld [vmem:[#allocation24_spill] sm:$0xff] }
 0xa9a   :  { %v11508_v39 = vadd.f32 %v3370_v22, %v3369_v30  ;;  %v12704_v30 = vld [vmem:[#allocation95_spill] sm:$0xff]  ;;  %v12715_v22 = vld [vmem:[#allocation26_spill] sm:$0xff] }
 0xa9c   :  { %3437 = vmatmul.mubr.f32.vlgmr.msra.gmra.mrb[30].mxu0 %v11508_v39  ;;  %7334 = vmatmul.mubr.f32.vlgmr.msra.gmra.mrb[32].mxu1 %v11508_v39 }
 0xa9d   :  { %9094 = vmatpush1.bf16.msra.mxu0 %v10603_v47  ;;  %9125 = vmatpush3.bf16.msra.mxu1 %v10605_v11 }
 0xa9e   :  { %9096 = vmatprep.subr.bf16.mxu0 %v12490_v2  ;;  %9126 = vmatprep.subr.bf16.mxu1 %v12418_v61 }
 0xa9f   :  { %3577 = vmatprep.mubr.f32.mxu0 %v12433_v38  ;;  %7368 = vmatprep.mubr.msk.f32.mxu1 %vm10234_vm0, %v12433_v38 }
 0xaa1   :  { %9098 = vmatpush1.bf16.msra.mxu0 %v12491_v0  ;;  %9128 = vmatpush3.bf16.msra.mxu1 %v12492_v31 }
 0xaa2   :  { %9100 = vmatprep.subr.bf16.mxu0 %v12493_v37  ;;  %9129 = vmatprep.subr.bf16.mxu1 %v12418_v61 }
 0xaa5   :  { %9102 = vmatpush1.bf16.msra.mxu0 %v12494_v55  ;;  %9131 = vmatpush3.bf16.msra.mxu1 %v12495_v4 }
 0xaa6   :  { %9104 = vmatprep.subr.bf16.mxu0 %v12496_v63  ;;  %9132 = vmatprep.subr.bf16.mxu1 %v12418_v61 }
 0xaa9   :  { %9106 = vmatpush1.bf16.msra.mxu0 %v12497_v48  ;;  %9134 = vmatpush3.bf16.msra.mxu1 %v12498_v58 }
 0xaaa   :  { %9108 = vmatprep.subr.bf16.mxu0 %v12499_v54  ;;  %9135 = vmatprep.subr.bf16.mxu1 %v12418_v61 }
 0xaad   :  { %9110 = vmatpush1.bf16.msra.mxu0 %v10648_v33  ;;  %9137 = vmatpush3.bf16.msra.mxu1 %v10650_v3 }
 0xaae   :  { %9112 = vmatprep.subr.bf16.mxu0 %v12500_v6  ;;  %9138 = vmatprep.subr.bf16.mxu1 %v12418_v61 }
 0xab1   :  { %9114 = vmatpush1.bf16.msra.mxu0 %v12501_v24  ;;  %9140 = vmatpush3.bf16.msra.mxu1 %v10660_v42 }
 0xab2   :  { %9116 = vmatprep.subr.bf16.mxu0 %v10664_v29  ;;  %9141 = vmatprep.subr.bf16.mxu1 %v12418_v61 }
 0xab5   :  { %9118 = vmatpush1.bf16.msra.mxu0 %v10668_v27  ;;  %9143 = vmatpush3.bf16.msra.mxu1 %v10670_v20 }
 0xab6   :  { %9120 = vmatprep.subr.bf16.mxu0 %v10674_v52  ;;  %9144 = vmatprep.subr.bf16.mxu1 %v12418_v61 }
 0xab9   :  { %9122 = vmatpush1.bf16.msra.mxu0 %v10678_v46  ;;  %9146 = vmatpush3.bf16.msra.mxu1 %v10680_v40 }
 0xaba   :  { %9172 = vmatprep.subr.bf16.mxu1 %v10313_v5  ;;  %9147 = vmatprep.subr.bf16.mxu0 %v12418_v61 }
 0xabc   :  { %3578 = vmatmul.mubr.f32.vlgmr.msra.gmra.mrb[30].mxu0 %v11435_v14  ;;  %7369 = vmatmul.mubr.f32.vlgmr.msra.gmra.mrb[34].mxu1 %v11435_v14 }
 0xabd   :  { %9174 = vmatpush1.bf16.msra.mxu1 %v10315_v9  ;;  %3813 = vmatprep.mubr.f32.mxu1 %v12433_v38 }
 0xabe   :  { %9176 = vmatprep.subr.bf16.mxu1 %v10317_v10  ;;  %9149 = vmatpush3.bf16.msra.mxu0 %v10761_v51 }
 0xabf   :  { %9150 = vmatprep.subr.bf16.mxu0 %v12418_v61  ;;  %7403 = vmatprep.mubr.msk.f32.mxu0 %vm10234_vm0, %v12433_v38 }
 0xac1   :  { %9178 = vmatpush1.bf16.msra.mxu1 %v10321_v15 }
 0xac2   :  { %9180 = vmatprep.subr.bf16.mxu1 %v10324_v16  ;;  %9152 = vmatpush3.bf16.msra.mxu0 %v10771_v25 }
 0xac3   :  { %9153 = vmatprep.subr.bf16.mxu0 %v12418_v61 }
 0xac5   :  { %9182 = vmatpush1.bf16.msra.mxu1 %v10327_v21 }
 0xac6   :  { %9184 = vmatprep.subr.bf16.mxu1 %v10330_v23  ;;  %9155 = vmatpush3.bf16.msra.mxu0 %v10780_v17 }
 0xac7   :  { %9156 = vmatprep.subr.bf16.mxu0 %v12418_v61 }
 0xac9   :  { %9186 = vmatpush1.bf16.msra.mxu1 %v10335_v32 }
 0xaca   :  { %9188 = vmatprep.subr.bf16.mxu1 %v12700_v45  ;;  %9158 = vmatpush3.bf16.msra.mxu0 %v12701_v34 }
 0xacb   :  { %9159 = vmatprep.subr.bf16.mxu0 %v12418_v61 }
 0xacd   :  { %9190 = vmatpush1.bf16.msra.mxu1 %v12702_v8 }
 0xace   :  { %9192 = vmatprep.subr.bf16.mxu1 %v12703_v13  ;;  %9161 = vmatpush3.bf16.msra.mxu0 %v12704_v30 }
 0xacf   :  { %9162 = vmatprep.subr.bf16.mxu0 %v12418_v61 }
 0xad1   :  { %9194 = vmatpush1.bf16.msra.mxu1 %v12705_v43  ;;  %v12725_v43 = vld [vmem:[#allocation41_spill] sm:$0xff] }
 0xad2   :  { %9196 = vmatprep.subr.bf16.mxu1 %v12706_v36  ;;  %9164 = vmatpush3.bf16.msra.mxu0 %v12707_v62  ;;  %v12722_v62 = vld [vmem:[#allocation36_spill] sm:$0xff]  ;;  %v12723_v36 = vld [vmem:[#allocation38_spill] sm:$0xff] }
 0xad3   :  { %9165 = vmatprep.subr.bf16.mxu0 %v12418_v61 }
 0xad5   :  { %9198 = vmatpush1.bf16.msra.mxu1 %v12708_v12  ;;  %v12719_v12 = vld [vmem:[#allocation32_spill] sm:$0xff] }
 0xad6   :  { %9200 = vmatprep.subr.bf16.mxu1 %v12709_v44  ;;  %9167 = vmatpush3.bf16.msra.mxu0 %v12710_v41  ;;  %v12717_v41 = vld [vmem:[#allocation29_spill] sm:$0xff]  ;;  %v12718_v44 = vld [vmem:[#allocation30_spill] sm:$0xff] }
 0xad7   :  { %9168 = vmatprep.subr.bf16.mxu0 %v12418_v61 }
 0xad9   :  { %9202 = vmatpush1.bf16.msra.mxu1 %v12711_v59  ;;  %v12716_v59 = vld [vmem:[#allocation27_spill] sm:$0xff] }
 0xada   :  { %9228 = vmatprep.subr.bf16.mxu1 %v12712_v26  ;;  %9170 = vmatpush3.bf16.msra.mxu0 %v12713_v50  ;;  %v12720_v26 = vld [vmem:[#allocation33_spill] sm:$0xff]  ;;  %v12721_v50 = vld [vmem:[#allocation35_spill] sm:$0xff] }
 0xadb   :  { %9203 = vmatprep.subr.bf16.mxu0 %v12418_v61 }
 0xadc   :  { %3814 = vmatmul.mubr.f32.vlgmr.msra.gmra.mrb[36].mxu1 %v11584_v35 }
 0xadd   :  { %9230 = vmatpush1.bf16.msra.mxu1 %v12714_v1  ;;  %3954 = vmatprep.mubr.f32.mxu1 %v12433_v38  ;;  %v12724_v1 = vld [vmem:[#allocation39_spill] sm:$0xff] }
 0xade   :  { %9232 = vmatprep.subr.bf16.mxu1 %v12715_v22  ;;  %v12726_v22 = vld [vmem:[#allocation42_spill] sm:$0xff] }
 0xae1   :  { %9234 = vmatpush1.bf16.msra.mxu1 %v12716_v59  ;;  %v12727_v59 = vld [vmem:[#allocation44_spill] sm:$0xff] }
 0xae2   :  { %9236 = vmatprep.subr.bf16.mxu1 %v12717_v41  ;;  %v12728_v41 = vld [vmem:[#allocation45_spill] sm:$0xff] }
 0xae5   :  { %9238 = vmatpush1.bf16.msra.mxu1 %v12718_v44  ;;  %v12729_v44 = vld [vmem:[#allocation49_spill] sm:$0xff] }
 0xae6   :  { %9240 = vmatprep.subr.bf16.mxu1 %v12719_v12  ;;  %v12741_v12 = vld [vmem:[#allocation67_spill] sm:$0xff] }
 0xae9   :  { %9242 = vmatpush1.bf16.msra.mxu1 %v12720_v26  ;;  %v12730_v26 = vld [vmem:[#allocation50_spill] sm:$0xff] }
 0xaea   :  { %9244 = vmatprep.subr.bf16.mxu1 %v12721_v50  ;;  %v12739_v50 = vld [vmem:[#allocation64_spill] sm:$0xff] }
 0xaed   :  { %9246 = vmatpush1.bf16.msra.mxu1 %v12722_v62  ;;  %v12731_v62 = vld [vmem:[#allocation52_spill] sm:$0xff] }
 0xaee   :  { %9248 = vmatprep.subr.bf16.mxu1 %v12723_v36  ;;  %v12732_v36 = vld [vmem:[#allocation53_spill] sm:$0xff] }
 0xaf1   :  { %9250 = vmatpush1.bf16.msra.mxu1 %v12724_v1  ;;  %v12733_v1 = vld [vmem:[#allocation55_spill] sm:$0xff] }
 0xaf2   :  { %9252 = vmatprep.subr.bf16.mxu1 %v12725_v43  ;;  %v12734_v43 = vld [vmem:[#allocation56_spill] sm:$0xff] }
 0xaf5   :  { %9254 = vmatpush1.bf16.msra.mxu1 %v12726_v22  ;;  %v12735_v22 = vld [vmem:[#allocation58_spill] sm:$0xff] }
 0xaf6   :  { %9256 = vmatprep.subr.bf16.mxu1 %v12727_v59  ;;  %v12736_v59 = vld [vmem:[#allocation59_spill] sm:$0xff] }
 0xaf9   :  { %9258 = vmatpush1.bf16.msra.mxu1 %v12728_v41  ;;  %v12737_v41 = vld [vmem:[#allocation61_spill] sm:$0xff] }
 0xafa   :  { %9284 = vmatprep.subr.bf16.mxu1 %v12729_v44  ;;  %v12738_v44 = vld [vmem:[#allocation62_spill] sm:$0xff] }
 0xafc   :  { %3955 = vmatmul.mubr.f32.vlgmr.msra.gmra.mrb[36].mxu1 %v11508_v39 }
 0xafd   :  { %9286 = vmatpush1.bf16.msra.mxu1 %v12730_v26  ;;  %4116 = vmatprep.mubr.f32.mxu1 %v12433_v38  ;;  %v12740_v26 = vld [vmem:[#allocation65_spill] sm:$0xff] }
 0xafe   :  { %9288 = vmatprep.subr.bf16.mxu1 %v12731_v62  ;;  %v12742_v62 = vld [vmem:[#allocation68_spill] sm:$0xff] }
 0xb01   :  { %9290 = vmatpush1.bf16.msra.mxu1 %v12732_v36  ;;  %v12743_v36 = vld [vmem:[#allocation70_spill] sm:$0xff] }
 0xb02   :  { %9292 = vmatprep.subr.bf16.mxu1 %v12733_v1  ;;  %v12744_v1 = vld [vmem:[#allocation71_spill] sm:$0xff] }
 0xb05   :  { %9294 = vmatpush1.bf16.msra.mxu1 %v12734_v43  ;;  %v12745_v43 = vld [vmem:[#allocation73_spill] sm:$0xff] }
 0xb06   :  { %9296 = vmatprep.subr.bf16.mxu1 %v12735_v22 }
 0xb09   :  { %9298 = vmatpush1.bf16.msra.mxu1 %v12736_v59 }
 0xb0a   :  { %9300 = vmatprep.subr.bf16.mxu1 %v12737_v41 }
 0xb0d   :  { %9302 = vmatpush1.bf16.msra.mxu1 %v12738_v44 }
 0xb0e   :  { %9304 = vmatprep.subr.bf16.mxu1 %v12739_v50 }
 0xb11   :  { %9306 = vmatpush1.bf16.msra.mxu1 %v12740_v26 }
 0xb12   :  { %9308 = vmatprep.subr.bf16.mxu1 %v12741_v12 }
 0xb15   :  { %9310 = vmatpush1.bf16.msra.mxu1 %v12742_v62 }
 0xb16   :  { %9312 = vmatprep.subr.bf16.mxu1 %v12743_v36 }
 0xb19   :  { %9314 = vmatpush1.bf16.msra.mxu1 %v12744_v1 }
 0xb1a   :  { %9340 = vmatprep.subr.bf16.mxu1 %v12745_v43 }
 0xb6f   :  { %v3509_v22 = vpop.f32.mrb[32].mxu1 }
 0xb70   :  { %v7335_v59 = vpop.f32.mrb[33].mxu1  ;;  %v3510_v45 = vadd.f32 %v3509_v22, %v12532_v28  ;;  %v12753_v22 = vld [vmem:[#allocation34_spill] sm:$0xff] }
 0xb8f   :  { %v3579_v30 = vpop.f32.mrb[30].mxu0  ;;  %v3650_v41 = vpop.f32.mrb[34].mxu1 }
 0xb90   :  { %v9952_v44 = vadd.f32 %v10845_v57, %v3579_v30  ;;  %v3581_v13 = vpop.f32.mrb[31].mxu0  ;;  %v7370_v50 = vpop.f32.mrb[35].mxu1  ;;  %v3651_v43 = vadd.f32 %v3650_v41, %v10852_v49  ;;  %v12751_v41 = vld [vmem:[#allocation28_spill] sm:$0xff] }
 0xb91   :  { %v9954_v26 = vadd.f32 %v12531_v56, %v3581_v13 }
 0xb92   :  { %v5829_v8 = vmul.f32 -1.442695, %v9952_v44 }
 0xb93   :  { %v5830_v12 = vmul.f32 -1.442695, %v9954_v26 }
 0xb94   :  { %10108 = vpow2.f32 %v5829_v8 }
 0xb95   :  { %10110 = vpow2.f32 %v5830_v12 }
 0xb9e   :  { %v10109_v62 = vpop.eup %10108 }
 0xb9f   :  { %v3658_v36 = vadd.f32 1.0, %v10109_v62  ;;  %v10111_v1 = vpop.eup %10110  ;;  %v12750_v62 = vld [vmem:[#allocation25_spill] sm:$0xff] }
 0xba0   :  { %v3665_v34 = vadd.f32 1.0, %v10111_v1  ;;  %v12752_v1 = vld [vmem:[#allocation31_spill] sm:$0xff] }
 0xba1   :  { %10112 = vrcp.f32 %v3658_v36  ;;  %v12749_v36 = vld [vmem:[#allocation22_spill] sm:$0xff] }
 0xba2   :  { %10114 = vrcp.f32 %v3665_v34  ;;  %v12748_v34 = vld [vmem:[#allocation19_spill] sm:$0xff] }
 0xbab   :  { %v10113_v59 = vpop.eup %10112 }
 0xbac   :  { %v3668_v32 = vmul.f32 %v10113_v59, %v3651_v43  ;;  %v10115_v44 = vpop.eup %10114  ;;  %v12754_v59 = vld [vmem:[#allocation37_spill] sm:$0xff] }
 0xbad   :  { %v3671_v50 = vsub.f32 1.0, %v10115_v44  ;;  %v3673_v12 = vmul.f32 %v10115_v44, %v11435_v14  ;;  %v12747_v14 = vld [vmem:[#allocation16_spill] sm:$0xff]  ;;  %v12757_v44 = vld [vmem:[#allocation46_spill] sm:$0xff] }
 0xbae   :  { %v3669_v30 = vadd.f32 %v3668_v32, %v3510_v45  ;;  %v12746_v32 = vld [vmem:[#allocation13_spill] sm:$0xff] }
 0xbb0   :  { %10116 = vtanh.f32 %v3669_v30  ;;  %v12755_v30 = vld [vmem:[#allocation40_spill] sm:$0xff] }
 0xbba   :  { %v10117_v13 = vpop.eup %10116 }
 0xbbb   :  { %v3672_v8 = vmul.f32 %v10117_v13, %v3671_v50  ;;  %v12758_v50 = vld [vmem:[#allocation47_spill] sm:$0xff]  ;;  %v12759_v13 = vld [vmem:[#allocation48_spill] sm:$0xff] }
 0xbbd   :  { %v11630_v26 = vadd.f32 %v3673_v12, %v3672_v8  ;;  %v12760_v8 = vld [vmem:[#allocation51_spill] sm:$0xff]  ;;  %v12761_v12 = vld [vmem:[#allocation54_spill] sm:$0xff] }
 0xbbf   :  { %7404 = vmatmul.mubr.f32.vlgmr.msra.gmra.mrb[32].mxu0 %v11630_v26 }
 0xbc0   :  { %9205 = vmatpush3.bf16.msra.mxu0 %v12604_v53  ;;  %7438 = vmatprep.mubr.msk.f32.mxu0 %vm10234_vm0, %v12433_v38 }
 0xbc1   :  { %9206 = vmatprep.subr.bf16.mxu0 %v12418_v61 }
 0xbc4   :  { %9208 = vmatpush3.bf16.msra.mxu0 %v12675_v7 }
 0xbc5   :  { %9209 = vmatprep.subr.bf16.mxu0 %v12418_v61 }
 0xbc8   :  { %9211 = vmatpush3.bf16.msra.mxu0 %v12746_v32 }
 0xbc9   :  { %9212 = vmatprep.subr.bf16.mxu0 %v12418_v61 }
 0xbcc   :  { %9214 = vmatpush3.bf16.msra.mxu0 %v12747_v14 }
 0xbcd   :  { %9215 = vmatprep.subr.bf16.mxu0 %v12418_v61 }
 0xbcf   :  { %v3956_v45 = vpop.f32.mrb[36].mxu1 }
 0xbd0   :  { %9217 = vmatpush3.bf16.msra.mxu0 %v12748_v34  ;;  %v3958_v43 = vpop.f32.mrb[37].mxu1 }
 0xbd1   :  { %9218 = vmatprep.subr.bf16.mxu0 %v12418_v61 }
 0xbd4   :  { %9220 = vmatpush3.bf16.msra.mxu0 %v12749_v36 }
 0xbd5   :  { %9221 = vmatprep.subr.bf16.mxu0 %v12418_v61 }
 0xbd8   :  { %9223 = vmatpush3.bf16.msra.mxu0 %v12750_v62 }
 0xbd9   :  { %9224 = vmatprep.subr.bf16.mxu0 %v12418_v61 }
 0xbdc   :  { %9226 = vmatpush3.bf16.msra.mxu0 %v12751_v41 }
 0xbdd   :  { %9259 = vmatprep.subr.bf16.mxu0 %v12418_v61 }
 0xbdf   :  { %7439 = vmatmul.mubr.f32.vlgmr.msra.gmra.mrb[34].mxu0 %v11584_v35  ;;  %v12756_v35 = vld [vmem:[#allocation43_spill] sm:$0xff] }
 0xbe0   :  { %9261 = vmatpush3.bf16.msra.mxu0 %v12752_v1  ;;  %7473 = vmatprep.mubr.msk.f32.mxu0 %vm10234_vm0, %v12433_v38 }
 0xbe1   :  { %9262 = vmatprep.subr.bf16.mxu0 %v12418_v61 }
 0xbe4   :  { %9264 = vmatpush3.bf16.msra.mxu0 %v12753_v22 }
 0xbe5   :  { %9265 = vmatprep.subr.bf16.mxu0 %v12418_v61 }
 0xbe8   :  { %9267 = vmatpush3.bf16.msra.mxu0 %v12754_v59 }
 0xbe9   :  { %9268 = vmatprep.subr.bf16.mxu0 %v12418_v61 }
 0xbec   :  { %9270 = vmatpush3.bf16.msra.mxu0 %v12755_v30 }
 0xbed   :  { %9271 = vmatprep.subr.bf16.mxu0 %v12418_v61 }
 0xbf0   :  { %9273 = vmatpush3.bf16.msra.mxu0 %v12756_v35  ;;  %v12766_v35 = vld [vmem:[#allocation69_spill] sm:$0xff] }
 0xbf1   :  { %9274 = vmatprep.subr.bf16.mxu0 %v12418_v61 }
 0xbf4   :  { %9276 = vmatpush3.bf16.msra.mxu0 %v12757_v44  ;;  %v12764_v44 = vld [vmem:[#allocation63_spill] sm:$0xff] }
 0xbf5   :  { %9277 = vmatprep.subr.bf16.mxu0 %v12418_v61 }
 0xbf8   :  { %9279 = vmatpush3.bf16.msra.mxu0 %v12758_v50  ;;  %v12762_v50 = vld [vmem:[#allocation57_spill] sm:$0xff] }
 0xbf9   :  { %9280 = vmatprep.subr.bf16.mxu0 %v12418_v61 }
 0xbfc   :  { %9282 = vmatpush3.bf16.msra.mxu0 %v12759_v13  ;;  %v12763_v13 = vld [vmem:[#allocation60_spill] sm:$0xff] }
 0xbfd   :  { %9315 = vmatprep.subr.bf16.mxu0 %v12418_v61 }
 0xbff   :  { %7474 = vmatmul.mubr.f32.vlgmr.msra.gmra.mrb[36].mxu0 %v11508_v39 }
 0xc00   :  { %9317 = vmatpush3.bf16.msra.mxu0 %v12760_v8  ;;  %7508 = vmatprep.mubr.msk.f32.mxu0 %vm10234_vm0, %v12433_v38  ;;  %v12765_v8 = vld [vmem:[#allocation66_spill] sm:$0xff] }
 0xc01   :  { %9318 = vmatprep.subr.bf16.mxu0 %v12418_v61 }
 0xc04   :  { %9320 = vmatpush3.bf16.msra.mxu0 %v12761_v12  ;;  %v12767_v12 = vld [vmem:[#allocation72_spill] sm:$0xff] }
 0xc05   :  { %9321 = vmatprep.subr.bf16.mxu0 %v12418_v61 }
 0xc08   :  { %9323 = vmatpush3.bf16.msra.mxu0 %v12762_v50 }
 0xc09   :  { %9324 = vmatprep.subr.bf16.mxu0 %v12418_v61 }
 0xc0c   :  { %9326 = vmatpush3.bf16.msra.mxu0 %v12763_v13  ;;  %v12768_v13 = vld [vmem:[#allocation79_spill] sm:$0xff] }
 0xc0d   :  { %9327 = vmatprep.subr.bf16.mxu0 %v12418_v61 }
 0xc10   :  { %9329 = vmatpush3.bf16.msra.mxu0 %v12764_v44 }
 0xc11   :  { %9330 = vmatprep.subr.bf16.mxu0 %v12418_v61 }
 0xc14   :  { %9332 = vmatpush3.bf16.msra.mxu0 %v12765_v8  ;;  %v9956_v8 = vadd.f32 %v12558_v18, %v3956_v45 }
 0xc15   :  { %9333 = vmatprep.subr.bf16.mxu0 %v12418_v61 }
 0xc16   :  { %v5833_v1 = vmul.f32 -1.442695, %v9956_v8 }
 0xc18   :  { %9335 = vmatpush3.bf16.msra.mxu0 %v12766_v35  ;;  %10118 = vpow2.f32 %v5833_v1  ;;  %v12769_v35 = vld [vmem:[#allocation77_spill] sm:$0xff] }
 0xc19   :  { %9336 = vmatprep.subr.bf16.mxu0 %v12418_v61  ;;  %v9958_v41 = vadd.f32 %v12769_v35, %v3958_v43 }
 0xc1b   :  { %v5834_v62 = vmul.f32 -1.442695, %v9958_v41 }
 0xc1c   :  { %9338 = vmatpush3.bf16.msra.mxu0 %v12767_v12 }
 0xc1d   :  { %9371 = vmatprep.subr.bf16.mxu0 %v12418_v61  ;;  %10120 = vpow2.f32 %v5834_v62 }
 0xc22   :  { %v10119_v12 = vpop.eup %10118 }
 0xc23   :  { %v4035_v36 = vadd.f32 1.0, %v10119_v12  ;;  %v12776_v12 = vld [vmem:[#allocation15_spill] sm:$0xff] }
 0xc25   :  { %10122 = vrcp.f32 %v4035_v36 }
 0xc27   :  { %v10121_v34 = vpop.eup %10120 }
 0xc92   :  { %v3741_v50 = vpop.f32.mrb[32].mxu0 }
 0xc93   :  { %v3742_v30 = vadd.f32 %v12768_v13, %v3741_v50  ;;  %v7405_v59 = vpop.f32.mrb[33].mxu0  ;;  %v4042_v50 = vadd.f32 1.0, %v10121_v34  ;;  %v12772_v34 = vld [vmem:[#allocation94_spill] sm:$0xff] }
 0xc95   :  { %5831 = vst [vmem:[%s12159_s8 + $0x20] sm:$0xff] %v3742_v30  ;;  %v10123_v30 = vpop.eup %10122  ;;  %10124 = vrcp.f32 %v4042_v50  ;;  %v12777_v50 = vld [vmem:[#allocation17_spill] sm:$0xff] }
 0xc9f   :  { %v10125_v1 = vpop.eup %10124 }
 0xca0   :  { %v4048_v43 = vsub.f32 1.0, %v10125_v1  ;;  %v4050_v62 = vmul.f32 %v10125_v1, %v11508_v39  ;;  %v12770_v39 = vld [vmem:[#allocation9_spill] sm:$0xff]  ;;  %v11774_v1 = vld [vmem:[%s12151_s0 + $0x30] sm:$0xff] }
 0xcb2   :  { %v3886_v44 = vpop.f32.mrb[34].mxu0 }
 0xcb3   :  { %v7440_v22 = vpop.f32.mrb[35].mxu0  ;;  %v3887_v45 = vadd.f32 %v3886_v44, %v12489_v19  ;;  %v12774_v44 = vld [vmem:[#allocation14_spill] sm:$0xff] }
 0xcd2   :  { %v4027_v59 = vpop.f32.mrb[36].mxu0 }
 0xcd3   :  { %v4028_v13 = vadd.f32 %v4027_v59, %v12488_v60  ;;  %v7475_v14 = vpop.f32.mrb[37].mxu0  ;;  %v12778_v59 = vld [vmem:[#allocation96_spill] sm:$0xff] }
 0xcd4   :  { %v12771_v14 = vld [vmem:[#allocation11_spill] sm:$0xff] }
 0xcd5   :  { %v4045_v22 = vmul.f32 %v10123_v30, %v4028_v13  ;;  %v12775_v13 = vld [vmem:[#allocation95_spill] sm:$0xff]  ;;  %v12779_v30 = vld [vmem:[#allocation18_spill] sm:$0xff] }
 0xcd7   :  { %v4046_v8 = vadd.f32 %v4045_v22, %v3887_v45  ;;  %v12780_v45 = vld [vmem:[#allocation20_spill] sm:$0xff]  ;;  %v12781_v22 = vld [vmem:[#allocation97_spill] sm:$0xff] }
 0xcd9   :  { %10126 = vtanh.f32 %v4046_v8  ;;  %v12782_v8 = vld [vmem:[#allocation21_spill] sm:$0xff] }
 0xce3   :  { %v10127_v41 = vpop.eup %10126 }
 0xce4   :  { %v4049_v35 = vmul.f32 %v10127_v41, %v4048_v43  ;;  %v12783_v43 = vld [vmem:[#allocation23_spill] sm:$0xff]  ;;  %v12784_v41 = vld [vmem:[#allocation98_spill] sm:$0xff] }
 0xce6   :  { %v11698_v36 = vadd.f32 %v4050_v62, %v4049_v35  ;;  %v12773_v35 = vld [vmem:[#allocation12_spill] sm:$0xff] }
 0xce7   :  { %v12785_v62 = vld [vmem:[#allocation24_spill] sm:$0xff] }
 0xce8   :  { %4117 = vmatmul.mubr.f32.vlgmr.msra.gmra.mrb[38].mxu1 %v11698_v36  ;;  %7509 = vmatmul.mubr.f32.vlgmr.msra.gmra.mrb[38].mxu0 %v11698_v36 }
 0xce9   :  { %9342 = vmatpush1.bf16.msra.mxu1 %v10603_v47  ;;  %9373 = vmatpush3.bf16.msra.mxu0 %v10605_v11 }
 0xcea   :  { %9344 = vmatprep.subr.bf16.mxu1 %v12490_v2  ;;  %9374 = vmatprep.subr.bf16.mxu0 %v12418_v61 }
 0xceb   :  { %4257 = vmatprep.mubr.f32.mxu1 %v12433_v38  ;;  %7543 = vmatprep.mubr.msk.f32.mxu0 %vm10234_vm0, %v12433_v38 }
 0xced   :  { %9346 = vmatpush1.bf16.msra.mxu1 %v12491_v0  ;;  %9376 = vmatpush3.bf16.msra.mxu0 %v12492_v31 }
 0xcee   :  { %9348 = vmatprep.subr.bf16.mxu1 %v12493_v37  ;;  %9377 = vmatprep.subr.bf16.mxu0 %v12418_v61 }
 0xcf1   :  { %9350 = vmatpush1.bf16.msra.mxu1 %v12494_v55  ;;  %9379 = vmatpush3.bf16.msra.mxu0 %v12495_v4 }
 0xcf2   :  { %9352 = vmatprep.subr.bf16.mxu1 %v12496_v63  ;;  %9380 = vmatprep.subr.bf16.mxu0 %v12418_v61 }
 0xcf5   :  { %9354 = vmatpush1.bf16.msra.mxu1 %v12497_v48  ;;  %9382 = vmatpush3.bf16.msra.mxu0 %v12498_v58 }
 0xcf6   :  { %9356 = vmatprep.subr.bf16.mxu1 %v12499_v54  ;;  %9383 = vmatprep.subr.bf16.mxu0 %v12418_v61 }
 0xcf9   :  { %9358 = vmatpush1.bf16.msra.mxu1 %v10648_v33  ;;  %9385 = vmatpush3.bf16.msra.mxu0 %v10650_v3 }
 0xcfa   :  { %9360 = vmatprep.subr.bf16.mxu1 %v12500_v6  ;;  %9386 = vmatprep.subr.bf16.mxu0 %v12418_v61 }
 0xcfd   :  { %9362 = vmatpush1.bf16.msra.mxu1 %v12501_v24  ;;  %9388 = vmatpush3.bf16.msra.mxu0 %v10660_v42 }
 0xcfe   :  { %9364 = vmatprep.subr.bf16.mxu1 %v10664_v29  ;;  %9389 = vmatprep.subr.bf16.mxu0 %v12418_v61 }
 0xd01   :  { %9366 = vmatpush1.bf16.msra.mxu1 %v10668_v27  ;;  %9391 = vmatpush3.bf16.msra.mxu0 %v10670_v20 }
 0xd02   :  { %9368 = vmatprep.subr.bf16.mxu1 %v10674_v52  ;;  %9392 = vmatprep.subr.bf16.mxu0 %v12418_v61 }
 0xd05   :  { %9370 = vmatpush1.bf16.msra.mxu1 %v10678_v46  ;;  %9394 = vmatpush3.bf16.msra.mxu0 %v10680_v40 }
 0xd06   :  { %9420 = vmatprep.subr.bf16.mxu0 %v10313_v5  ;;  %9395 = vmatprep.subr.bf16.mxu1 %v12418_v61 }
 0xd08   :  { %4258 = vmatmul.mubr.f32.vlgmr.msra.gmra.mrb[38].mxu1 %v11630_v26  ;;  %7544 = vmatmul.mubr.f32.vlgmr.msra.gmra.mrb[40].mxu0 %v11630_v26 }
 0xd09   :  { %9422 = vmatpush1.bf16.msra.mxu0 %v10315_v9  ;;  %4493 = vmatprep.mubr.f32.mxu0 %v12433_v38 }
 0xd0a   :  { %9424 = vmatprep.subr.bf16.mxu0 %v10317_v10  ;;  %9397 = vmatpush3.bf16.msra.mxu1 %v10761_v51 }
 0xd0b   :  { %9398 = vmatprep.subr.bf16.mxu1 %v12418_v61  ;;  %7578 = vmatprep.mubr.msk.f32.mxu1 %vm10234_vm0, %v12433_v38 }
 0xd0d   :  { %9426 = vmatpush1.bf16.msra.mxu0 %v10321_v15 }
 0xd0e   :  { %9428 = vmatprep.subr.bf16.mxu0 %v10324_v16  ;;  %9400 = vmatpush3.bf16.msra.mxu1 %v10771_v25 }
 0xd0f   :  { %9401 = vmatprep.subr.bf16.mxu1 %v12418_v61 }
 0xd11   :  { %9430 = vmatpush1.bf16.msra.mxu0 %v10327_v21 }
 0xd12   :  { %9432 = vmatprep.subr.bf16.mxu0 %v10330_v23  ;;  %9403 = vmatpush3.bf16.msra.mxu1 %v10780_v17 }
 0xd13   :  { %9404 = vmatprep.subr.bf16.mxu1 %v12418_v61 }
 0xd15   :  { %9434 = vmatpush1.bf16.msra.mxu0 %v12770_v39 }
 0xd16   :  { %9436 = vmatprep.subr.bf16.mxu0 %v12771_v14  ;;  %9406 = vmatpush3.bf16.msra.mxu1 %v12772_v34 }
 0xd17   :  { %9407 = vmatprep.subr.bf16.mxu1 %v12418_v61 }
 0xd19   :  { %9438 = vmatpush1.bf16.msra.mxu0 %v12773_v35 }
 0xd1a   :  { %9440 = vmatprep.subr.bf16.mxu0 %v12774_v44  ;;  %9409 = vmatpush3.bf16.msra.mxu1 %v12775_v13  ;;  %v12796_v13 = vld [vmem:[#allocation41_spill] sm:$0xff] }
 0xd1b   :  { %9410 = vmatprep.subr.bf16.mxu1 %v12418_v61 }
 0xd1d   :  { %9442 = vmatpush1.bf16.msra.mxu0 %v12776_v12  ;;  %v12794_v12 = vld [vmem:[#allocation38_spill] sm:$0xff] }
 0xd1e   :  { %9444 = vmatprep.subr.bf16.mxu0 %v12777_v50  ;;  %9412 = vmatpush3.bf16.msra.mxu1 %v12778_v59  ;;  %v12790_v59 = vld [vmem:[#allocation32_spill] sm:$0xff] }
 0xd1f   :  { %9413 = vmatprep.subr.bf16.mxu1 %v12418_v61  ;;  %v12793_v50 = vld [vmem:[#allocation36_spill] sm:$0xff] }
 0xd21   :  { %9446 = vmatpush1.bf16.msra.mxu0 %v12779_v30  ;;  %v12789_v30 = vld [vmem:[#allocation30_spill] sm:$0xff] }
 0xd22   :  { %9448 = vmatprep.subr.bf16.mxu0 %v12780_v45  ;;  %9415 = vmatpush3.bf16.msra.mxu1 %v12781_v22  ;;  %v12786_v22 = vld [vmem:[#allocation26_spill] sm:$0xff]  ;;  %v12788_v45 = vld [vmem:[#allocation29_spill] sm:$0xff] }
 0xd23   :  { %9416 = vmatprep.subr.bf16.mxu1 %v12418_v61 }
 0xd25   :  { %9450 = vmatpush1.bf16.msra.mxu0 %v12782_v8  ;;  %v12787_v8 = vld [vmem:[#allocation27_spill] sm:$0xff] }
 0xd26   :  { %9476 = vmatprep.subr.bf16.mxu0 %v12783_v43  ;;  %9418 = vmatpush3.bf16.msra.mxu1 %v12784_v41  ;;  %v12791_v43 = vld [vmem:[#allocation33_spill] sm:$0xff]  ;;  %v12792_v41 = vld [vmem:[#allocation35_spill] sm:$0xff] }
 0xd27   :  { %9451 = vmatprep.subr.bf16.mxu1 %v12418_v61 }
 0xd28   :  { %4494 = vmatmul.mubr.f32.vlgmr.msra.gmra.mrb[42].mxu0 %v11774_v1 }
 0xd29   :  { %9478 = vmatpush1.bf16.msra.mxu0 %v12785_v62  ;;  %4634 = vmatprep.mubr.f32.mxu0 %v12433_v38  ;;  %v12795_v62 = vld [vmem:[#allocation39_spill] sm:$0xff] }
 0xd2a   :  { %9480 = vmatprep.subr.bf16.mxu0 %v12786_v22  ;;  %v12797_v22 = vld [vmem:[#allocation42_spill] sm:$0xff] }
 0xd2d   :  { %9482 = vmatpush1.bf16.msra.mxu0 %v12787_v8  ;;  %v12798_v8 = vld [vmem:[#allocation44_spill] sm:$0xff] }
 0xd2e   :  { %9484 = vmatprep.subr.bf16.mxu0 %v12788_v45  ;;  %v12799_v45 = vld [vmem:[#allocation45_spill] sm:$0xff] }
 0xd31   :  { %9486 = vmatpush1.bf16.msra.mxu0 %v12789_v30  ;;  %v12800_v30 = vld [vmem:[#allocation49_spill] sm:$0xff] }
 0xd32   :  { %9488 = vmatprep.subr.bf16.mxu0 %v12790_v59  ;;  %v12812_v59 = vld [vmem:[#allocation67_spill] sm:$0xff] }
 0xd35   :  { %9490 = vmatpush1.bf16.msra.mxu0 %v12791_v43  ;;  %v12801_v43 = vld [vmem:[#allocation50_spill] sm:$0xff] }
 0xd36   :  { %9492 = vmatprep.subr.bf16.mxu0 %v12792_v41  ;;  %v12810_v41 = vld [vmem:[#allocation64_spill] sm:$0xff] }
 0xd39   :  { %9494 = vmatpush1.bf16.msra.mxu0 %v12793_v50  ;;  %v12802_v50 = vld [vmem:[#allocation52_spill] sm:$0xff] }
 0xd3a   :  { %9496 = vmatprep.subr.bf16.mxu0 %v12794_v12  ;;  %v12803_v12 = vld [vmem:[#allocation53_spill] sm:$0xff] }
 0xd3d   :  { %9498 = vmatpush1.bf16.msra.mxu0 %v12795_v62  ;;  %v12804_v62 = vld [vmem:[#allocation55_spill] sm:$0xff] }
 0xd3e   :  { %9500 = vmatprep.subr.bf16.mxu0 %v12796_v13  ;;  %v12805_v13 = vld [vmem:[#allocation56_spill] sm:$0xff] }
 0xd41   :  { %9502 = vmatpush1.bf16.msra.mxu0 %v12797_v22  ;;  %v12806_v22 = vld [vmem:[#allocation58_spill] sm:$0xff] }
 0xd42   :  { %9504 = vmatprep.subr.bf16.mxu0 %v12798_v8  ;;  %v12807_v8 = vld [vmem:[#allocation59_spill] sm:$0xff] }
 0xd45   :  { %9506 = vmatpush1.bf16.msra.mxu0 %v12799_v45  ;;  %v12808_v45 = vld [vmem:[#allocation61_spill] sm:$0xff] }
 0xd46   :  { %9532 = vmatprep.subr.bf16.mxu0 %v12800_v30  ;;  %v12809_v30 = vld [vmem:[#allocation62_spill] sm:$0xff] }
 0xd48   :  { %4635 = vmatmul.mubr.f32.vlgmr.msra.gmra.mrb[42].mxu0 %v11698_v36 }
 0xd49   :  { %9534 = vmatpush1.bf16.msra.mxu0 %v12801_v43  ;;  %4796 = vmatprep.mubr.f32.mxu0 %v12433_v38  ;;  %v12811_v43 = vld [vmem:[#allocation65_spill] sm:$0xff] }
 0xd4a   :  { %9536 = vmatprep.subr.bf16.mxu0 %v12802_v50  ;;  %v12813_v50 = vld [vmem:[#allocation68_spill] sm:$0xff] }
 0xd4d   :  { %9538 = vmatpush1.bf16.msra.mxu0 %v12803_v12  ;;  %v12814_v12 = vld [vmem:[#allocation70_spill] sm:$0xff] }
 0xd4e   :  { %9540 = vmatprep.subr.bf16.mxu0 %v12804_v62  ;;  %v12815_v62 = vld [vmem:[#allocation71_spill] sm:$0xff] }
 0xd51   :  { %9542 = vmatpush1.bf16.msra.mxu0 %v12805_v13  ;;  %v12816_v13 = vld [vmem:[#allocation73_spill] sm:$0xff] }
 0xd52   :  { %9544 = vmatprep.subr.bf16.mxu0 %v12806_v22 }
 0xd55   :  { %9546 = vmatpush1.bf16.msra.mxu0 %v12807_v8 }
 0xd56   :  { %9548 = vmatprep.subr.bf16.mxu0 %v12808_v45 }
 0xd59   :  { %9550 = vmatpush1.bf16.msra.mxu0 %v12809_v30 }
 0xd5a   :  { %9552 = vmatprep.subr.bf16.mxu0 %v12810_v41 }
 0xd5d   :  { %9554 = vmatpush1.bf16.msra.mxu0 %v12811_v43 }
 0xd5e   :  { %9556 = vmatprep.subr.bf16.mxu0 %v12812_v59 }
 0xd61   :  { %9558 = vmatpush1.bf16.msra.mxu0 %v12813_v50 }
 0xd62   :  { %9560 = vmatprep.subr.bf16.mxu0 %v12814_v12 }
 0xd65   :  { %9562 = vmatpush1.bf16.msra.mxu0 %v12815_v62 }
 0xd66   :  { %9588 = vmatprep.subr.bf16.mxu0 %v12816_v13 }
 0xdbb   :  { %v4189_v22 = vpop.f32.mrb[38].mxu0 }
 0xdbc   :  { %v7510_v8 = vpop.f32.mrb[39].mxu0  ;;  %v4190_v39 = vadd.f32 %v4189_v22, %v12532_v28  ;;  %v12823_v22 = vld [vmem:[#allocation34_spill] sm:$0xff] }
 0xddb   :  { %v4259_v44 = vpop.f32.mrb[38].mxu1  ;;  %v4330_v45 = vpop.f32.mrb[40].mxu0 }
 0xddc   :  { %v9960_v30 = vadd.f32 %v10845_v57, %v4259_v44  ;;  %v4261_v35 = vpop.f32.mrb[39].mxu1  ;;  %v7545_v41 = vpop.f32.mrb[41].mxu0  ;;  %v4331_v13 = vadd.f32 %v4330_v45, %v10852_v49  ;;  %v12822_v45 = vld [vmem:[#allocation31_spill] sm:$0xff] }
 0xddd   :  { %v9962_v43 = vadd.f32 %v12531_v56, %v4261_v35 }
 0xdde   :  { %v5835_v34 = vmul.f32 -1.442695, %v9960_v30 }
 0xddf   :  { %v5836_v59 = vmul.f32 -1.442695, %v9962_v43 }
 0xde0   :  { %10128 = vpow2.f32 %v5835_v34 }
 0xde1   :  { %10130 = vpow2.f32 %v5836_v59 }
 0xdea   :  { %v10129_v50 = vpop.eup %10128 }
 0xdeb   :  { %v4338_v12 = vadd.f32 1.0, %v10129_v50  ;;  %v10131_v62 = vpop.eup %10130  ;;  %v12821_v50 = vld [vmem:[#allocation28_spill] sm:$0xff] }
 0xdec   :  { %v4345_v14 = vadd.f32 1.0, %v10131_v62  ;;  %v12824_v62 = vld [vmem:[#allocation37_spill] sm:$0xff] }
 0xded   :  { %10132 = vrcp.f32 %v4338_v12  ;;  %v12820_v12 = vld [vmem:[#allocation25_spill] sm:$0xff] }
 0xdee   :  { %10134 = vrcp.f32 %v4345_v14 }
 0xdf7   :  { %v10133_v8 = vpop.eup %10132 }
 0xdf8   :  { %v4348_v17 = vmul.f32 %v10133_v8, %v4331_v13  ;;  %v10135_v30 = vpop.eup %10134  ;;  %v12819_v13 = vld [vmem:[#allocation22_spill] sm:$0xff]  ;;  %v12825_v8 = vld [vmem:[#allocation40_spill] sm:$0xff] }
 0xdf9   :  { %v4351_v41 = vsub.f32 1.0, %v10135_v30  ;;  %v4353_v59 = vmul.f32 %v10135_v30, %v11630_v26  ;;  %v12828_v30 = vld [vmem:[#allocation47_spill] sm:$0xff] }
 0xdfa   :  { %v4349_v44 = vadd.f32 %v4348_v17, %v4190_v39  ;;  %v12817_v17 = vld [vmem:[#allocation16_spill] sm:$0xff]  ;;  %v12818_v39 = vld [vmem:[#allocation19_spill] sm:$0xff] }
 0xdfc   :  { %10136 = vtanh.f32 %v4349_v44  ;;  %v12827_v44 = vld [vmem:[#allocation46_spill] sm:$0xff] }
 0xe06   :  { %v10137_v35 = vpop.eup %10136 }
 0xe07   :  { %v4352_v34 = vmul.f32 %v10137_v35, %v4351_v41  ;;  %v12829_v41 = vld [vmem:[#allocation48_spill] sm:$0xff]  ;;  %v12830_v35 = vld [vmem:[#allocation51_spill] sm:$0xff] }
 0xe09   :  { %v11820_v43 = vadd.f32 %v4353_v59, %v4352_v34  ;;  %v12831_v34 = vld [vmem:[#allocation54_spill] sm:$0xff]  ;;  %v12832_v59 = vld [vmem:[#allocation57_spill] sm:$0xff] }
 0xe0b   :  { %7579 = vmatmul.mubr.f32.vlgmr.msra.gmra.mrb[40].mxu1 %v11820_v43 }
 0xe0c   :  { %9453 = vmatpush3.bf16.msra.mxu1 %v12604_v53  ;;  %7613 = vmatprep.mubr.msk.f32.mxu1 %vm10234_vm0, %v12433_v38 }
 0xe0d   :  { %9454 = vmatprep.subr.bf16.mxu1 %v12418_v61 }
 0xe10   :  { %9456 = vmatpush3.bf16.msra.mxu1 %v12675_v7 }
 0xe11   :  { %9457 = vmatprep.subr.bf16.mxu1 %v12418_v61 }
 0xe14   :  { %9459 = vmatpush3.bf16.msra.mxu1 %v12746_v32 }
 0xe15   :  { %9460 = vmatprep.subr.bf16.mxu1 %v12418_v61 }
 0xe18   :  { %9462 = vmatpush3.bf16.msra.mxu1 %v12817_v17 }
 0xe19   :  { %9463 = vmatprep.subr.bf16.mxu1 %v12418_v61 }
 0xe1b   :  { %v4636_v26 = vpop.f32.mrb[42].mxu0 }
 0xe1c   :  { %9465 = vmatpush3.bf16.msra.mxu1 %v12818_v39  ;;  %v4638_v14 = vpop.f32.mrb[43].mxu0 }
 0xe1d   :  { %9466 = vmatprep.subr.bf16.mxu1 %v12418_v61 }
 0xe20   :  { %9468 = vmatpush3.bf16.msra.mxu1 %v12819_v13 }
 0xe21   :  { %9469 = vmatprep.subr.bf16.mxu1 %v12418_v61 }
 0xe24   :  { %9471 = vmatpush3.bf16.msra.mxu1 %v12820_v12 }
 0xe25   :  { %9472 = vmatprep.subr.bf16.mxu1 %v12418_v61 }
 0xe28   :  { %9474 = vmatpush3.bf16.msra.mxu1 %v12821_v50 }
 0xe29   :  { %9507 = vmatprep.subr.bf16.mxu1 %v12418_v61 }
 0xe2b   :  { %7614 = vmatmul.mubr.f32.vlgmr.msra.gmra.mrb[42].mxu1 %v11774_v1  ;;  %v12826_v1 = vld [vmem:[#allocation43_spill] sm:$0xff] }
 0xe2c   :  { %9509 = vmatpush3.bf16.msra.mxu1 %v12822_v45  ;;  %7648 = vmatprep.mubr.msk.f32.mxu1 %vm10234_vm0, %v12433_v38 }
 0xe2d   :  { %9510 = vmatprep.subr.bf16.mxu1 %v12418_v61 }
 0xe30   :  { %9512 = vmatpush3.bf16.msra.mxu1 %v12823_v22 }
 0xe31   :  { %9513 = vmatprep.subr.bf16.mxu1 %v12418_v61 }
 0xe34   :  { %9515 = vmatpush3.bf16.msra.mxu1 %v12824_v62 }
 0xe35   :  { %9516 = vmatprep.subr.bf16.mxu1 %v12418_v61 }
 0xe38   :  { %9518 = vmatpush3.bf16.msra.mxu1 %v12825_v8 }
 0xe39   :  { %9519 = vmatprep.subr.bf16.mxu1 %v12418_v61 }
 0xe3c   :  { %9521 = vmatpush3.bf16.msra.mxu1 %v12826_v1 }
 0xe3d   :  { %9522 = vmatprep.subr.bf16.mxu1 %v12418_v61 }
 0xe40   :  { %9524 = vmatpush3.bf16.msra.mxu1 %v12827_v44  ;;  %v12836_v44 = vld [vmem:[#allocation69_spill] sm:$0xff] }
 0xe41   :  { %9525 = vmatprep.subr.bf16.mxu1 %v12418_v61 }
 0xe44   :  { %9527 = vmatpush3.bf16.msra.mxu1 %v12828_v30  ;;  %v12834_v30 = vld [vmem:[#allocation63_spill] sm:$0xff] }
 0xe45   :  { %9528 = vmatprep.subr.bf16.mxu1 %v12418_v61 }
 0xe48   :  { %9530 = vmatpush3.bf16.msra.mxu1 %v12829_v41  ;;  %v12833_v41 = vld [vmem:[#allocation60_spill] sm:$0xff] }
 0xe49   :  { %9563 = vmatprep.subr.bf16.mxu1 %v12418_v61 }
 0xe4b   :  { %7649 = vmatmul.mubr.f32.vlgmr.msra.gmra.mrb[44].mxu1 %v11698_v36 }
 0xe4c   :  { %9565 = vmatpush3.bf16.msra.mxu1 %v12830_v35  ;;  %7683 = vmatprep.mubr.msk.f32.mxu1 %vm10234_vm0, %v12433_v38  ;;  %v12835_v35 = vld [vmem:[#allocation66_spill] sm:$0xff] }
 0xe4d   :  { %9566 = vmatprep.subr.bf16.mxu1 %v12418_v61 }
 0xe50   :  { %9568 = vmatpush3.bf16.msra.mxu1 %v12831_v34  ;;  %v12837_v34 = vld [vmem:[#allocation72_spill] sm:$0xff] }
 0xe51   :  { %9569 = vmatprep.subr.bf16.mxu1 %v12418_v61 }
 0xe54   :  { %9571 = vmatpush3.bf16.msra.mxu1 %v12832_v59 }
 0xe55   :  { %9572 = vmatprep.subr.bf16.mxu1 %v12418_v61 }
 0xe58   :  { %9574 = vmatpush3.bf16.msra.mxu1 %v12833_v41  ;;  %v12838_v41 = vld [vmem:[#allocation79_spill] sm:$0xff] }
 0xe59   :  { %9575 = vmatprep.subr.bf16.mxu1 %v12418_v61 }
 0xe5c   :  { %9577 = vmatpush3.bf16.msra.mxu1 %v12834_v30 }
 0xe5d   :  { %9578 = vmatprep.subr.bf16.mxu1 %v12418_v61 }
 0xe60   :  { %9580 = vmatpush3.bf16.msra.mxu1 %v12835_v35  ;;  %v9964_v35 = vadd.f32 %v12558_v18, %v4636_v26 }
 0xe61   :  { %9581 = vmatprep.subr.bf16.mxu1 %v12418_v61 }
 0xe62   :  { %v5839_v22 = vmul.f32 -1.442695, %v9964_v35 }
 0xe64   :  { %9583 = vmatpush3.bf16.msra.mxu1 %v12836_v44  ;;  %10138 = vpow2.f32 %v5839_v22  ;;  %v12839_v44 = vld [vmem:[#allocation77_spill] sm:$0xff] }
 0xe65   :  { %9584 = vmatprep.subr.bf16.mxu1 %v12418_v61  ;;  %v9966_v45 = vadd.f32 %v12839_v44, %v4638_v14 }
 0xe67   :  { %v5840_v50 = vmul.f32 -1.442695, %v9966_v45 }
 0xe68   :  { %9586 = vmatpush3.bf16.msra.mxu1 %v12837_v34 }
 0xe69   :  { %9619 = vmatprep.subr.bf16.mxu1 %v12418_v61  ;;  %10140 = vpow2.f32 %v5840_v50 }
 0xe6e   :  { %v10139_v34 = vpop.eup %10138 }
 0xe6f   :  { %v4715_v12 = vadd.f32 1.0, %v10139_v34  ;;  %v12852_v34 = vld [vmem:[#allocation97_spill] sm:$0xff] }
 0xe71   :  { %10142 = vrcp.f32 %v4715_v12 }
 0xe73   :  { %v10141_v13 = vpop.eup %10140 }
 0xede   :  { %v4421_v59 = vpop.f32.mrb[40].mxu1 }
 0xedf   :  { %v4422_v1 = vadd.f32 %v12838_v41, %v4421_v59  ;;  %v7580_v8 = vpop.f32.mrb[41].mxu1  ;;  %v4722_v41 = vadd.f32 1.0, %v10141_v13  ;;  %v12849_v13 = vld [vmem:[#allocation96_spill] sm:$0xff] }
 0xee1   :  { %5837 = vst [vmem:[%s12159_s8 + $0x28] sm:$0xff] %v4422_v1  ;;  %v10143_v1 = vpop.eup %10142  ;;  %10144 = vrcp.f32 %v4722_v41  ;;  %v12853_v41 = vld [vmem:[#allocation21_spill] sm:$0xff] }
 0xeeb   :  { %v10145_v22 = vpop.eup %10144 }
 0xeec   :  { %v4728_v14 = vsub.f32 1.0, %v10145_v22  ;;  %v4730_v50 = vmul.f32 %v10145_v22, %v11698_v36  ;;  %v12843_v36 = vld [vmem:[#allocation94_spill] sm:$0xff]  ;;  %v12859_v22 = vld [vmem:[#allocation29_spill] sm:$0xff] }
 0xefe   :  { %v4566_v30 = vpop.f32.mrb[42].mxu1 }
 0xeff   :  { %v7615_v62 = vpop.f32.mrb[43].mxu1  ;;  %v4567_v26 = vadd.f32 %v4566_v30, %v12489_v19  ;;  %v12851_v30 = vld [vmem:[#allocation20_spill] sm:$0xff] }
 0xf1e   :  { %v4707_v8 = vpop.f32.mrb[44].mxu1 }
 0xf1f   :  { %v4708_v59 = vadd.f32 %v4707_v8, %v12488_v60  ;;  %v7650_v39 = vpop.f32.mrb[45].mxu1  ;;  %v11964_v8 = vld [vmem:[%s12151_s0 + $0x38] sm:$0xff] }
 0xf20   :  { %v12846_v39 = vld [vmem:[#allocation95_spill] sm:$0xff] }
 0xf21   :  { %v4725_v62 = vmul.f32 %v10143_v1, %v4708_v59  ;;  %v12854_v59 = vld [vmem:[#allocation23_spill] sm:$0xff]  ;;  %v12855_v1 = vld [vmem:[#allocation98_spill] sm:$0xff] }
 0xf23   :  { %v4726_v35 = vadd.f32 %v4725_v62, %v4567_v26  ;;  %v12856_v26 = vld [vmem:[#allocation24_spill] sm:$0xff]  ;;  %v12857_v62 = vld [vmem:[#allocation26_spill] sm:$0xff] }
 0xf25   :  { %10146 = vtanh.f32 %v4726_v35  ;;  %v12858_v35 = vld [vmem:[#allocation27_spill] sm:$0xff] }
 0xf2f   :  { %v10147_v45 = vpop.eup %10146 }
 0xf30   :  { %v4729_v44 = vmul.f32 %v10147_v45, %v4728_v14  ;;  %v12860_v14 = vld [vmem:[#allocation30_spill] sm:$0xff]  ;;  %v12861_v45 = vld [vmem:[#allocation32_spill] sm:$0xff] }
 0xf32   :  { %v11888_v12 = vadd.f32 %v4730_v50, %v4729_v44  ;;  %v12850_v44 = vld [vmem:[#allocation18_spill] sm:$0xff]  ;;  %v12862_v50 = vld [vmem:[#allocation33_spill] sm:$0xff] }
 0xf34   :  { %4797 = vmatmul.mubr.f32.vlgmr.msra.gmra.mrb[44].mxu0 %v11888_v12  ;;  %7684 = vmatmul.mubr.f32.vlgmr.msra.gmra.mrb[46].mxu1 %v11888_v12 }
 0xf35   :  { %9590 = vmatpush1.bf16.msra.mxu0 %v10603_v47  ;;  %9621 = vmatpush3.bf16.msra.mxu1 %v10605_v11 }
 0xf36   :  { %9592 = vmatprep.subr.bf16.mxu0 %v12490_v2  ;;  %9622 = vmatprep.subr.bf16.mxu1 %v12418_v61 }
 0xf37   :  { %4937 = vmatprep.mubr.f32.mxu0 %v12433_v38  ;;  %7718 = vmatprep.mubr.msk.f32.mxu1 %vm10234_vm0, %v12433_v38 }
 0xf39   :  { %9594 = vmatpush1.bf16.msra.mxu0 %v12491_v0  ;;  %9624 = vmatpush3.bf16.msra.mxu1 %v12492_v31 }
 0xf3a   :  { %9596 = vmatprep.subr.bf16.mxu0 %v12493_v37  ;;  %9625 = vmatprep.subr.bf16.mxu1 %v12418_v61 }
 0xf3d   :  { %9598 = vmatpush1.bf16.msra.mxu0 %v12494_v55  ;;  %9627 = vmatpush3.bf16.msra.mxu1 %v12495_v4 }
 0xf3e   :  { %9600 = vmatprep.subr.bf16.mxu0 %v12496_v63  ;;  %9628 = vmatprep.subr.bf16.mxu1 %v12418_v61 }
 0xf41   :  { %9602 = vmatpush1.bf16.msra.mxu0 %v12497_v48  ;;  %9630 = vmatpush3.bf16.msra.mxu1 %v12498_v58 }
 0xf42   :  { %9604 = vmatprep.subr.bf16.mxu0 %v12499_v54  ;;  %9631 = vmatprep.subr.bf16.mxu1 %v12418_v61 }
 0xf45   :  { %9606 = vmatpush1.bf16.msra.mxu0 %v10648_v33  ;;  %9633 = vmatpush3.bf16.msra.mxu1 %v10650_v3 }
 0xf46   :  { %9608 = vmatprep.subr.bf16.mxu0 %v12500_v6  ;;  %9634 = vmatprep.subr.bf16.mxu1 %v12418_v61 }
 0xf49   :  { %9610 = vmatpush1.bf16.msra.mxu0 %v12501_v24  ;;  %9636 = vmatpush3.bf16.msra.mxu1 %v10660_v42 }
 0xf4a   :  { %9612 = vmatprep.subr.bf16.mxu0 %v10664_v29  ;;  %9637 = vmatprep.subr.bf16.mxu1 %v12418_v61 }
 0xf4d   :  { %9614 = vmatpush1.bf16.msra.mxu0 %v10668_v27  ;;  %9639 = vmatpush3.bf16.msra.mxu1 %v10670_v20 }
 0xf4e   :  { %9616 = vmatprep.subr.bf16.mxu0 %v10674_v52  ;;  %9640 = vmatprep.subr.bf16.mxu1 %v12418_v61 }
 0xf51   :  { %9618 = vmatpush1.bf16.msra.mxu0 %v10678_v46  ;;  %9642 = vmatpush3.bf16.msra.mxu1 %v10680_v40 }
 0xf52   :  { %9668 = vmatprep.subr.bf16.mxu1 %v10313_v5  ;;  %9643 = vmatprep.subr.bf16.mxu0 %v12418_v61  ;;  %v12840_v5 = vld [vmem:[#allocation93_spill] sm:$0xff] }
 0xf54   :  { %4938 = vmatmul.mubr.f32.vlgmr.msra.gmra.mrb[44].mxu0 %v11820_v43  ;;  %7719 = vmatmul.mubr.f32.vlgmr.msra.gmra.mrb[48].mxu1 %v11820_v43 }
 0xf55   :  { %9670 = vmatpush1.bf16.msra.mxu1 %v10315_v9  ;;  %5173 = vmatprep.mubr.f32.mxu1 %v12433_v38  ;;  %v12841_v9 = vld [vmem:[#allocation9_spill] sm:$0xff] }
 0xf56   :  { %9672 = vmatprep.subr.bf16.mxu1 %v10317_v10  ;;  %9645 = vmatpush3.bf16.msra.mxu0 %v10761_v51  ;;  %v12842_v10 = vld [vmem:[#allocation11_spill] sm:$0xff] }
 0xf57   :  { %9646 = vmatprep.subr.bf16.mxu0 %v12418_v61  ;;  %7753 = vmatprep.mubr.msk.f32.mxu0 %vm10234_vm0, %v12433_v38 }
 0xf59   :  { %9674 = vmatpush1.bf16.msra.mxu1 %v10321_v15  ;;  %v12844_v15 = vld [vmem:[#allocation12_spill] sm:$0xff] }
 0xf5a   :  { %9676 = vmatprep.subr.bf16.mxu1 %v10324_v16  ;;  %9648 = vmatpush3.bf16.msra.mxu0 %v10771_v25  ;;  %v12845_v16 = vld [vmem:[#allocation14_spill] sm:$0xff] }
 0xf5b   :  { %9649 = vmatprep.subr.bf16.mxu0 %v12418_v61 }
 0xf5d   :  { %9678 = vmatpush1.bf16.msra.mxu1 %v10327_v21  ;;  %v12847_v21 = vld [vmem:[#allocation15_spill] sm:$0xff] }
 0xf5e   :  { %9680 = vmatprep.subr.bf16.mxu1 %v10330_v23  ;;  %9651 = vmatpush3.bf16.msra.mxu0 %v12840_v5  ;;  %v12848_v23 = vld [vmem:[#allocation17_spill] sm:$0xff] }
 0xf5f   :  { %9652 = vmatprep.subr.bf16.mxu0 %v12418_v61 }
 0xf61   :  { %9682 = vmatpush1.bf16.msra.mxu1 %v12841_v9  ;;  %v12863_v9 = vld [vmem:[#allocation35_spill] sm:$0xff] }
 0xf62   :  { %9684 = vmatprep.subr.bf16.mxu1 %v12842_v10  ;;  %9654 = vmatpush3.bf16.msra.mxu0 %v12843_v36  ;;  %v12864_v10 = vld [vmem:[#allocation36_spill] sm:$0xff] }
 0xf63   :  { %9655 = vmatprep.subr.bf16.mxu0 %v12418_v61 }
 0xf65   :  { %9686 = vmatpush1.bf16.msra.mxu1 %v12844_v15  ;;  %v12865_v15 = vld [vmem:[#allocation38_spill] sm:$0xff] }
 0xf66   :  { %9688 = vmatprep.subr.bf16.mxu1 %v12845_v16  ;;  %9657 = vmatpush3.bf16.msra.mxu0 %v12846_v39  ;;  %v12866_v16 = vld [vmem:[#allocation39_spill] sm:$0xff] }
 0xf67   :  { %9658 = vmatprep.subr.bf16.mxu0 %v12418_v61 }
 0xf69   :  { %9690 = vmatpush1.bf16.msra.mxu1 %v12847_v21  ;;  %v12867_v21 = vld [vmem:[#allocation41_spill] sm:$0xff] }
 0xf6a   :  { %9692 = vmatprep.subr.bf16.mxu1 %v12848_v23  ;;  %9660 = vmatpush3.bf16.msra.mxu0 %v12849_v13  ;;  %v12868_v23 = vld [vmem:[#allocation42_spill] sm:$0xff] }
 0xf6b   :  { %9661 = vmatprep.subr.bf16.mxu0 %v12418_v61 }
 0xf6d   :  { %9694 = vmatpush1.bf16.msra.mxu1 %v12850_v44  ;;  %v12869_v44 = vld [vmem:[#allocation44_spill] sm:$0xff] }
 0xf6e   :  { %9696 = vmatprep.subr.bf16.mxu1 %v12851_v30  ;;  %9663 = vmatpush3.bf16.msra.mxu0 %v12852_v34  ;;  %v12870_v30 = vld [vmem:[#allocation45_spill] sm:$0xff] }
 0xf6f   :  { %9664 = vmatprep.subr.bf16.mxu0 %v12418_v61 }
 0xf71   :  { %9698 = vmatpush1.bf16.msra.mxu1 %v12853_v41  ;;  %v12871_v41 = vld [vmem:[#allocation49_spill] sm:$0xff] }
 0xf72   :  { %9724 = vmatprep.subr.bf16.mxu1 %v12854_v59  ;;  %9666 = vmatpush3.bf16.msra.mxu0 %v12855_v1  ;;  %v12872_v59 = vld [vmem:[#allocation50_spill] sm:$0xff] }
 0xf73   :  { %9699 = vmatprep.subr.bf16.mxu0 %v12418_v61 }
 0xf74   :  { %5174 = vmatmul.mubr.f32.vlgmr.msra.gmra.mrb[50].mxu1 %v11964_v8 }
 0xf75   :  { %9726 = vmatpush1.bf16.msra.mxu1 %v12856_v26  ;;  %5314 = vmatprep.mubr.f32.mxu1 %v12433_v38  ;;  %v12873_v26 = vld [vmem:[#allocation52_spill] sm:$0xff] }
 0xf76   :  { %9728 = vmatprep.subr.bf16.mxu1 %v12857_v62  ;;  %v12874_v62 = vld [vmem:[#allocation53_spill] sm:$0xff] }
 0xf79   :  { %9730 = vmatpush1.bf16.msra.mxu1 %v12858_v35  ;;  %v12875_v35 = vld [vmem:[#allocation55_spill] sm:$0xff] }
 0xf7a   :  { %9732 = vmatprep.subr.bf16.mxu1 %v12859_v22  ;;  %v12876_v22 = vld [vmem:[#allocation56_spill] sm:$0xff] }
 0xf7d   :  { %9734 = vmatpush1.bf16.msra.mxu1 %v12860_v14  ;;  %v12877_v14 = vld [vmem:[#allocation58_spill] sm:$0xff] }
 0xf7e   :  { %9736 = vmatprep.subr.bf16.mxu1 %v12861_v45  ;;  %v12878_v45 = vld [vmem:[#allocation59_spill] sm:$0xff] }
 0xf81   :  { %9738 = vmatpush1.bf16.msra.mxu1 %v12862_v50  ;;  %v12879_v50 = vld [vmem:[#allocation61_spill] sm:$0xff] }
 0xf82   :  { %9740 = vmatprep.subr.bf16.mxu1 %v12863_v9  ;;  %v12880_v9 = vld [vmem:[#allocation62_spill] sm:$0xff] }
 0xf85   :  { %9742 = vmatpush1.bf16.msra.mxu1 %v12864_v10  ;;  %v12881_v10 = vld [vmem:[#allocation64_spill] sm:$0xff] }
 0xf86   :  { %9744 = vmatprep.subr.bf16.mxu1 %v12865_v15  ;;  %v12882_v15 = vld [vmem:[#allocation65_spill] sm:$0xff] }
 0xf89   :  { %9746 = vmatpush1.bf16.msra.mxu1 %v12866_v16  ;;  %v12883_v16 = vld [vmem:[#allocation67_spill] sm:$0xff] }
 0xf8a   :  { %9748 = vmatprep.subr.bf16.mxu1 %v12867_v21  ;;  %v12884_v21 = vld [vmem:[#allocation68_spill] sm:$0xff] }
 0xf8d   :  { %9750 = vmatpush1.bf16.msra.mxu1 %v12868_v23  ;;  %v12885_v23 = vld [vmem:[#allocation70_spill] sm:$0xff] }
 0xf8e   :  { %9752 = vmatprep.subr.bf16.mxu1 %v12869_v44  ;;  %v12886_v44 = vld [vmem:[#allocation71_spill] sm:$0xff] }
 0xf91   :  { %9754 = vmatpush1.bf16.msra.mxu1 %v12870_v30  ;;  %v12887_v30 = vld [vmem:[#allocation73_spill] sm:$0xff] }
 0xf92   :  { %9780 = vmatprep.subr.bf16.mxu1 %v12871_v41 }
 0xf94   :  { %5315 = vmatmul.mubr.f32.vlgmr.msra.gmra.mrb[50].mxu1 %v11888_v12 }
 0xf95   :  { %9782 = vmatpush1.bf16.msra.mxu1 %v12872_v59  ;;  %5476 = vmatprep.mubr.f32.mxu1 %v12433_v38 }
 0xf96   :  { %9784 = vmatprep.subr.bf16.mxu1 %v12873_v26 }
 0xf99   :  { %9786 = vmatpush1.bf16.msra.mxu1 %v12874_v62 }
 0xf9a   :  { %9788 = vmatprep.subr.bf16.mxu1 %v12875_v35 }
 0xf9d   :  { %9790 = vmatpush1.bf16.msra.mxu1 %v12876_v22 }
 0xf9e   :  { %9792 = vmatprep.subr.bf16.mxu1 %v12877_v14 }
 0xfa1   :  { %9794 = vmatpush1.bf16.msra.mxu1 %v12878_v45 }
 0xfa2   :  { %9796 = vmatprep.subr.bf16.mxu1 %v12879_v50 }
 0xfa5   :  { %9798 = vmatpush1.bf16.msra.mxu1 %v12880_v9 }
 0xfa6   :  { %9800 = vmatprep.subr.bf16.mxu1 %v12881_v10 }
 0xfa9   :  { %9802 = vmatpush1.bf16.msra.mxu1 %v12882_v15 }
 0xfaa   :  { %9804 = vmatprep.subr.bf16.mxu1 %v12883_v16 }
 0xfad   :  { %9806 = vmatpush1.bf16.msra.mxu1 %v12884_v21 }
 0xfae   :  { %9808 = vmatprep.subr.bf16.mxu1 %v12885_v23 }
 0xfb1   :  { %9810 = vmatpush1.bf16.msra.mxu1 %v12886_v44 }
 0xfb2   :  { %9836 = vmatprep.subr.bf16.mxu1 %v12887_v30 }
0x1007   :  { %v4869_v41 = vpop.f32.mrb[46].mxu1 }
0x1008   :  { %v7685_v59 = vpop.f32.mrb[47].mxu1  ;;  %v4870_v30 = vadd.f32 %v4869_v41, %v12532_v28  ;;  %v12888_v41 = vld [vmem:[#allocation19_spill] sm:$0xff] }
0x1027   :  { %v4939_v26 = vpop.f32.mrb[44].mxu0  ;;  %v5010_v62 = vpop.f32.mrb[48].mxu1 }
0x1028   :  { %v9968_v35 = vadd.f32 %v10845_v57, %v4939_v26  ;;  %v4941_v22 = vpop.f32.mrb[45].mxu0  ;;  %v7720_v14 = vpop.f32.mrb[49].mxu1  ;;  %v5011_v23 = vadd.f32 %v5010_v62, %v10852_v49  ;;  %v12889_v62 = vld [vmem:[#allocation22_spill] sm:$0xff] }
0x1029   :  { %v9970_v50 = vadd.f32 %v12531_v56, %v4941_v22 }
0x102a   :  { %v5841_v45 = vmul.f32 -1.442695, %v9968_v35 }
0x102b   :  { %v5842_v9 = vmul.f32 -1.442695, %v9970_v50 }
0x102c   :  { %10148 = vpow2.f32 %v5841_v45 }
0x102d   :  { %10150 = vpow2.f32 %v5842_v9 }
0x1036   :  { %v10149_v10 = vpop.eup %10148 }
0x1037   :  { %v5018_v15 = vadd.f32 1.0, %v10149_v10  ;;  %v10151_v16 = vpop.eup %10150  ;;  %v12893_v10 = vld [vmem:[#allocation34_spill] sm:$0xff] }
0x1038   :  { %v5025_v21 = vadd.f32 1.0, %v10151_v16  ;;  %v12895_v16 = vld [vmem:[#allocation40_spill] sm:$0xff] }
0x1039   :  { %10152 = vrcp.f32 %v5018_v15  ;;  %v12894_v15 = vld [vmem:[#allocation37_spill] sm:$0xff] }
0x103a   :  { %10154 = vrcp.f32 %v5025_v21  ;;  %v12897_v21 = vld [vmem:[#allocation46_spill] sm:$0xff] }
0x1043   :  { %v10153_v44 = vpop.eup %10152 }
0x1044   :  { %v5028_v59 = vmul.f32 %v10153_v44, %v5011_v23  ;;  %v10155_v35 = vpop.eup %10154  ;;  %v12898_v23 = vld [vmem:[#allocation47_spill] sm:$0xff]  ;;  %v12899_v44 = vld [vmem:[#allocation48_spill] sm:$0xff] }
0x1045   :  { %v5031_v14 = vsub.f32 1.0, %v10155_v35  ;;  %v5033_v50 = vmul.f32 %v10155_v35, %v11820_v43  ;;  %v12903_v35 = vld [vmem:[#allocation60_spill] sm:$0xff] }
0x1046   :  { %v5029_v26 = vadd.f32 %v5028_v59, %v4870_v30  ;;  %v12900_v30 = vld [vmem:[#allocation51_spill] sm:$0xff]  ;;  %v12901_v59 = vld [vmem:[#allocation54_spill] sm:$0xff] }
0x1048   :  { %10156 = vtanh.f32 %v5029_v26  ;;  %v12902_v26 = vld [vmem:[#allocation57_spill] sm:$0xff] }
0x1052   :  { %v10157_v22 = vpop.eup %10156 }
0x1053   :  { %v5032_v45 = vmul.f32 %v10157_v22, %v5031_v14  ;;  %v12904_v14 = vld [vmem:[#allocation63_spill] sm:$0xff]  ;;  %v12905_v22 = vld [vmem:[#allocation66_spill] sm:$0xff] }
0x1055   :  { %v12010_v9 = vadd.f32 %v5033_v50, %v5032_v45  ;;  %v12906_v45 = vld [vmem:[#allocation69_spill] sm:$0xff]  ;;  %v12907_v50 = vld [vmem:[#allocation72_spill] sm:$0xff] }
0x1057   :  { %7754 = vmatmul.mubr.f32.vlgmr.msra.gmra.mrb[46].mxu0 %v12010_v9 }
0x1058   :  { %9701 = vmatpush3.bf16.msra.mxu0 %v12604_v53  ;;  %7788 = vmatprep.mubr.msk.f32.mxu0 %vm10234_vm0, %v12433_v38 }
0x1059   :  { %9702 = vmatprep.subr.bf16.mxu0 %v12418_v61 }
0x105c   :  { %9704 = vmatpush3.bf16.msra.mxu0 %v12675_v7  ;;  %v12890_v7 = vld [vmem:[#allocation25_spill] sm:$0xff] }
0x105d   :  { %9705 = vmatprep.subr.bf16.mxu0 %v12418_v61 }
0x1060   :  { %9707 = vmatpush3.bf16.msra.mxu0 %v12746_v32  ;;  %v12891_v32 = vld [vmem:[#allocation28_spill] sm:$0xff] }
0x1061   :  { %9708 = vmatprep.subr.bf16.mxu0 %v12418_v61 }
0x1064   :  { %9710 = vmatpush3.bf16.msra.mxu0 %v12817_v17  ;;  %v12892_v17 = vld [vmem:[#allocation31_spill] sm:$0xff] }
0x1065   :  { %9711 = vmatprep.subr.bf16.mxu0 %v12418_v61 }
0x1067   :  { %v5316_v43 = vpop.f32.mrb[50].mxu1 }
0x1068   :  { %9713 = vmatpush3.bf16.msra.mxu0 %v12888_v41  ;;  %v5318_v53 = vpop.f32.mrb[51].mxu1 }
0x1069   :  { %9714 = vmatprep.subr.bf16.mxu0 %v12418_v61 }
0x106c   :  { %9716 = vmatpush3.bf16.msra.mxu0 %v12889_v62  ;;  %v12072_v62 = vld [vmem:[%s12158_s7] ss:$0 sm:$0xff] }
0x106d   :  { %9717 = vmatprep.subr.bf16.mxu0 %v12418_v61 }
0x1070   :  { %9719 = vmatpush3.bf16.msra.mxu0 %v12890_v7 }
0x1071   :  { %9720 = vmatprep.subr.bf16.mxu0 %v12418_v61 }
0x1074   :  { %9722 = vmatpush3.bf16.msra.mxu0 %v12891_v32 }
0x1075   :  { %9755 = vmatprep.subr.bf16.mxu0 %v12418_v61 }
0x1077   :  { %7789 = vmatmul.mubr.f32.vlgmr.msra.gmra.mrb[48].mxu0 %v11964_v8  ;;  %v12896_v8 = vld [vmem:[#allocation43_spill] sm:$0xff] }
0x1078   :  { %9757 = vmatpush3.bf16.msra.mxu0 %v12892_v17  ;;  %7823 = vmatprep.mubr.msk.f32.mxu0 %vm10234_vm0, %v12433_v38  ;;  %v9972_v17 = vadd.f32 %v12558_v18, %v5316_v43 }
0x1079   :  { %9758 = vmatprep.subr.bf16.mxu0 %v12418_v61 }
0x107c   :  { %9760 = vmatpush3.bf16.msra.mxu0 %v12893_v10 }
0x107d   :  { %9761 = vmatprep.subr.bf16.mxu0 %v12418_v61 }
0x1080   :  { %9763 = vmatpush3.bf16.msra.mxu0 %v12894_v15 }
0x1081   :  { %9764 = vmatprep.subr.bf16.mxu0 %v12418_v61 }
0x1084   :  { %9766 = vmatpush3.bf16.msra.mxu0 %v12895_v16  ;;  %v5845_v16 = vmul.f32 -1.442695, %v9972_v17 }
0x1085   :  { %9767 = vmatprep.subr.bf16.mxu0 %v12418_v61 }
0x1086   :  { %10158 = vpow2.f32 %v5845_v16 }
0x1088   :  { %9769 = vmatpush3.bf16.msra.mxu0 %v12896_v8  ;;  %v12908_v8 = vld [vmem:[#allocation77_spill] sm:$0xff] }
0x1089   :  { %9770 = vmatprep.subr.bf16.mxu0 %v12418_v61 }
0x108c   :  { %9772 = vmatpush3.bf16.msra.mxu0 %v12897_v21  ;;  %v9974_v21 = vadd.f32 %v12908_v8, %v5318_v53 }
0x108d   :  { %9773 = vmatprep.subr.bf16.mxu0 %v12418_v61 }
0x1090   :  { %9775 = vmatpush3.bf16.msra.mxu0 %v12898_v23  ;;  %v5846_v23 = vmul.f32 -1.442695, %v9974_v21 }
0x1091   :  { %9776 = vmatprep.subr.bf16.mxu0 %v12418_v61 }
0x1092   :  { %10160 = vpow2.f32 %v5846_v23 }
0x1094   :  { %9778 = vmatpush3.bf16.msra.mxu0 %v12899_v44  ;;  %v10159_v44 = vpop.eup %10158 }
0x1095   :  { %9811 = vmatprep.subr.bf16.mxu0 %v12418_v61 }
0x1097   :  { %7824 = vmatmul.mubr.f32.vlgmr.msra.gmra.mrb[50].mxu0 %v11888_v12 }
0x1098   :  { %9813 = vmatpush3.bf16.msra.mxu0 %v12900_v30  ;;  %7858 = vmatprep.mubr.msk.f32.mxu0 %vm10234_vm0, %v12433_v38  ;;  %v5395_v30 = vadd.f32 1.0, %v10159_v44 }
0x1099   :  { %9814 = vmatprep.subr.bf16.mxu0 %v12418_v61 }
0x109a   :  { %10162 = vrcp.f32 %v5395_v30 }
0x109c   :  { %9816 = vmatpush3.bf16.msra.mxu0 %v12901_v59  ;;  %v10161_v59 = vpop.eup %10160 }
0x109d   :  { %9817 = vmatprep.subr.bf16.mxu0 %v12418_v61 }
0x10a0   :  { %9819 = vmatpush3.bf16.msra.mxu0 %v12902_v26  ;;  %v5402_v26 = vadd.f32 1.0, %v10161_v59 }
0x10a1   :  { %9820 = vmatprep.subr.bf16.mxu0 %v12418_v61 }
0x10a2   :  { %10164 = vrcp.f32 %v5402_v26 }
0x10a4   :  { %9822 = vmatpush3.bf16.msra.mxu0 %v12903_v35 }
0x10a5   :  { %9823 = vmatprep.subr.bf16.mxu0 %v12418_v61 }
0x10a8   :  { %9825 = vmatpush3.bf16.msra.mxu0 %v12904_v14 }
0x10a9   :  { %9826 = vmatprep.subr.bf16.mxu0 %v12418_v61 }
0x10ac   :  { %9828 = vmatpush3.bf16.msra.mxu0 %v12905_v22 }
0x10ad   :  { %9829 = vmatprep.subr.bf16.mxu0 %v12418_v61 }
0x10b0   :  { %9831 = vmatpush3.bf16.msra.mxu0 %v12906_v45  ;;  %v10163_v45 = vpop.eup %10162 }
0x10b1   :  { %9832 = vmatprep.subr.bf16.mxu0 %v12418_v61 }
0x10b4   :  { %9834 = vmatpush3.bf16.msra.mxu0 %v12907_v50 }
0x10b5   :  { %9867 = vmatprep.subr.bf16.mxu0 %v12418_v61 }
0x112a   :  { %v5101_v41 = vpop.f32.mrb[46].mxu0 }
0x112b   :  { %v5102_v7 = vadd.f32 %v12072_v62, %v5101_v41  ;;  %v7755_v32 = vpop.f32.mrb[47].mxu0  ;;  %v10165_v41 = vpop.eup %10164 }
0x112c   :  { %v5408_v53 = vsub.f32 1.0, %v10165_v41  ;;  %v5410_v17 = vmul.f32 %v10165_v41, %v11888_v12 }
0x112d   :  { %5843 = vst [vmem:[%s12159_s8 + $0x30] sm:$0xff] %v5102_v7 }
0x114a   :  { %v5246_v10 = vpop.f32.mrb[48].mxu0 }
0x114b   :  { %v7790_v15 = vpop.f32.mrb[49].mxu0  ;;  %v5247_v18 = vadd.f32 %v5246_v10, %v12489_v19 }
0x116a   :  { %v5387_v35 = vpop.f32.mrb[50].mxu0 }
0x116b   :  { %v5388_v14 = vadd.f32 %v5387_v35, %v12488_v60  ;;  %v7825_v22 = vpop.f32.mrb[51].mxu0 }
0x116d   :  { %v5405_v43 = vmul.f32 %v10163_v45, %v5388_v14 }
0x116f   :  { %v5406_v50 = vadd.f32 %v5405_v43, %v5247_v18 }
0x1171   :  { %10166 = vtanh.f32 %v5406_v50 }
0x117b   :  { %v10167_v7 = vpop.eup %10166 }
0x117c   :  { %v5409_v32 = vmul.f32 %v10167_v7, %v5408_v53 }
0x117e   :  { %v5411_v15 = vadd.f32 %v5410_v17, %v5409_v32 }
0x1180   :  { %5477 = vmatmul.mubr.f32.vlgmr.msra.gmra.mrb[52].mxu1 %v5411_v15  ;;  %5787 = vst [vmem:[%s12160_s9] sm:$0xff] %v5411_v15  ;;  %7859 = vmatmul.mubr.f32.vlgmr.msra.gmra.mrb[52].mxu0 %v5411_v15 }
0x1181   :  { %9838 = vmatpush1.bf16.msra.mxu1 %v10603_v47  ;;  %9869 = vmatpush3.bf16.msra.mxu0 %v10605_v11 }
0x1182   :  { %9840 = vmatprep.subr.bf16.mxu1 %v12490_v2  ;;  %9870 = vmatprep.subr.bf16.mxu0 %v12418_v61 }
0x1183   :  { %5617 = vmatprep.mubr.f32.mxu1 %v12433_v38  ;;  %7893 = vmatprep.mubr.msk.f32.mxu0 %vm10234_vm0, %v12433_v38 }
0x1185   :  { %9842 = vmatpush1.bf16.msra.mxu1 %v12491_v0  ;;  %9872 = vmatpush3.bf16.msra.mxu0 %v12492_v31 }
0x1186   :  { %9844 = vmatprep.subr.bf16.mxu1 %v12493_v37  ;;  %9873 = vmatprep.subr.bf16.mxu0 %v12418_v61 }
0x1189   :  { %9846 = vmatpush1.bf16.msra.mxu1 %v12494_v55  ;;  %9875 = vmatpush3.bf16.msra.mxu0 %v12495_v4 }
0x118a   :  { %9848 = vmatprep.subr.bf16.mxu1 %v12496_v63  ;;  %9876 = vmatprep.subr.bf16.mxu0 %v12418_v61 }
0x118d   :  { %9850 = vmatpush1.bf16.msra.mxu1 %v12497_v48  ;;  %9878 = vmatpush3.bf16.msra.mxu0 %v12498_v58 }
0x118e   :  { %9852 = vmatprep.subr.bf16.mxu1 %v12499_v54  ;;  %9879 = vmatprep.subr.bf16.mxu0 %v12418_v61 }
0x1191   :  { %9854 = vmatpush1.bf16.msra.mxu1 %v10648_v33  ;;  %9881 = vmatpush3.bf16.msra.mxu0 %v10650_v3 }
0x1192   :  { %9856 = vmatprep.subr.bf16.mxu1 %v12500_v6  ;;  %9882 = vmatprep.subr.bf16.mxu0 %v12418_v61 }
0x1195   :  { %9858 = vmatpush1.bf16.msra.mxu1 %v12501_v24  ;;  %9884 = vmatpush3.bf16.msra.mxu0 %v10660_v42 }
0x1196   :  { %9860 = vmatprep.subr.bf16.mxu1 %v10664_v29  ;;  %9885 = vmatprep.subr.bf16.mxu0 %v12418_v61 }
0x1199   :  { %9862 = vmatpush1.bf16.msra.mxu1 %v10668_v27  ;;  %9887 = vmatpush3.bf16.msra.mxu0 %v10670_v20 }
0x119a   :  { %9864 = vmatprep.subr.bf16.mxu1 %v10674_v52  ;;  %9888 = vmatprep.subr.bf16.mxu0 %v12418_v61 }
0x119d   :  { %9866 = vmatpush1.bf16.msra.mxu1 %v10678_v46  ;;  %9890 = vmatpush3.bf16.msra.mxu0 %v10680_v40 }
0x119e   :  { %9891 = vmatprep.subr.bf16.mxu1 %v12418_v61 }
0x11a0   :  { %5618 = vmatmul.mubr.f32.vlgmr.msra.gmra.mrb[52].mxu1 %v12010_v9  ;;  %7894 = vmatmul.mubr.f32.vlgmr.msra.gmra.mrb[54].mxu0 %v12010_v9 }
0x11a1   :  { %9893 = vmatpush3.bf16.msra.mxu1 %v10761_v51  ;;  %7928 = vmatprep.mubr.msk.f32.mxu1 %vm10234_vm0, %v12433_v38 }
0x11a2   :  { %9894 = vmatprep.subr.bf16.mxu1 %v12418_v61 }
0x11a5   :  { %9896 = vmatpush3.bf16.msra.mxu1 %v10771_v25 }
0x11a6   :  { %9897 = vmatprep.subr.bf16.mxu1 %v12418_v61 }
0x11a9   :  { %9899 = vmatpush3.bf16.msra.mxu1 %v12840_v5 }
0x11aa   :  { %9900 = vmatprep.subr.bf16.mxu1 %v12418_v61 }
0x11ad   :  { %9902 = vmatpush3.bf16.msra.mxu1 %v12843_v36 }
0x11ae   :  { %9903 = vmatprep.subr.bf16.mxu1 %v12418_v61 }
0x11b1   :  { %9905 = vmatpush3.bf16.msra.mxu1 %v12846_v39 }
0x11b2   :  { %9906 = vmatprep.subr.bf16.mxu1 %v12418_v61 }
0x11b5   :  { %9908 = vmatpush3.bf16.msra.mxu1 %v12849_v13 }
0x11b6   :  { %9909 = vmatprep.subr.bf16.mxu1 %v12418_v61 }
0x11b9   :  { %9911 = vmatpush3.bf16.msra.mxu1 %v12852_v34 }
0x11ba   :  { %9912 = vmatprep.subr.bf16.mxu1 %v12418_v61 }
0x11bd   :  { %9914 = vmatpush3.bf16.msra.mxu1 %v12855_v1 }
0x1253   :  { %v5549_v11 = vpop.f32.mrb[52].mxu0 }
0x1254   :  { %v7860_v47 = vpop.f32.mrb[53].mxu0  ;;  %v5550_v19 = vadd.f32 %v5549_v11, %v12532_v28 }
0x1273   :  { %v5619_v38 = vpop.f32.mrb[52].mxu1  ;;  %v5690_v33 = vpop.f32.mrb[54].mxu0 }
0x1274   :  { %v9976_v3 = vadd.f32 %v10845_v57, %v5619_v38  ;;  %v5621_v46 = vpop.f32.mrb[53].mxu1  ;;  %v7895_v42 = vpop.f32.mrb[55].mxu0  ;;  %v5691_v25 = vadd.f32 %v5690_v33, %v10852_v49 }
0x1275   :  { %v9978_v27 = vadd.f32 %v12531_v56, %v5621_v46 }
0x1276   :  { %v5847_v29 = vmul.f32 -1.442695, %v9976_v3 }
0x1277   :  { %v5848_v20 = vmul.f32 -1.442695, %v9978_v27 }
0x1278   :  { %10168 = vpow2.f32 %v5847_v29 }
0x1279   :  { %10170 = vpow2.f32 %v5848_v20 }
0x1282   :  { %v10169_v52 = vpop.eup %10168 }
0x1283   :  { %v5698_v40 = vadd.f32 1.0, %v10169_v52  ;;  %v10171_v61 = vpop.eup %10170 }
0x1284   :  { %v5705_v51 = vadd.f32 1.0, %v10171_v61 }
0x1285   :  { %10172 = vrcp.f32 %v5698_v40 }
0x1286   :  { %10174 = vrcp.f32 %v5705_v51 }
0x128f   :  { %v10173_v60 = vpop.eup %10172 }
0x1290   :  { %v5708_v2 = vmul.f32 %v10173_v60, %v5691_v25  ;;  %v10175_v0 = vpop.eup %10174 }
0x1291   :  { %v5711_v31 = vsub.f32 1.0, %v10175_v0  ;;  %v5713_v4 = vmul.f32 %v10175_v0, %v12010_v9 }
0x1292   :  { %v5709_v57 = vadd.f32 %v5708_v2, %v5550_v19 }
0x1294   :  { %10176 = vtanh.f32 %v5709_v57 }
0x129e   :  { %v10177_v37 = vpop.eup %10176 }
0x129f   :  { %v5712_v55 = vmul.f32 %v10177_v37, %v5711_v31 }
0x12a1   :  { %v5714_v63 = vadd.f32 %v5713_v4, %v5712_v55 }
0x12a3   :  { %7929 = vmatmul.mubr.f32.vlgmr.msra.gmra.mrb[54].mxu1 %v5714_v63  ;;  %5850 = vst [vmem:[%s12160_s9 + $0x8] sm:$0xff] %v5714_v63 }
0x1376   :  { %v5781_v49 = vpop.f32.mrb[54].mxu1 }
0x1377   :  { %v5782_v48 = vadd.f32 %v12072_v62, %v5781_v49  ;;  %v7930_v28 = vpop.f32.mrb[55].mxu1 }
0x1379   :  { %5849 = vst [vmem:[%s12159_s8 + $0x38] sm:$0xff] %v5782_v48 }
0x137a   :  { %5798 = vsyncpa [#allocation3], 1 }
0x137b   :  { %5799 = vsyncpa [#allocation5], 1 }

</bundles_post_ra>
